<compile_context>
chip_gen: v6e
topology: v6e:2x2x1
jax: 0.10.0
libtpu: 0.0.40
codegen_flags: <defaults>
</compile_context>

<pallas_src>
import functools
import math

import jax
import jax.numpy as jnp
from jax.experimental import pallas as pl
from jax.experimental.pallas import tpu as pltpu

_NEG_INF = -1e9  # matches torch masked_fill(mask == 0, -1e9)


# --------------------------- in-kernel helpers ------------------------------

def _layer_norm(y, g, b):
    mean = jnp.mean(y, axis=-1, keepdims=True)
    cent = y - mean
    var = jnp.mean(cent * cent, axis=-1, keepdims=True)      # biased, like torch
    return cent * jax.lax.rsqrt(var + 1e-5) * g + b


def _softmax(s):
    s = s - jnp.max(s, axis=-1, keepdims=True)
    p = jnp.exp(s)
    return p * pl.reciprocal(jnp.sum(p, axis=-1, keepdims=True), approx=True)


def _dot_nt(a, b):
    """a @ b.T via dot_general contracting last dims (no transpose materialized)."""
    return jax.lax.dot_general(a, b, (((1,), (1,)), ((), ())),
                               preferred_element_type=jnp.float32)


def _attend(q, k, v, mask, scale):
    s = _dot_nt(q, k) * scale
    if mask is not None:
        s = jnp.where(mask, s, _NEG_INF)
    return jnp.dot(_softmax(s), v, preferred_element_type=jnp.float32)


def _mha(x_q, x_kv, w_ref, b_ref, group, layer, L, H, scale, segments):
    """Multi-head attention with per-head weight slabs (no sub-128-lane slicing).

    w_ref rows: ((group*L + layer)*4 + t)*H + h  with t in {Q, K, V, W_o^T}.
    b_ref rows: ((group*L + layer)*3 + t)*H + h  with t in {Q, K, V}.
    segments: None for one unmasked segment; else a list of
    (row_start, row_len, bool_mask) row-blocks that only attend within
    themselves (decoder self-attention, one block per tgt batch row).
    Returns sum_h (softmax(QK^T/sqrt(dk)) V)_h @ Wo_h  (W_o bias added by caller).
    """
    wb = (group * L + layer) * 4 * H
    bb = (group * L + layer) * 3 * H
    out = None
    for h in range(H):
        q = jnp.dot(x_q, w_ref[wb + 0 * H + h],
                    preferred_element_type=jnp.float32) + b_ref[bb + 0 * H + h]
        k = jnp.dot(x_kv, w_ref[wb + 1 * H + h],
                    preferred_element_type=jnp.float32) + b_ref[bb + 1 * H + h]
        v = jnp.dot(x_kv, w_ref[wb + 2 * H + h],
                    preferred_element_type=jnp.float32) + b_ref[bb + 2 * H + h]
        if segments is None:
            o = _attend(q, k, v, None, scale)
        else:
            parts = [_attend(q[r0:r0 + rn], k[r0:r0 + rn], v[r0:r0 + rn], m, scale)
                     for (r0, rn, m) in segments]
            o = jnp.concatenate(parts, axis=0)               # 8-aligned sublane concat
        contrib = _dot_nt(o, w_ref[wb + 3 * H + h])          # head-concat folded into W_o
        out = contrib if out is None else out + contrib
    return out


def _ffn(x, w1, b1, w2, b2):
    h = jnp.maximum(jnp.dot(x, w1, preferred_element_type=jnp.float32) + b1, 0.0)
    return jnp.dot(h, w2, preferred_element_type=jnp.float32) + b2


# ------------------------------ fused kernel --------------------------------

def _netformer_kernel(src_ref, tgt_ref, mfs_ref, eps_ref,
                      e_ln1_ref, d_ln1_ref,
                      w_attn_ref, b_attn_ref,
                      w_ff1_ref, b_ff1_ref, w_ff2_ref,
                      vec_dm_ref, head_w_ref, head_b_ref,
                      d_ln2w_ref, d_ln2b_ref,
                      out_ref,
                      *, num_layers, num_heads, b_tgt, s_tgt):
    L, H = num_layers, num_heads
    d_model = e_ln1_ref.shape[-1]
    scale = 1.0 / math.sqrt(d_model // H)

    # ---------------- encoder (src batch row 0 only) ----------------
    # Self-attention never mixes batch rows and only enc_output[0, 0] feeds the
    # latent, so the other src batch rows are dead for the forward output.
    # src_ref is the augmented row-0 input: x = [emb_token ; src0 @ W_ln1 + b].
    x = jnp.dot(src_ref[...], e_ln1_ref[...], preferred_element_type=jnp.float32)
    for l in range(L):
        a = _mha(x, x, w_attn_ref, b_attn_ref, 0, l, L, H, scale, None)
        x = _layer_norm(x + a + vec_dm_ref[l * 6 + 0],
                        vec_dm_ref[l * 6 + 1], vec_dm_ref[l * 6 + 2])
        f = _ffn(x, w_ff1_ref[l], b_ff1_ref[l], w_ff2_ref[l], vec_dm_ref[l * 6 + 3])
        x = _layer_norm(x + f, vec_dm_ref[l * 6 + 4], vec_dm_ref[l * 6 + 5])

    # ---------------- VAE reparameterization + memory build ----------------
    enc_vec = x[0:1, :]                                      # enc_output[0, 0]
    mu = jnp.dot(enc_vec, head_w_ref[0],
                 preferred_element_type=jnp.float32) + head_b_ref[0]
    sigma = jnp.exp(jnp.dot(enc_vec, head_w_ref[1],
                            preferred_element_type=jnp.float32) + head_b_ref[1])
    z = mu + sigma * eps_ref[...]                            # lanes >= latent are 0
    # TODO(synk): the KL term (sigma^2 + mu^2 - log sigma - 1/2).sum() is a side
    # attribute of the torch module, not part of the forward output; omitted.
    mem = mfs_ref[...] + z                                   # (B_src, d_model) = [z | mfs]

    # -------------------------------- decoder --------------------------------
    tgt = tgt_ref[...]                                       # (B_tgt*S_tgt, 5), col 4 = 1
    X = jnp.dot(tgt, d_ln1_ref[...], preferred_element_type=jnp.float32)
    rows_i = jax.lax.broadcasted_iota(jnp.int32, (s_tgt, s_tgt), 0)
    cols_i = jax.lax.broadcasted_iota(jnp.int32, (s_tgt, s_tgt), 1)
    causal = cols_i <= rows_i
    segs = []
    for b in range(b_tgt):
        # Pad flag masks query ROWS: torch's (B,1,S,1) pad mask & (1,S,S) no-peek
        # broadcasts the pad indicator over the key dim -- verified vs reference.
        pad = tgt[b * s_tgt:(b + 1) * s_tgt, 0:1] != 1e-9
        segs.append((b * s_tgt, s_tgt, jnp.logical_and(pad, causal)))
    base = L * 6
    for l in range(L):                                       # dropout == identity (eval)
        a = _mha(X, X, w_attn_ref, b_attn_ref, 1, l, L, H, scale, segs)
        X = _layer_norm(X + a + vec_dm_ref[base + l * 9 + 0],
                        vec_dm_ref[base + l * 9 + 1], vec_dm_ref[base + l * 9 + 2])
        a = _mha(X, mem, w_attn_ref, b_attn_ref, 2, l, L, H, scale, None)
        X = _layer_norm(X + a + vec_dm_ref[base + l * 9 + 3],
                        vec_dm_ref[base + l * 9 + 4], vec_dm_ref[base + l * 9 + 5])
        f = _ffn(X, w_ff1_ref[L + l], b_ff1_ref[L + l], w_ff2_ref[L + l],
                 vec_dm_ref[base + l * 9 + 6])
        X = _layer_norm(X + f, vec_dm_ref[base + l * 9 + 7],
                        vec_dm_ref[base + l * 9 + 8])
    out_ref[...] = (jnp.dot(X, d_ln2w_ref[...], preferred_element_type=jnp.float32)
                    + d_ln2b_ref[...])


# ------------------------------ forward wrapper -------------------------------

def netformer_forward(params, src, tgt, mfs, eps, *, num_heads, num_layers):
    b_src, s_src, feat = src.shape
    b_tgt, s_tgt, tfeat = tgt.shape
    d_model = params['e_ln1'].shape[-1]
    latent = d_model - mfs.shape[-1]
    f32 = jnp.float32

    # Encoder input (src row 0 only).  Indicator columns fold the learned [emb]
    # token (row 0 of e_ln1) and the ln1 bias (last row) into one matmul, so no
    # misaligned in-kernel concat/store is needed.
    src0 = src[0].astype(f32)
    emb_row = jnp.zeros((1, feat + 2), f32).at[0, 0].set(1.0)
    body = jnp.concatenate([jnp.zeros((s_src, 1), f32), src0,
                            jnp.ones((s_src, 1), f32)], axis=-1)
    src_aug = jnp.concatenate([emb_row, body], axis=0)          # (S_src+1, feat+2)

    # Decoder input: bias column appended, batch rows stacked along sublanes.
    tgt_aug = jnp.concatenate([tgt.astype(f32),
                               jnp.ones((b_tgt, s_tgt, 1), f32)], axis=-1)
    tgt2d = tgt_aug.reshape(b_tgt * s_tgt, tfeat + 1)

    # Zero-pad mfs in front / eps at the back so mem = mfs_pad + [z | 0] in-kernel.
    mfs_pad = jnp.pad(mfs.astype(f32), ((0, 0), (latent, 0)))
    eps_pad = jnp.pad(eps.astype(f32), ((0, 0), (0, d_model - latent)))

    kernel = functools.partial(_netformer_kernel, num_layers=num_layers,
                               num_heads=num_heads, b_tgt=b_tgt, s_tgt=s_tgt)
    args = (src_aug, tgt2d, mfs_pad, eps_pad,
            params['e_ln1'], params['d_ln1'],
            params['w_attn'], params['b_attn'],
            params['w_ff1'], params['b_ff1'], params['w_ff2'],
            params['vec_dm'], params['head_w'], params['head_b'],
            params['d_ln2w'], params['d_ln2b'])
    vmem = pl.BlockSpec(memory_space=pltpu.MemorySpace.VMEM)
    out2d = pl.pallas_call(
        kernel,
        out_shape=jax.ShapeDtypeStruct((b_tgt * s_tgt, tfeat), f32),
        in_specs=[vmem] * len(args),
        out_specs=vmem,
    )(*args)
    return out2d.reshape(b_tgt, s_tgt, tfeat)


# ------------------------------- param init -----------------------------------

def init_netformer(key, d_model, num_heads, num_layers, d_ff):
    assert d_model % num_heads == 0 and d_model > 26
    latent = d_model - 26
    L, H = num_layers, num_heads
    d_k = d_model // num_heads
    keys = iter(jax.random.split(key, 64))

    def rnd(shape, scale=0.05):
        return scale * jax.random.normal(next(keys), shape, jnp.float32)

    # Encoder input projection rows: [emb_token ; ln1.W (4 rows) ; ln1.b].
    e_ln1 = jnp.concatenate(
        [jax.random.normal(next(keys), (1, d_model), jnp.float32),   # emb_token ~ N(0,1)
         rnd((4, d_model)), rnd((1, d_model))], axis=0)
    # Decoder input projection rows: [ln1.W (4 rows) ; ln1.b].
    d_ln1 = jnp.concatenate([rnd((4, d_model)), rnd((1, d_model))], axis=0)

    # Per-head attention weights (Q, K, V, W_o^T per head, each (d_model, d_k)),
    # stacked for groups {encoder-self, decoder-self, decoder-cross} x L x 4 x H.
    w_attn = rnd((3 * L * 4 * H, d_model, d_k))
    # Per-head Q/K/V biases, stacked for 3 groups x L x 3 x H.
    b_attn = rnd((3 * L * 3 * H, 1, d_k))

    # FFN stacks: encoder layers first, then decoder layers.
    w_ff1 = rnd((2 * L, d_model, d_ff))
    b_ff1 = rnd((2 * L, 1, d_ff))
    w_ff2 = rnd((2 * L, d_ff, d_model))

    # All (1, d_model) vectors (W_o biases, LN gamma/beta, FFN b2) in one stack:
    # encoder per layer [bo, n1g, n1b, ff_b2, n2g, n2b], then
    # decoder per layer [s_bo, n1g, n1b, c_bo, n2g, n2b, ff_b2, n3g, n3b].
    ones_dm = jnp.ones((1, d_model), jnp.float32)
    zeros_dm = jnp.zeros((1, d_model), jnp.float32)
    rows = []
    for _ in range(L):
        rows += [rnd((1, d_model)), ones_dm, zeros_dm,
                 rnd((1, d_model)), ones_dm, zeros_dm]
    for _ in range(L):
        rows += [rnd((1, d_model)), ones_dm, zeros_dm,
                 rnd((1, d_model)), ones_dm, zeros_dm,
                 rnd((1, d_model)), ones_dm, zeros_dm]
    vec_dm = jnp.stack(rows, axis=0)

    # fc_mu / fc_sigma, zero-padded to d_model output lanes so z can be produced
    # as a d_model-wide vector (no lane concat in-kernel): padded lanes give
    # mu=0, log-sigma=0 -> sigma=1, and eps is zero-padded there.
    pad = d_model - latent
    head_w = jnp.stack([jnp.pad(rnd((d_model, latent)), ((0, 0), (0, pad))),
                        jnp.pad(rnd((d_model, latent)), ((0, 0), (0, pad)))])
    head_b = jnp.stack([jnp.pad(rnd((1, latent)), ((0, 0), (0, pad))),
                        jnp.pad(rnd((1, latent)), ((0, 0), (0, pad)))])

    d_ln2w = rnd((d_model, 4))
    d_ln2b = rnd((1, 4))
    return dict(e_ln1=e_ln1, d_ln1=d_ln1, w_attn=w_attn, b_attn=b_attn,
                w_ff1=w_ff1, b_ff1=b_ff1, w_ff2=w_ff2, vec_dm=vec_dm,
                head_w=head_w, head_b=head_b, d_ln2w=d_ln2w, d_ln2b=d_ln2b)


# ----------------------------------- main --------------------------------------

if __name__ == "__main__":
    d_model, num_heads, num_layers, d_ff = 32, 2, 2, 64
    B_src, S_src = 4, 8          # src: (B_src, S_src, 4); B_src also = memory seq len
    B_tgt, S_tgt = 2, 8          # tgt: (B_tgt, S_tgt, 4)
    latent_dim = d_model - 26

    key = jax.random.PRNGKey(0)
    k_param, k_src, k_tgt, k_mfs, k_eps = jax.random.split(key, 5)

    params = init_netformer(k_param, d_model, num_heads, num_layers, d_ff)
    src = jax.random.normal(k_src, (B_src, S_src, 4), jnp.float32)
    tgt = jax.random.normal(k_tgt, (B_tgt, S_tgt, 4), jnp.float32)
    mfs = jax.random.normal(k_mfs, (B_src, 26), jnp.float32)
    eps = jax.random.normal(k_eps, (1, latent_dim), jnp.float32)   # N(0,1) sample

    fwd = jax.jit(functools.partial(netformer_forward,
                                    num_heads=num_heads, num_layers=num_layers))
    out = jax.block_until_ready(fwd(params, src, tgt, mfs, eps))

    assert out.shape == (B_tgt, S_tgt, 4) and out.dtype == jnp.float32
    assert bool(jnp.all(jnp.isfinite(out)))
    print("KERNEL_OK")
</pallas_src>

<mosaic_0001>
module attributes {stable_mosaic.version = 11 : i64} {
  func.func @_netformer_kernel(%arg0: memref<9x6xf32, #tpu.memory_space<vmem>>, %arg1: memref<16x5xf32, #tpu.memory_space<vmem>>, %arg2: memref<4x32xf32, #tpu.memory_space<vmem>>, %arg3: memref<1x32xf32, #tpu.memory_space<vmem>>, %arg4: memref<6x32xf32, #tpu.memory_space<vmem>>, %arg5: memref<5x32xf32, #tpu.memory_space<vmem>>, %arg6: memref<48x32x16xf32, #tpu.memory_space<vmem>>, %arg7: memref<36x1x16xf32, #tpu.memory_space<vmem>>, %arg8: memref<4x32x64xf32, #tpu.memory_space<vmem>>, %arg9: memref<4x1x64xf32, #tpu.memory_space<vmem>>, %arg10: memref<4x64x32xf32, #tpu.memory_space<vmem>>, %arg11: memref<30x1x32xf32, #tpu.memory_space<vmem>>, %arg12: memref<2x32x32xf32, #tpu.memory_space<vmem>>, %arg13: memref<2x1x32xf32, #tpu.memory_space<vmem>>, %arg14: memref<32x4xf32, #tpu.memory_space<vmem>>, %arg15: memref<1x4xf32, #tpu.memory_space<vmem>>, %arg16: memref<16x4xf32, #tpu.memory_space<vmem>>) attributes {dimension_semantics = [], scalar_prefetch = 0 : i64, scratch_operands = 0 : i64, tpu.core_type = #tpu.core_type<tc>} {
    %c0 = arith.constant 0 : index
    %c0_0 = arith.constant 0 : index
    %0 = vector.load %arg0[%c0, %c0_0] : memref<9x6xf32, #tpu.memory_space<vmem>>, vector<9x6xf32>
    %c0_1 = arith.constant 0 : index
    %c0_2 = arith.constant 0 : index
    %1 = vector.load %arg4[%c0_1, %c0_2] : memref<6x32xf32, #tpu.memory_space<vmem>>, vector<6x32xf32>
    %cst = arith.constant dense<0.000000e+00> : vector<9x32xf32>
    %2 = tpu.matmul %0, %1, %cst {dimension_numbers = #tpu.dot_dimension_numbers<[1], [0], [0], [1], [0, 0, 1, 1], [], []>} : vector<9x6xf32>, vector<6x32xf32>, vector<9x32xf32> -> vector<9x32xf32>
    %c0_3 = arith.constant 0 : index
    %c0_4 = arith.constant 0 : index
    %c0_5 = arith.constant 0 : index
    %3 = vector.load %arg6[%c0_3, %c0_4, %c0_5] : memref<48x32x16xf32, #tpu.memory_space<vmem>>, vector<1x32x16xf32>
    %4 = vector.shape_cast %3 : vector<1x32x16xf32> to vector<32x16xf32>
    %cst_6 = arith.constant dense<0.000000e+00> : vector<9x16xf32>
    %5 = tpu.matmul %2, %4, %cst_6 {dimension_numbers = #tpu.dot_dimension_numbers<[1], [0], [0], [1], [0, 0, 1, 1], [], []>} : vector<9x32xf32>, vector<32x16xf32>, vector<9x16xf32> -> vector<9x16xf32>
    %c0_7 = arith.constant 0 : index
    %c0_8 = arith.constant 0 : index
    %c0_9 = arith.constant 0 : index
    %6 = vector.load %arg7[%c0_7, %c0_8, %c0_9] : memref<36x1x16xf32, #tpu.memory_space<vmem>>, vector<1x1x16xf32>
    %7 = vector.shape_cast %6 : vector<1x1x16xf32> to vector<1x16xf32>
    %8 = vector.broadcast %7 : vector<1x16xf32> to vector<9x16xf32>
    %9 = arith.addf %5, %8 : vector<9x16xf32>
    %c2 = arith.constant 2 : index
    %c0_10 = arith.constant 0 : index
    %c0_11 = arith.constant 0 : index
    %10 = vector.load %arg6[%c2, %c0_10, %c0_11] : memref<48x32x16xf32, #tpu.memory_space<vmem>>, vector<1x32x16xf32>
    %11 = vector.shape_cast %10 : vector<1x32x16xf32> to vector<32x16xf32>
    %cst_12 = arith.constant dense<0.000000e+00> : vector<9x16xf32>
    %12 = tpu.matmul %2, %11, %cst_12 {dimension_numbers = #tpu.dot_dimension_numbers<[1], [0], [0], [1], [0, 0, 1, 1], [], []>} : vector<9x32xf32>, vector<32x16xf32>, vector<9x16xf32> -> vector<9x16xf32>
    %c2_13 = arith.constant 2 : index
    %c0_14 = arith.constant 0 : index
    %c0_15 = arith.constant 0 : index
    %13 = vector.load %arg7[%c2_13, %c0_14, %c0_15] : memref<36x1x16xf32, #tpu.memory_space<vmem>>, vector<1x1x16xf32>
    %14 = vector.shape_cast %13 : vector<1x1x16xf32> to vector<1x16xf32>
    %15 = vector.broadcast %14 : vector<1x16xf32> to vector<9x16xf32>
    %16 = arith.addf %12, %15 : vector<9x16xf32>
    %c4 = arith.constant 4 : index
    %c0_16 = arith.constant 0 : index
    %c0_17 = arith.constant 0 : index
    %17 = vector.load %arg6[%c4, %c0_16, %c0_17] : memref<48x32x16xf32, #tpu.memory_space<vmem>>, vector<1x32x16xf32>
    %18 = vector.shape_cast %17 : vector<1x32x16xf32> to vector<32x16xf32>
    %cst_18 = arith.constant dense<0.000000e+00> : vector<9x16xf32>
    %19 = tpu.matmul %2, %18, %cst_18 {dimension_numbers = #tpu.dot_dimension_numbers<[1], [0], [0], [1], [0, 0, 1, 1], [], []>} : vector<9x32xf32>, vector<32x16xf32>, vector<9x16xf32> -> vector<9x16xf32>
    %c4_19 = arith.constant 4 : index
    %c0_20 = arith.constant 0 : index
    %c0_21 = arith.constant 0 : index
    %20 = vector.load %arg7[%c4_19, %c0_20, %c0_21] : memref<36x1x16xf32, #tpu.memory_space<vmem>>, vector<1x1x16xf32>
    %21 = vector.shape_cast %20 : vector<1x1x16xf32> to vector<1x16xf32>
    %22 = vector.broadcast %21 : vector<1x16xf32> to vector<9x16xf32>
    %23 = arith.addf %19, %22 : vector<9x16xf32>
    %cst_22 = arith.constant dense<0.000000e+00> : vector<9x9xf32>
    %24 = tpu.matmul %9, %16, %cst_22 {dimension_numbers = #tpu.dot_dimension_numbers<[1], [1], [0], [0], [0, 0, 1, 0], [], []>} : vector<9x16xf32>, vector<9x16xf32>, vector<9x9xf32> -> vector<9x9xf32>
    %cst_23 = arith.constant 2.500000e-01 : f32
    %25 = vector.broadcast %cst_23 : f32 to vector<9x9xf32>
    %26 = arith.mulf %24, %25 : vector<9x9xf32>
    %cst_24 = arith.constant dense<0xFF800000> : vector<9xf32>
    %27 = vector.multi_reduction <maximumf>, %26, %cst_24 [1] : vector<9x9xf32> to vector<9xf32>
    %28 = vector.shape_cast %27 : vector<9xf32> to vector<9x1xf32>
    %29 = vector.broadcast %28 : vector<9x1xf32> to vector<9x9xf32>
    %30 = arith.subf %26, %29 : vector<9x9xf32>
    %31 = math.exp %30 : vector<9x9xf32>
    %cst_25 = arith.constant dense<0.000000e+00> : vector<9xf32>
    %32 = vector.multi_reduction <add>, %31, %cst_25 [1] : vector<9x9xf32> to vector<9xf32>
    %33 = vector.shape_cast %32 : vector<9xf32> to vector<9x1xf32>
    %34 = tpu.reciprocal %33 {approx = true} : vector<9x1xf32> -> vector<9x1xf32>
    %35 = vector.broadcast %34 : vector<9x1xf32> to vector<9x9xf32>
    %36 = arith.mulf %31, %35 : vector<9x9xf32>
    %cst_26 = arith.constant dense<0.000000e+00> : vector<9x16xf32>
    %37 = tpu.matmul %36, %23, %cst_26 {dimension_numbers = #tpu.dot_dimension_numbers<[1], [0], [0], [1], [0, 0, 1, 1], [], []>} : vector<9x9xf32>, vector<9x16xf32>, vector<9x16xf32> -> vector<9x16xf32>
    %c6 = arith.constant 6 : index
    %c0_27 = arith.constant 0 : index
    %c0_28 = arith.constant 0 : index
    %38 = vector.load %arg6[%c6, %c0_27, %c0_28] : memref<48x32x16xf32, #tpu.memory_space<vmem>>, vector<1x32x16xf32>
    %39 = vector.shape_cast %38 : vector<1x32x16xf32> to vector<32x16xf32>
    %cst_29 = arith.constant dense<0.000000e+00> : vector<9x32xf32>
    %40 = tpu.matmul %37, %39, %cst_29 {dimension_numbers = #tpu.dot_dimension_numbers<[1], [1], [0], [0], [0, 0, 1, 0], [], []>} : vector<9x16xf32>, vector<32x16xf32>, vector<9x32xf32> -> vector<9x32xf32>
    %c1 = arith.constant 1 : index
    %c0_30 = arith.constant 0 : index
    %c0_31 = arith.constant 0 : index
    %41 = vector.load %arg6[%c1, %c0_30, %c0_31] : memref<48x32x16xf32, #tpu.memory_space<vmem>>, vector<1x32x16xf32>
    %42 = vector.shape_cast %41 : vector<1x32x16xf32> to vector<32x16xf32>
    %cst_32 = arith.constant dense<0.000000e+00> : vector<9x16xf32>
    %43 = tpu.matmul %2, %42, %cst_32 {dimension_numbers = #tpu.dot_dimension_numbers<[1], [0], [0], [1], [0, 0, 1, 1], [], []>} : vector<9x32xf32>, vector<32x16xf32>, vector<9x16xf32> -> vector<9x16xf32>
    %c1_33 = arith.constant 1 : index
    %c0_34 = arith.constant 0 : index
    %c0_35 = arith.constant 0 : index
    %44 = vector.load %arg7[%c1_33, %c0_34, %c0_35] : memref<36x1x16xf32, #tpu.memory_space<vmem>>, vector<1x1x16xf32>
    %45 = vector.shape_cast %44 : vector<1x1x16xf32> to vector<1x16xf32>
    %46 = vector.broadcast %45 : vector<1x16xf32> to vector<9x16xf32>
    %47 = arith.addf %43, %46 : vector<9x16xf32>
    %c3 = arith.constant 3 : index
    %c0_36 = arith.constant 0 : index
    %c0_37 = arith.constant 0 : index
    %48 = vector.load %arg6[%c3, %c0_36, %c0_37] : memref<48x32x16xf32, #tpu.memory_space<vmem>>, vector<1x32x16xf32>
    %49 = vector.shape_cast %48 : vector<1x32x16xf32> to vector<32x16xf32>
    %cst_38 = arith.constant dense<0.000000e+00> : vector<9x16xf32>
    %50 = tpu.matmul %2, %49, %cst_38 {dimension_numbers = #tpu.dot_dimension_numbers<[1], [0], [0], [1], [0, 0, 1, 1], [], []>} : vector<9x32xf32>, vector<32x16xf32>, vector<9x16xf32> -> vector<9x16xf32>
    %c3_39 = arith.constant 3 : index
    %c0_40 = arith.constant 0 : index
    %c0_41 = arith.constant 0 : index
    %51 = vector.load %arg7[%c3_39, %c0_40, %c0_41] : memref<36x1x16xf32, #tpu.memory_space<vmem>>, vector<1x1x16xf32>
    %52 = vector.shape_cast %51 : vector<1x1x16xf32> to vector<1x16xf32>
    %53 = vector.broadcast %52 : vector<1x16xf32> to vector<9x16xf32>
    %54 = arith.addf %50, %53 : vector<9x16xf32>
    %c5 = arith.constant 5 : index
    %c0_42 = arith.constant 0 : index
    %c0_43 = arith.constant 0 : index
    %55 = vector.load %arg6[%c5, %c0_42, %c0_43] : memref<48x32x16xf32, #tpu.memory_space<vmem>>, vector<1x32x16xf32>
    %56 = vector.shape_cast %55 : vector<1x32x16xf32> to vector<32x16xf32>
    %cst_44 = arith.constant dense<0.000000e+00> : vector<9x16xf32>
    %57 = tpu.matmul %2, %56, %cst_44 {dimension_numbers = #tpu.dot_dimension_numbers<[1], [0], [0], [1], [0, 0, 1, 1], [], []>} : vector<9x32xf32>, vector<32x16xf32>, vector<9x16xf32> -> vector<9x16xf32>
    %c5_45 = arith.constant 5 : index
    %c0_46 = arith.constant 0 : index
    %c0_47 = arith.constant 0 : index
    %58 = vector.load %arg7[%c5_45, %c0_46, %c0_47] : memref<36x1x16xf32, #tpu.memory_space<vmem>>, vector<1x1x16xf32>
    %59 = vector.shape_cast %58 : vector<1x1x16xf32> to vector<1x16xf32>
    %60 = vector.broadcast %59 : vector<1x16xf32> to vector<9x16xf32>
    %61 = arith.addf %57, %60 : vector<9x16xf32>
    %cst_48 = arith.constant dense<0.000000e+00> : vector<9x9xf32>
    %62 = tpu.matmul %47, %54, %cst_48 {dimension_numbers = #tpu.dot_dimension_numbers<[1], [1], [0], [0], [0, 0, 1, 0], [], []>} : vector<9x16xf32>, vector<9x16xf32>, vector<9x9xf32> -> vector<9x9xf32>
    %cst_49 = arith.constant 2.500000e-01 : f32
    %63 = vector.broadcast %cst_49 : f32 to vector<9x9xf32>
    %64 = arith.mulf %62, %63 : vector<9x9xf32>
    %cst_50 = arith.constant dense<0xFF800000> : vector<9xf32>
    %65 = vector.multi_reduction <maximumf>, %64, %cst_50 [1] : vector<9x9xf32> to vector<9xf32>
    %66 = vector.shape_cast %65 : vector<9xf32> to vector<9x1xf32>
    %67 = vector.broadcast %66 : vector<9x1xf32> to vector<9x9xf32>
    %68 = arith.subf %64, %67 : vector<9x9xf32>
    %69 = math.exp %68 : vector<9x9xf32>
    %cst_51 = arith.constant dense<0.000000e+00> : vector<9xf32>
    %70 = vector.multi_reduction <add>, %69, %cst_51 [1] : vector<9x9xf32> to vector<9xf32>
    %71 = vector.shape_cast %70 : vector<9xf32> to vector<9x1xf32>
    %72 = tpu.reciprocal %71 {approx = true} : vector<9x1xf32> -> vector<9x1xf32>
    %73 = vector.broadcast %72 : vector<9x1xf32> to vector<9x9xf32>
    %74 = arith.mulf %69, %73 : vector<9x9xf32>
    %cst_52 = arith.constant dense<0.000000e+00> : vector<9x16xf32>
    %75 = tpu.matmul %74, %61, %cst_52 {dimension_numbers = #tpu.dot_dimension_numbers<[1], [0], [0], [1], [0, 0, 1, 1], [], []>} : vector<9x9xf32>, vector<9x16xf32>, vector<9x16xf32> -> vector<9x16xf32>
    %c7 = arith.constant 7 : index
    %c0_53 = arith.constant 0 : index
    %c0_54 = arith.constant 0 : index
    %76 = vector.load %arg6[%c7, %c0_53, %c0_54] : memref<48x32x16xf32, #tpu.memory_space<vmem>>, vector<1x32x16xf32>
    %77 = vector.shape_cast %76 : vector<1x32x16xf32> to vector<32x16xf32>
    %cst_55 = arith.constant dense<0.000000e+00> : vector<9x32xf32>
    %78 = tpu.matmul %75, %77, %cst_55 {dimension_numbers = #tpu.dot_dimension_numbers<[1], [1], [0], [0], [0, 0, 1, 0], [], []>} : vector<9x16xf32>, vector<32x16xf32>, vector<9x32xf32> -> vector<9x32xf32>
    %79 = arith.addf %40, %78 : vector<9x32xf32>
    %80 = arith.addf %2, %79 : vector<9x32xf32>
    %c0_56 = arith.constant 0 : index
    %c0_57 = arith.constant 0 : index
    %c0_58 = arith.constant 0 : index
    %81 = vector.load %arg11[%c0_56, %c0_57, %c0_58] : memref<30x1x32xf32, #tpu.memory_space<vmem>>, vector<1x1x32xf32>
    %82 = vector.shape_cast %81 : vector<1x1x32xf32> to vector<1x32xf32>
    %83 = vector.broadcast %82 : vector<1x32xf32> to vector<9x32xf32>
    %84 = arith.addf %80, %83 : vector<9x32xf32>
    %c1_59 = arith.constant 1 : index
    %c0_60 = arith.constant 0 : index
    %c0_61 = arith.constant 0 : index
    %85 = vector.load %arg11[%c1_59, %c0_60, %c0_61] : memref<30x1x32xf32, #tpu.memory_space<vmem>>, vector<1x1x32xf32>
    %86 = vector.shape_cast %85 : vector<1x1x32xf32> to vector<1x32xf32>
    %c2_62 = arith.constant 2 : index
    %c0_63 = arith.constant 0 : index
    %c0_64 = arith.constant 0 : index
    %87 = vector.load %arg11[%c2_62, %c0_63, %c0_64] : memref<30x1x32xf32, #tpu.memory_space<vmem>>, vector<1x1x32xf32>
    %88 = vector.shape_cast %87 : vector<1x1x32xf32> to vector<1x32xf32>
    %cst_65 = arith.constant dense<0.000000e+00> : vector<9xf32>
    %89 = vector.multi_reduction <add>, %84, %cst_65 [1] : vector<9x32xf32> to vector<9xf32>
    %90 = vector.shape_cast %89 : vector<9xf32> to vector<9x1xf32>
    %cst_66 = arith.constant 3.200000e+01 : f32
    %91 = vector.broadcast %cst_66 : f32 to vector<9x1xf32>
    %92 = arith.divf %90, %91 : vector<9x1xf32>
    %93 = vector.broadcast %92 : vector<9x1xf32> to vector<9x32xf32>
    %94 = arith.subf %84, %93 : vector<9x32xf32>
    %95 = arith.mulf %94, %94 : vector<9x32xf32>
    %cst_67 = arith.constant dense<0.000000e+00> : vector<9xf32>
    %96 = vector.multi_reduction <add>, %95, %cst_67 [1] : vector<9x32xf32> to vector<9xf32>
    %97 = vector.shape_cast %96 : vector<9xf32> to vector<9x1xf32>
    %cst_68 = arith.constant 3.200000e+01 : f32
    %98 = vector.broadcast %cst_68 : f32 to vector<9x1xf32>
    %99 = arith.divf %97, %98 : vector<9x1xf32>
    %cst_69 = arith.constant 9.99999974E-6 : f32
    %100 = vector.broadcast %cst_69 : f32 to vector<9x1xf32>
    %101 = arith.addf %99, %100 : vector<9x1xf32>
    %102 = math.rsqrt %101 : vector<9x1xf32>
    %103 = vector.broadcast %102 : vector<9x1xf32> to vector<9x32xf32>
    %104 = arith.mulf %94, %103 : vector<9x32xf32>
    %105 = vector.broadcast %86 : vector<1x32xf32> to vector<9x32xf32>
    %106 = arith.mulf %104, %105 : vector<9x32xf32>
    %107 = vector.broadcast %88 : vector<1x32xf32> to vector<9x32xf32>
    %108 = arith.addf %106, %107 : vector<9x32xf32>
    %c0_70 = arith.constant 0 : index
    %c0_71 = arith.constant 0 : index
    %c0_72 = arith.constant 0 : index
    %109 = vector.load %arg8[%c0_70, %c0_71, %c0_72] : memref<4x32x64xf32, #tpu.memory_space<vmem>>, vector<1x32x64xf32>
    %110 = vector.shape_cast %109 : vector<1x32x64xf32> to vector<32x64xf32>
    %c0_73 = arith.constant 0 : index
    %c0_74 = arith.constant 0 : index
    %c0_75 = arith.constant 0 : index
    %111 = vector.load %arg9[%c0_73, %c0_74, %c0_75] : memref<4x1x64xf32, #tpu.memory_space<vmem>>, vector<1x1x64xf32>
    %112 = vector.shape_cast %111 : vector<1x1x64xf32> to vector<1x64xf32>
    %c0_76 = arith.constant 0 : index
    %c0_77 = arith.constant 0 : index
    %c0_78 = arith.constant 0 : index
    %113 = vector.load %arg10[%c0_76, %c0_77, %c0_78] : memref<4x64x32xf32, #tpu.memory_space<vmem>>, vector<1x64x32xf32>
    %114 = vector.shape_cast %113 : vector<1x64x32xf32> to vector<64x32xf32>
    %c3_79 = arith.constant 3 : index
    %c0_80 = arith.constant 0 : index
    %c0_81 = arith.constant 0 : index
    %115 = vector.load %arg11[%c3_79, %c0_80, %c0_81] : memref<30x1x32xf32, #tpu.memory_space<vmem>>, vector<1x1x32xf32>
    %116 = vector.shape_cast %115 : vector<1x1x32xf32> to vector<1x32xf32>
    %cst_82 = arith.constant dense<0.000000e+00> : vector<9x64xf32>
    %117 = tpu.matmul %108, %110, %cst_82 {dimension_numbers = #tpu.dot_dimension_numbers<[1], [0], [0], [1], [0, 0, 1, 1], [], []>} : vector<9x32xf32>, vector<32x64xf32>, vector<9x64xf32> -> vector<9x64xf32>
    %118 = vector.broadcast %112 : vector<1x64xf32> to vector<9x64xf32>
    %119 = arith.addf %117, %118 : vector<9x64xf32>
    %cst_83 = arith.constant 0.000000e+00 : f32
    %120 = vector.broadcast %cst_83 : f32 to vector<9x64xf32>
    %121 = arith.maximumf %119, %120 : vector<9x64xf32>
    %cst_84 = arith.constant dense<0.000000e+00> : vector<9x32xf32>
    %122 = tpu.matmul %121, %114, %cst_84 {dimension_numbers = #tpu.dot_dimension_numbers<[1], [0], [0], [1], [0, 0, 1, 1], [], []>} : vector<9x64xf32>, vector<64x32xf32>, vector<9x32xf32> -> vector<9x32xf32>
    %123 = vector.broadcast %116 : vector<1x32xf32> to vector<9x32xf32>
    %124 = arith.addf %122, %123 : vector<9x32xf32>
    %125 = arith.addf %108, %124 : vector<9x32xf32>
    %c4_85 = arith.constant 4 : index
    %c0_86 = arith.constant 0 : index
    %c0_87 = arith.constant 0 : index
    %126 = vector.load %arg11[%c4_85, %c0_86, %c0_87] : memref<30x1x32xf32, #tpu.memory_space<vmem>>, vector<1x1x32xf32>
    %127 = vector.shape_cast %126 : vector<1x1x32xf32> to vector<1x32xf32>
    %c5_88 = arith.constant 5 : index
    %c0_89 = arith.constant 0 : index
    %c0_90 = arith.constant 0 : index
    %128 = vector.load %arg11[%c5_88, %c0_89, %c0_90] : memref<30x1x32xf32, #tpu.memory_space<vmem>>, vector<1x1x32xf32>
    %129 = vector.shape_cast %128 : vector<1x1x32xf32> to vector<1x32xf32>
    %cst_91 = arith.constant dense<0.000000e+00> : vector<9xf32>
    %130 = vector.multi_reduction <add>, %125, %cst_91 [1] : vector<9x32xf32> to vector<9xf32>
    %131 = vector.shape_cast %130 : vector<9xf32> to vector<9x1xf32>
    %cst_92 = arith.constant 3.200000e+01 : f32
    %132 = vector.broadcast %cst_92 : f32 to vector<9x1xf32>
    %133 = arith.divf %131, %132 : vector<9x1xf32>
    %134 = vector.broadcast %133 : vector<9x1xf32> to vector<9x32xf32>
    %135 = arith.subf %125, %134 : vector<9x32xf32>
    %136 = arith.mulf %135, %135 : vector<9x32xf32>
    %cst_93 = arith.constant dense<0.000000e+00> : vector<9xf32>
    %137 = vector.multi_reduction <add>, %136, %cst_93 [1] : vector<9x32xf32> to vector<9xf32>
    %138 = vector.shape_cast %137 : vector<9xf32> to vector<9x1xf32>
    %cst_94 = arith.constant 3.200000e+01 : f32
    %139 = vector.broadcast %cst_94 : f32 to vector<9x1xf32>
    %140 = arith.divf %138, %139 : vector<9x1xf32>
    %cst_95 = arith.constant 9.99999974E-6 : f32
    %141 = vector.broadcast %cst_95 : f32 to vector<9x1xf32>
    %142 = arith.addf %140, %141 : vector<9x1xf32>
    %143 = math.rsqrt %142 : vector<9x1xf32>
    %144 = vector.broadcast %143 : vector<9x1xf32> to vector<9x32xf32>
    %145 = arith.mulf %135, %144 : vector<9x32xf32>
    %146 = vector.broadcast %127 : vector<1x32xf32> to vector<9x32xf32>
    %147 = arith.mulf %145, %146 : vector<9x32xf32>
    %148 = vector.broadcast %129 : vector<1x32xf32> to vector<9x32xf32>
    %149 = arith.addf %147, %148 : vector<9x32xf32>
    %c8 = arith.constant 8 : index
    %c0_96 = arith.constant 0 : index
    %c0_97 = arith.constant 0 : index
    %150 = vector.load %arg6[%c8, %c0_96, %c0_97] : memref<48x32x16xf32, #tpu.memory_space<vmem>>, vector<1x32x16xf32>
    %151 = vector.shape_cast %150 : vector<1x32x16xf32> to vector<32x16xf32>
    %cst_98 = arith.constant dense<0.000000e+00> : vector<9x16xf32>
    %152 = tpu.matmul %149, %151, %cst_98 {dimension_numbers = #tpu.dot_dimension_numbers<[1], [0], [0], [1], [0, 0, 1, 1], [], []>} : vector<9x32xf32>, vector<32x16xf32>, vector<9x16xf32> -> vector<9x16xf32>
    %c6_99 = arith.constant 6 : index
    %c0_100 = arith.constant 0 : index
    %c0_101 = arith.constant 0 : index
    %153 = vector.load %arg7[%c6_99, %c0_100, %c0_101] : memref<36x1x16xf32, #tpu.memory_space<vmem>>, vector<1x1x16xf32>
    %154 = vector.shape_cast %153 : vector<1x1x16xf32> to vector<1x16xf32>
    %155 = vector.broadcast %154 : vector<1x16xf32> to vector<9x16xf32>
    %156 = arith.addf %152, %155 : vector<9x16xf32>
    %c10 = arith.constant 10 : index
    %c0_102 = arith.constant 0 : index
    %c0_103 = arith.constant 0 : index
    %157 = vector.load %arg6[%c10, %c0_102, %c0_103] : memref<48x32x16xf32, #tpu.memory_space<vmem>>, vector<1x32x16xf32>
    %158 = vector.shape_cast %157 : vector<1x32x16xf32> to vector<32x16xf32>
    %cst_104 = arith.constant dense<0.000000e+00> : vector<9x16xf32>
    %159 = tpu.matmul %149, %158, %cst_104 {dimension_numbers = #tpu.dot_dimension_numbers<[1], [0], [0], [1], [0, 0, 1, 1], [], []>} : vector<9x32xf32>, vector<32x16xf32>, vector<9x16xf32> -> vector<9x16xf32>
    %c8_105 = arith.constant 8 : index
    %c0_106 = arith.constant 0 : index
    %c0_107 = arith.constant 0 : index
    %160 = vector.load %arg7[%c8_105, %c0_106, %c0_107] : memref<36x1x16xf32, #tpu.memory_space<vmem>>, vector<1x1x16xf32>
    %161 = vector.shape_cast %160 : vector<1x1x16xf32> to vector<1x16xf32>
    %162 = vector.broadcast %161 : vector<1x16xf32> to vector<9x16xf32>
    %163 = arith.addf %159, %162 : vector<9x16xf32>
    %c12 = arith.constant 12 : index
    %c0_108 = arith.constant 0 : index
    %c0_109 = arith.constant 0 : index
    %164 = vector.load %arg6[%c12, %c0_108, %c0_109] : memref<48x32x16xf32, #tpu.memory_space<vmem>>, vector<1x32x16xf32>
    %165 = vector.shape_cast %164 : vector<1x32x16xf32> to vector<32x16xf32>
    %cst_110 = arith.constant dense<0.000000e+00> : vector<9x16xf32>
    %166 = tpu.matmul %149, %165, %cst_110 {dimension_numbers = #tpu.dot_dimension_numbers<[1], [0], [0], [1], [0, 0, 1, 1], [], []>} : vector<9x32xf32>, vector<32x16xf32>, vector<9x16xf32> -> vector<9x16xf32>
    %c10_111 = arith.constant 10 : index
    %c0_112 = arith.constant 0 : index
    %c0_113 = arith.constant 0 : index
    %167 = vector.load %arg7[%c10_111, %c0_112, %c0_113] : memref<36x1x16xf32, #tpu.memory_space<vmem>>, vector<1x1x16xf32>
    %168 = vector.shape_cast %167 : vector<1x1x16xf32> to vector<1x16xf32>
    %169 = vector.broadcast %168 : vector<1x16xf32> to vector<9x16xf32>
    %170 = arith.addf %166, %169 : vector<9x16xf32>
    %cst_114 = arith.constant dense<0.000000e+00> : vector<9x9xf32>
    %171 = tpu.matmul %156, %163, %cst_114 {dimension_numbers = #tpu.dot_dimension_numbers<[1], [1], [0], [0], [0, 0, 1, 0], [], []>} : vector<9x16xf32>, vector<9x16xf32>, vector<9x9xf32> -> vector<9x9xf32>
    %cst_115 = arith.constant 2.500000e-01 : f32
    %172 = vector.broadcast %cst_115 : f32 to vector<9x9xf32>
    %173 = arith.mulf %171, %172 : vector<9x9xf32>
    %cst_116 = arith.constant dense<0xFF800000> : vector<9xf32>
    %174 = vector.multi_reduction <maximumf>, %173, %cst_116 [1] : vector<9x9xf32> to vector<9xf32>
    %175 = vector.shape_cast %174 : vector<9xf32> to vector<9x1xf32>
    %176 = vector.broadcast %175 : vector<9x1xf32> to vector<9x9xf32>
    %177 = arith.subf %173, %176 : vector<9x9xf32>
    %178 = math.exp %177 : vector<9x9xf32>
    %cst_117 = arith.constant dense<0.000000e+00> : vector<9xf32>
    %179 = vector.multi_reduction <add>, %178, %cst_117 [1] : vector<9x9xf32> to vector<9xf32>
    %180 = vector.shape_cast %179 : vector<9xf32> to vector<9x1xf32>
    %181 = tpu.reciprocal %180 {approx = true} : vector<9x1xf32> -> vector<9x1xf32>
    %182 = vector.broadcast %181 : vector<9x1xf32> to vector<9x9xf32>
    %183 = arith.mulf %178, %182 : vector<9x9xf32>
    %cst_118 = arith.constant dense<0.000000e+00> : vector<9x16xf32>
    %184 = tpu.matmul %183, %170, %cst_118 {dimension_numbers = #tpu.dot_dimension_numbers<[1], [0], [0], [1], [0, 0, 1, 1], [], []>} : vector<9x9xf32>, vector<9x16xf32>, vector<9x16xf32> -> vector<9x16xf32>
    %c14 = arith.constant 14 : index
    %c0_119 = arith.constant 0 : index
    %c0_120 = arith.constant 0 : index
    %185 = vector.load %arg6[%c14, %c0_119, %c0_120] : memref<48x32x16xf32, #tpu.memory_space<vmem>>, vector<1x32x16xf32>
    %186 = vector.shape_cast %185 : vector<1x32x16xf32> to vector<32x16xf32>
    %cst_121 = arith.constant dense<0.000000e+00> : vector<9x32xf32>
    %187 = tpu.matmul %184, %186, %cst_121 {dimension_numbers = #tpu.dot_dimension_numbers<[1], [1], [0], [0], [0, 0, 1, 0], [], []>} : vector<9x16xf32>, vector<32x16xf32>, vector<9x32xf32> -> vector<9x32xf32>
    %c9 = arith.constant 9 : index
    %c0_122 = arith.constant 0 : index
    %c0_123 = arith.constant 0 : index
    %188 = vector.load %arg6[%c9, %c0_122, %c0_123] : memref<48x32x16xf32, #tpu.memory_space<vmem>>, vector<1x32x16xf32>
    %189 = vector.shape_cast %188 : vector<1x32x16xf32> to vector<32x16xf32>
    %cst_124 = arith.constant dense<0.000000e+00> : vector<9x16xf32>
    %190 = tpu.matmul %149, %189, %cst_124 {dimension_numbers = #tpu.dot_dimension_numbers<[1], [0], [0], [1], [0, 0, 1, 1], [], []>} : vector<9x32xf32>, vector<32x16xf32>, vector<9x16xf32> -> vector<9x16xf32>
    %c7_125 = arith.constant 7 : index
    %c0_126 = arith.constant 0 : index
    %c0_127 = arith.constant 0 : index
    %191 = vector.load %arg7[%c7_125, %c0_126, %c0_127] : memref<36x1x16xf32, #tpu.memory_space<vmem>>, vector<1x1x16xf32>
    %192 = vector.shape_cast %191 : vector<1x1x16xf32> to vector<1x16xf32>
    %193 = vector.broadcast %192 : vector<1x16xf32> to vector<9x16xf32>
    %194 = arith.addf %190, %193 : vector<9x16xf32>
    %c11 = arith.constant 11 : index
    %c0_128 = arith.constant 0 : index
    %c0_129 = arith.constant 0 : index
    %195 = vector.load %arg6[%c11, %c0_128, %c0_129] : memref<48x32x16xf32, #tpu.memory_space<vmem>>, vector<1x32x16xf32>
    %196 = vector.shape_cast %195 : vector<1x32x16xf32> to vector<32x16xf32>
    %cst_130 = arith.constant dense<0.000000e+00> : vector<9x16xf32>
    %197 = tpu.matmul %149, %196, %cst_130 {dimension_numbers = #tpu.dot_dimension_numbers<[1], [0], [0], [1], [0, 0, 1, 1], [], []>} : vector<9x32xf32>, vector<32x16xf32>, vector<9x16xf32> -> vector<9x16xf32>
    %c9_131 = arith.constant 9 : index
    %c0_132 = arith.constant 0 : index
    %c0_133 = arith.constant 0 : index
    %198 = vector.load %arg7[%c9_131, %c0_132, %c0_133] : memref<36x1x16xf32, #tpu.memory_space<vmem>>, vector<1x1x16xf32>
    %199 = vector.shape_cast %198 : vector<1x1x16xf32> to vector<1x16xf32>
    %200 = vector.broadcast %199 : vector<1x16xf32> to vector<9x16xf32>
    %201 = arith.addf %197, %200 : vector<9x16xf32>
    %c13 = arith.constant 13 : index
    %c0_134 = arith.constant 0 : index
    %c0_135 = arith.constant 0 : index
    %202 = vector.load %arg6[%c13, %c0_134, %c0_135] : memref<48x32x16xf32, #tpu.memory_space<vmem>>, vector<1x32x16xf32>
    %203 = vector.shape_cast %202 : vector<1x32x16xf32> to vector<32x16xf32>
    %cst_136 = arith.constant dense<0.000000e+00> : vector<9x16xf32>
    %204 = tpu.matmul %149, %203, %cst_136 {dimension_numbers = #tpu.dot_dimension_numbers<[1], [0], [0], [1], [0, 0, 1, 1], [], []>} : vector<9x32xf32>, vector<32x16xf32>, vector<9x16xf32> -> vector<9x16xf32>
    %c11_137 = arith.constant 11 : index
    %c0_138 = arith.constant 0 : index
    %c0_139 = arith.constant 0 : index
    %205 = vector.load %arg7[%c11_137, %c0_138, %c0_139] : memref<36x1x16xf32, #tpu.memory_space<vmem>>, vector<1x1x16xf32>
    %206 = vector.shape_cast %205 : vector<1x1x16xf32> to vector<1x16xf32>
    %207 = vector.broadcast %206 : vector<1x16xf32> to vector<9x16xf32>
    %208 = arith.addf %204, %207 : vector<9x16xf32>
    %cst_140 = arith.constant dense<0.000000e+00> : vector<9x9xf32>
    %209 = tpu.matmul %194, %201, %cst_140 {dimension_numbers = #tpu.dot_dimension_numbers<[1], [1], [0], [0], [0, 0, 1, 0], [], []>} : vector<9x16xf32>, vector<9x16xf32>, vector<9x9xf32> -> vector<9x9xf32>
    %cst_141 = arith.constant 2.500000e-01 : f32
    %210 = vector.broadcast %cst_141 : f32 to vector<9x9xf32>
    %211 = arith.mulf %209, %210 : vector<9x9xf32>
    %cst_142 = arith.constant dense<0xFF800000> : vector<9xf32>
    %212 = vector.multi_reduction <maximumf>, %211, %cst_142 [1] : vector<9x9xf32> to vector<9xf32>
    %213 = vector.shape_cast %212 : vector<9xf32> to vector<9x1xf32>
    %214 = vector.broadcast %213 : vector<9x1xf32> to vector<9x9xf32>
    %215 = arith.subf %211, %214 : vector<9x9xf32>
    %216 = math.exp %215 : vector<9x9xf32>
    %cst_143 = arith.constant dense<0.000000e+00> : vector<9xf32>
    %217 = vector.multi_reduction <add>, %216, %cst_143 [1] : vector<9x9xf32> to vector<9xf32>
    %218 = vector.shape_cast %217 : vector<9xf32> to vector<9x1xf32>
    %219 = tpu.reciprocal %218 {approx = true} : vector<9x1xf32> -> vector<9x1xf32>
    %220 = vector.broadcast %219 : vector<9x1xf32> to vector<9x9xf32>
    %221 = arith.mulf %216, %220 : vector<9x9xf32>
    %cst_144 = arith.constant dense<0.000000e+00> : vector<9x16xf32>
    %222 = tpu.matmul %221, %208, %cst_144 {dimension_numbers = #tpu.dot_dimension_numbers<[1], [0], [0], [1], [0, 0, 1, 1], [], []>} : vector<9x9xf32>, vector<9x16xf32>, vector<9x16xf32> -> vector<9x16xf32>
    %c15 = arith.constant 15 : index
    %c0_145 = arith.constant 0 : index
    %c0_146 = arith.constant 0 : index
    %223 = vector.load %arg6[%c15, %c0_145, %c0_146] : memref<48x32x16xf32, #tpu.memory_space<vmem>>, vector<1x32x16xf32>
    %224 = vector.shape_cast %223 : vector<1x32x16xf32> to vector<32x16xf32>
    %cst_147 = arith.constant dense<0.000000e+00> : vector<9x32xf32>
    %225 = tpu.matmul %222, %224, %cst_147 {dimension_numbers = #tpu.dot_dimension_numbers<[1], [1], [0], [0], [0, 0, 1, 0], [], []>} : vector<9x16xf32>, vector<32x16xf32>, vector<9x32xf32> -> vector<9x32xf32>
    %226 = arith.addf %187, %225 : vector<9x32xf32>
    %227 = arith.addf %149, %226 : vector<9x32xf32>
    %c6_148 = arith.constant 6 : index
    %c0_149 = arith.constant 0 : index
    %c0_150 = arith.constant 0 : index
    %228 = vector.load %arg11[%c6_148, %c0_149, %c0_150] : memref<30x1x32xf32, #tpu.memory_space<vmem>>, vector<1x1x32xf32>
    %229 = vector.shape_cast %228 : vector<1x1x32xf32> to vector<1x32xf32>
    %230 = vector.broadcast %229 : vector<1x32xf32> to vector<9x32xf32>
    %231 = arith.addf %227, %230 : vector<9x32xf32>
    %c7_151 = arith.constant 7 : index
    %c0_152 = arith.constant 0 : index
    %c0_153 = arith.constant 0 : index
    %232 = vector.load %arg11[%c7_151, %c0_152, %c0_153] : memref<30x1x32xf32, #tpu.memory_space<vmem>>, vector<1x1x32xf32>
    %233 = vector.shape_cast %232 : vector<1x1x32xf32> to vector<1x32xf32>
    %c8_154 = arith.constant 8 : index
    %c0_155 = arith.constant 0 : index
    %c0_156 = arith.constant 0 : index
    %234 = vector.load %arg11[%c8_154, %c0_155, %c0_156] : memref<30x1x32xf32, #tpu.memory_space<vmem>>, vector<1x1x32xf32>
    %235 = vector.shape_cast %234 : vector<1x1x32xf32> to vector<1x32xf32>
    %cst_157 = arith.constant dense<0.000000e+00> : vector<9xf32>
    %236 = vector.multi_reduction <add>, %231, %cst_157 [1] : vector<9x32xf32> to vector<9xf32>
    %237 = vector.shape_cast %236 : vector<9xf32> to vector<9x1xf32>
    %cst_158 = arith.constant 3.200000e+01 : f32
    %238 = vector.broadcast %cst_158 : f32 to vector<9x1xf32>
    %239 = arith.divf %237, %238 : vector<9x1xf32>
    %240 = vector.broadcast %239 : vector<9x1xf32> to vector<9x32xf32>
    %241 = arith.subf %231, %240 : vector<9x32xf32>
    %242 = arith.mulf %241, %241 : vector<9x32xf32>
    %cst_159 = arith.constant dense<0.000000e+00> : vector<9xf32>
    %243 = vector.multi_reduction <add>, %242, %cst_159 [1] : vector<9x32xf32> to vector<9xf32>
    %244 = vector.shape_cast %243 : vector<9xf32> to vector<9x1xf32>
    %cst_160 = arith.constant 3.200000e+01 : f32
    %245 = vector.broadcast %cst_160 : f32 to vector<9x1xf32>
    %246 = arith.divf %244, %245 : vector<9x1xf32>
    %cst_161 = arith.constant 9.99999974E-6 : f32
    %247 = vector.broadcast %cst_161 : f32 to vector<9x1xf32>
    %248 = arith.addf %246, %247 : vector<9x1xf32>
    %249 = math.rsqrt %248 : vector<9x1xf32>
    %250 = vector.broadcast %249 : vector<9x1xf32> to vector<9x32xf32>
    %251 = arith.mulf %241, %250 : vector<9x32xf32>
    %252 = vector.broadcast %233 : vector<1x32xf32> to vector<9x32xf32>
    %253 = arith.mulf %251, %252 : vector<9x32xf32>
    %254 = vector.broadcast %235 : vector<1x32xf32> to vector<9x32xf32>
    %255 = arith.addf %253, %254 : vector<9x32xf32>
    %c1_162 = arith.constant 1 : index
    %c0_163 = arith.constant 0 : index
    %c0_164 = arith.constant 0 : index
    %256 = vector.load %arg8[%c1_162, %c0_163, %c0_164] : memref<4x32x64xf32, #tpu.memory_space<vmem>>, vector<1x32x64xf32>
    %257 = vector.shape_cast %256 : vector<1x32x64xf32> to vector<32x64xf32>
    %c1_165 = arith.constant 1 : index
    %c0_166 = arith.constant 0 : index
    %c0_167 = arith.constant 0 : index
    %258 = vector.load %arg9[%c1_165, %c0_166, %c0_167] : memref<4x1x64xf32, #tpu.memory_space<vmem>>, vector<1x1x64xf32>
    %259 = vector.shape_cast %258 : vector<1x1x64xf32> to vector<1x64xf32>
    %c1_168 = arith.constant 1 : index
    %c0_169 = arith.constant 0 : index
    %c0_170 = arith.constant 0 : index
    %260 = vector.load %arg10[%c1_168, %c0_169, %c0_170] : memref<4x64x32xf32, #tpu.memory_space<vmem>>, vector<1x64x32xf32>
    %261 = vector.shape_cast %260 : vector<1x64x32xf32> to vector<64x32xf32>
    %c9_171 = arith.constant 9 : index
    %c0_172 = arith.constant 0 : index
    %c0_173 = arith.constant 0 : index
    %262 = vector.load %arg11[%c9_171, %c0_172, %c0_173] : memref<30x1x32xf32, #tpu.memory_space<vmem>>, vector<1x1x32xf32>
    %263 = vector.shape_cast %262 : vector<1x1x32xf32> to vector<1x32xf32>
    %cst_174 = arith.constant dense<0.000000e+00> : vector<9x64xf32>
    %264 = tpu.matmul %255, %257, %cst_174 {dimension_numbers = #tpu.dot_dimension_numbers<[1], [0], [0], [1], [0, 0, 1, 1], [], []>} : vector<9x32xf32>, vector<32x64xf32>, vector<9x64xf32> -> vector<9x64xf32>
    %265 = vector.broadcast %259 : vector<1x64xf32> to vector<9x64xf32>
    %266 = arith.addf %264, %265 : vector<9x64xf32>
    %cst_175 = arith.constant 0.000000e+00 : f32
    %267 = vector.broadcast %cst_175 : f32 to vector<9x64xf32>
    %268 = arith.maximumf %266, %267 : vector<9x64xf32>
    %cst_176 = arith.constant dense<0.000000e+00> : vector<9x32xf32>
    %269 = tpu.matmul %268, %261, %cst_176 {dimension_numbers = #tpu.dot_dimension_numbers<[1], [0], [0], [1], [0, 0, 1, 1], [], []>} : vector<9x64xf32>, vector<64x32xf32>, vector<9x32xf32> -> vector<9x32xf32>
    %270 = vector.broadcast %263 : vector<1x32xf32> to vector<9x32xf32>
    %271 = arith.addf %269, %270 : vector<9x32xf32>
    %272 = arith.addf %255, %271 : vector<9x32xf32>
    %c10_177 = arith.constant 10 : index
    %c0_178 = arith.constant 0 : index
    %c0_179 = arith.constant 0 : index
    %273 = vector.load %arg11[%c10_177, %c0_178, %c0_179] : memref<30x1x32xf32, #tpu.memory_space<vmem>>, vector<1x1x32xf32>
    %274 = vector.shape_cast %273 : vector<1x1x32xf32> to vector<1x32xf32>
    %c11_180 = arith.constant 11 : index
    %c0_181 = arith.constant 0 : index
    %c0_182 = arith.constant 0 : index
    %275 = vector.load %arg11[%c11_180, %c0_181, %c0_182] : memref<30x1x32xf32, #tpu.memory_space<vmem>>, vector<1x1x32xf32>
    %276 = vector.shape_cast %275 : vector<1x1x32xf32> to vector<1x32xf32>
    %cst_183 = arith.constant dense<0.000000e+00> : vector<9xf32>
    %277 = vector.multi_reduction <add>, %272, %cst_183 [1] : vector<9x32xf32> to vector<9xf32>
    %278 = vector.shape_cast %277 : vector<9xf32> to vector<9x1xf32>
    %cst_184 = arith.constant 3.200000e+01 : f32
    %279 = vector.broadcast %cst_184 : f32 to vector<9x1xf32>
    %280 = arith.divf %278, %279 : vector<9x1xf32>
    %281 = vector.broadcast %280 : vector<9x1xf32> to vector<9x32xf32>
    %282 = arith.subf %272, %281 : vector<9x32xf32>
    %283 = arith.mulf %282, %282 : vector<9x32xf32>
    %cst_185 = arith.constant dense<0.000000e+00> : vector<9xf32>
    %284 = vector.multi_reduction <add>, %283, %cst_185 [1] : vector<9x32xf32> to vector<9xf32>
    %285 = vector.shape_cast %284 : vector<9xf32> to vector<9x1xf32>
    %cst_186 = arith.constant 3.200000e+01 : f32
    %286 = vector.broadcast %cst_186 : f32 to vector<9x1xf32>
    %287 = arith.divf %285, %286 : vector<9x1xf32>
    %cst_187 = arith.constant 9.99999974E-6 : f32
    %288 = vector.broadcast %cst_187 : f32 to vector<9x1xf32>
    %289 = arith.addf %287, %288 : vector<9x1xf32>
    %290 = math.rsqrt %289 : vector<9x1xf32>
    %291 = vector.broadcast %290 : vector<9x1xf32> to vector<9x32xf32>
    %292 = arith.mulf %282, %291 : vector<9x32xf32>
    %293 = vector.broadcast %274 : vector<1x32xf32> to vector<9x32xf32>
    %294 = arith.mulf %292, %293 : vector<9x32xf32>
    %295 = vector.broadcast %276 : vector<1x32xf32> to vector<9x32xf32>
    %296 = arith.addf %294, %295 : vector<9x32xf32>
    %297 = vector.extract_strided_slice %296 {offsets = [0, 0], sizes = [1, 32], strides = [1, 1]} : vector<9x32xf32> to vector<1x32xf32>
    %c0_188 = arith.constant 0 : index
    %c0_189 = arith.constant 0 : index
    %c0_190 = arith.constant 0 : index
    %298 = vector.load %arg12[%c0_188, %c0_189, %c0_190] : memref<2x32x32xf32, #tpu.memory_space<vmem>>, vector<1x32x32xf32>
    %299 = vector.shape_cast %298 : vector<1x32x32xf32> to vector<32x32xf32>
    %cst_191 = arith.constant dense<0.000000e+00> : vector<1x32xf32>
    %300 = tpu.matmul %297, %299, %cst_191 {dimension_numbers = #tpu.dot_dimension_numbers<[1], [0], [0], [1], [0, 0, 1, 1], [], []>} : vector<1x32xf32>, vector<32x32xf32>, vector<1x32xf32> -> vector<1x32xf32>
    %c0_192 = arith.constant 0 : index
    %c0_193 = arith.constant 0 : index
    %c0_194 = arith.constant 0 : index
    %301 = vector.load %arg13[%c0_192, %c0_193, %c0_194] : memref<2x1x32xf32, #tpu.memory_space<vmem>>, vector<1x1x32xf32>
    %302 = vector.shape_cast %301 : vector<1x1x32xf32> to vector<1x32xf32>
    %303 = arith.addf %300, %302 : vector<1x32xf32>
    %c1_195 = arith.constant 1 : index
    %c0_196 = arith.constant 0 : index
    %c0_197 = arith.constant 0 : index
    %304 = vector.load %arg12[%c1_195, %c0_196, %c0_197] : memref<2x32x32xf32, #tpu.memory_space<vmem>>, vector<1x32x32xf32>
    %305 = vector.shape_cast %304 : vector<1x32x32xf32> to vector<32x32xf32>
    %cst_198 = arith.constant dense<0.000000e+00> : vector<1x32xf32>
    %306 = tpu.matmul %297, %305, %cst_198 {dimension_numbers = #tpu.dot_dimension_numbers<[1], [0], [0], [1], [0, 0, 1, 1], [], []>} : vector<1x32xf32>, vector<32x32xf32>, vector<1x32xf32> -> vector<1x32xf32>
    %c1_199 = arith.constant 1 : index
    %c0_200 = arith.constant 0 : index
    %c0_201 = arith.constant 0 : index
    %307 = vector.load %arg13[%c1_199, %c0_200, %c0_201] : memref<2x1x32xf32, #tpu.memory_space<vmem>>, vector<1x1x32xf32>
    %308 = vector.shape_cast %307 : vector<1x1x32xf32> to vector<1x32xf32>
    %309 = arith.addf %306, %308 : vector<1x32xf32>
    %310 = math.exp %309 : vector<1x32xf32>
    %c0_202 = arith.constant 0 : index
    %c0_203 = arith.constant 0 : index
    %311 = vector.load %arg3[%c0_202, %c0_203] : memref<1x32xf32, #tpu.memory_space<vmem>>, vector<1x32xf32>
    %312 = arith.mulf %310, %311 : vector<1x32xf32>
    %313 = arith.addf %303, %312 : vector<1x32xf32>
    %c0_204 = arith.constant 0 : index
    %c0_205 = arith.constant 0 : index
    %314 = vector.load %arg2[%c0_204, %c0_205] : memref<4x32xf32, #tpu.memory_space<vmem>>, vector<4x32xf32>
    %315 = vector.broadcast %313 : vector<1x32xf32> to vector<4x32xf32>
    %316 = arith.addf %314, %315 : vector<4x32xf32>
    %c0_206 = arith.constant 0 : index
    %c0_207 = arith.constant 0 : index
    %317 = vector.load %arg1[%c0_206, %c0_207] : memref<16x5xf32, #tpu.memory_space<vmem>>, vector<16x5xf32>
    %c0_208 = arith.constant 0 : index
    %c0_209 = arith.constant 0 : index
    %318 = vector.load %arg5[%c0_208, %c0_209] : memref<5x32xf32, #tpu.memory_space<vmem>>, vector<5x32xf32>
    %cst_210 = arith.constant dense<0.000000e+00> : vector<16x32xf32>
    %319 = tpu.matmul %317, %318, %cst_210 {dimension_numbers = #tpu.dot_dimension_numbers<[1], [0], [0], [1], [0, 0, 1, 1], [], []>} : vector<16x5xf32>, vector<5x32xf32>, vector<16x32xf32> -> vector<16x32xf32>
    %320 = tpu.iota {dimensions = array<i32: 0>} : vector<8x8xi32>
    %321 = tpu.iota {dimensions = array<i32: 1>} : vector<8x8xi32>
    %322 = arith.cmpi sle, %321, %320 : vector<8x8xi32>
    %323 = vector.extract_strided_slice %317 {offsets = [0, 0], sizes = [8, 1], strides = [1, 1]} : vector<16x5xf32> to vector<8x1xf32>
    %cst_211 = arith.constant 9.99999971E-10 : f32
    %324 = vector.broadcast %cst_211 : f32 to vector<8x1xf32>
    %325 = arith.cmpf one, %323, %324 : vector<8x1xf32>
    %326 = vector.broadcast %325 : vector<8x1xi1> to vector<8x8xi1>
    %327 = arith.andi %326, %322 : vector<8x8xi1>
    %328 = vector.extract_strided_slice %317 {offsets = [8, 0], sizes = [8, 1], strides = [1, 1]} : vector<16x5xf32> to vector<8x1xf32>
    %cst_212 = arith.constant 9.99999971E-10 : f32
    %329 = vector.broadcast %cst_212 : f32 to vector<8x1xf32>
    %330 = arith.cmpf one, %328, %329 : vector<8x1xf32>
    %331 = vector.broadcast %330 : vector<8x1xi1> to vector<8x8xi1>
    %332 = arith.andi %331, %322 : vector<8x8xi1>
    %c16 = arith.constant 16 : index
    %c0_213 = arith.constant 0 : index
    %c0_214 = arith.constant 0 : index
    %333 = vector.load %arg6[%c16, %c0_213, %c0_214] : memref<48x32x16xf32, #tpu.memory_space<vmem>>, vector<1x32x16xf32>
    %334 = vector.shape_cast %333 : vector<1x32x16xf32> to vector<32x16xf32>
    %cst_215 = arith.constant dense<0.000000e+00> : vector<16x16xf32>
    %335 = tpu.matmul %319, %334, %cst_215 {dimension_numbers = #tpu.dot_dimension_numbers<[1], [0], [0], [1], [0, 0, 1, 1], [], []>} : vector<16x32xf32>, vector<32x16xf32>, vector<16x16xf32> -> vector<16x16xf32>
    %c12_216 = arith.constant 12 : index
    %c0_217 = arith.constant 0 : index
    %c0_218 = arith.constant 0 : index
    %336 = vector.load %arg7[%c12_216, %c0_217, %c0_218] : memref<36x1x16xf32, #tpu.memory_space<vmem>>, vector<1x1x16xf32>
    %337 = vector.shape_cast %336 : vector<1x1x16xf32> to vector<1x16xf32>
    %338 = vector.broadcast %337 : vector<1x16xf32> to vector<16x16xf32>
    %339 = arith.addf %335, %338 : vector<16x16xf32>
    %c18 = arith.constant 18 : index
    %c0_219 = arith.constant 0 : index
    %c0_220 = arith.constant 0 : index
    %340 = vector.load %arg6[%c18, %c0_219, %c0_220] : memref<48x32x16xf32, #tpu.memory_space<vmem>>, vector<1x32x16xf32>
    %341 = vector.shape_cast %340 : vector<1x32x16xf32> to vector<32x16xf32>
    %cst_221 = arith.constant dense<0.000000e+00> : vector<16x16xf32>
    %342 = tpu.matmul %319, %341, %cst_221 {dimension_numbers = #tpu.dot_dimension_numbers<[1], [0], [0], [1], [0, 0, 1, 1], [], []>} : vector<16x32xf32>, vector<32x16xf32>, vector<16x16xf32> -> vector<16x16xf32>
    %c14_222 = arith.constant 14 : index
    %c0_223 = arith.constant 0 : index
    %c0_224 = arith.constant 0 : index
    %343 = vector.load %arg7[%c14_222, %c0_223, %c0_224] : memref<36x1x16xf32, #tpu.memory_space<vmem>>, vector<1x1x16xf32>
    %344 = vector.shape_cast %343 : vector<1x1x16xf32> to vector<1x16xf32>
    %345 = vector.broadcast %344 : vector<1x16xf32> to vector<16x16xf32>
    %346 = arith.addf %342, %345 : vector<16x16xf32>
    %c20 = arith.constant 20 : index
    %c0_225 = arith.constant 0 : index
    %c0_226 = arith.constant 0 : index
    %347 = vector.load %arg6[%c20, %c0_225, %c0_226] : memref<48x32x16xf32, #tpu.memory_space<vmem>>, vector<1x32x16xf32>
    %348 = vector.shape_cast %347 : vector<1x32x16xf32> to vector<32x16xf32>
    %cst_227 = arith.constant dense<0.000000e+00> : vector<16x16xf32>
    %349 = tpu.matmul %319, %348, %cst_227 {dimension_numbers = #tpu.dot_dimension_numbers<[1], [0], [0], [1], [0, 0, 1, 1], [], []>} : vector<16x32xf32>, vector<32x16xf32>, vector<16x16xf32> -> vector<16x16xf32>
    %c16_228 = arith.constant 16 : index
    %c0_229 = arith.constant 0 : index
    %c0_230 = arith.constant 0 : index
    %350 = vector.load %arg7[%c16_228, %c0_229, %c0_230] : memref<36x1x16xf32, #tpu.memory_space<vmem>>, vector<1x1x16xf32>
    %351 = vector.shape_cast %350 : vector<1x1x16xf32> to vector<1x16xf32>
    %352 = vector.broadcast %351 : vector<1x16xf32> to vector<16x16xf32>
    %353 = arith.addf %349, %352 : vector<16x16xf32>
    %354 = vector.extract_strided_slice %339 {offsets = [0, 0], sizes = [8, 16], strides = [1, 1]} : vector<16x16xf32> to vector<8x16xf32>
    %355 = vector.extract_strided_slice %346 {offsets = [0, 0], sizes = [8, 16], strides = [1, 1]} : vector<16x16xf32> to vector<8x16xf32>
    %356 = vector.extract_strided_slice %353 {offsets = [0, 0], sizes = [8, 16], strides = [1, 1]} : vector<16x16xf32> to vector<8x16xf32>
    %cst_231 = arith.constant dense<0.000000e+00> : vector<8x8xf32>
    %357 = tpu.matmul %354, %355, %cst_231 {dimension_numbers = #tpu.dot_dimension_numbers<[1], [1], [0], [0], [0, 0, 1, 0], [], []>} : vector<8x16xf32>, vector<8x16xf32>, vector<8x8xf32> -> vector<8x8xf32>
    %cst_232 = arith.constant 2.500000e-01 : f32
    %358 = vector.broadcast %cst_232 : f32 to vector<8x8xf32>
    %359 = arith.mulf %357, %358 : vector<8x8xf32>
    %cst_233 = arith.constant -1.000000e+09 : f32
    %360 = vector.broadcast %cst_233 : f32 to vector<8x8xf32>
    %361 = arith.select %327, %359, %360 : vector<8x8xi1>, vector<8x8xf32>
    %cst_234 = arith.constant dense<0xFF800000> : vector<8xf32>
    %362 = vector.multi_reduction <maximumf>, %361, %cst_234 [1] : vector<8x8xf32> to vector<8xf32>
    %363 = vector.shape_cast %362 : vector<8xf32> to vector<8x1xf32>
    %364 = vector.broadcast %363 : vector<8x1xf32> to vector<8x8xf32>
    %365 = arith.subf %361, %364 : vector<8x8xf32>
    %366 = math.exp %365 : vector<8x8xf32>
    %cst_235 = arith.constant dense<0.000000e+00> : vector<8xf32>
    %367 = vector.multi_reduction <add>, %366, %cst_235 [1] : vector<8x8xf32> to vector<8xf32>
    %368 = vector.shape_cast %367 : vector<8xf32> to vector<8x1xf32>
    %369 = tpu.reciprocal %368 {approx = true} : vector<8x1xf32> -> vector<8x1xf32>
    %370 = vector.broadcast %369 : vector<8x1xf32> to vector<8x8xf32>
    %371 = arith.mulf %366, %370 : vector<8x8xf32>
    %cst_236 = arith.constant dense<0.000000e+00> : vector<8x16xf32>
    %372 = tpu.matmul %371, %356, %cst_236 {dimension_numbers = #tpu.dot_dimension_numbers<[1], [0], [0], [1], [0, 0, 1, 1], [], []>} : vector<8x8xf32>, vector<8x16xf32>, vector<8x16xf32> -> vector<8x16xf32>
    %373 = vector.extract_strided_slice %339 {offsets = [8, 0], sizes = [8, 16], strides = [1, 1]} : vector<16x16xf32> to vector<8x16xf32>
    %374 = vector.extract_strided_slice %346 {offsets = [8, 0], sizes = [8, 16], strides = [1, 1]} : vector<16x16xf32> to vector<8x16xf32>
    %375 = vector.extract_strided_slice %353 {offsets = [8, 0], sizes = [8, 16], strides = [1, 1]} : vector<16x16xf32> to vector<8x16xf32>
    %cst_237 = arith.constant dense<0.000000e+00> : vector<8x8xf32>
    %376 = tpu.matmul %373, %374, %cst_237 {dimension_numbers = #tpu.dot_dimension_numbers<[1], [1], [0], [0], [0, 0, 1, 0], [], []>} : vector<8x16xf32>, vector<8x16xf32>, vector<8x8xf32> -> vector<8x8xf32>
    %cst_238 = arith.constant 2.500000e-01 : f32
    %377 = vector.broadcast %cst_238 : f32 to vector<8x8xf32>
    %378 = arith.mulf %376, %377 : vector<8x8xf32>
    %cst_239 = arith.constant -1.000000e+09 : f32
    %379 = vector.broadcast %cst_239 : f32 to vector<8x8xf32>
    %380 = arith.select %332, %378, %379 : vector<8x8xi1>, vector<8x8xf32>
    %cst_240 = arith.constant dense<0xFF800000> : vector<8xf32>
    %381 = vector.multi_reduction <maximumf>, %380, %cst_240 [1] : vector<8x8xf32> to vector<8xf32>
    %382 = vector.shape_cast %381 : vector<8xf32> to vector<8x1xf32>
    %383 = vector.broadcast %382 : vector<8x1xf32> to vector<8x8xf32>
    %384 = arith.subf %380, %383 : vector<8x8xf32>
    %385 = math.exp %384 : vector<8x8xf32>
    %cst_241 = arith.constant dense<0.000000e+00> : vector<8xf32>
    %386 = vector.multi_reduction <add>, %385, %cst_241 [1] : vector<8x8xf32> to vector<8xf32>
    %387 = vector.shape_cast %386 : vector<8xf32> to vector<8x1xf32>
    %388 = tpu.reciprocal %387 {approx = true} : vector<8x1xf32> -> vector<8x1xf32>
    %389 = vector.broadcast %388 : vector<8x1xf32> to vector<8x8xf32>
    %390 = arith.mulf %385, %389 : vector<8x8xf32>
    %cst_242 = arith.constant dense<0.000000e+00> : vector<8x16xf32>
    %391 = tpu.matmul %390, %375, %cst_242 {dimension_numbers = #tpu.dot_dimension_numbers<[1], [0], [0], [1], [0, 0, 1, 1], [], []>} : vector<8x8xf32>, vector<8x16xf32>, vector<8x16xf32> -> vector<8x16xf32>
    %392 = tpu.concatenate %372, %391 in 0 : vector<8x16xf32>, vector<8x16xf32> -> vector<16x16xf32>
    %c22 = arith.constant 22 : index
    %c0_243 = arith.constant 0 : index
    %c0_244 = arith.constant 0 : index
    %393 = vector.load %arg6[%c22, %c0_243, %c0_244] : memref<48x32x16xf32, #tpu.memory_space<vmem>>, vector<1x32x16xf32>
    %394 = vector.shape_cast %393 : vector<1x32x16xf32> to vector<32x16xf32>
    %cst_245 = arith.constant dense<0.000000e+00> : vector<16x32xf32>
    %395 = tpu.matmul %392, %394, %cst_245 {dimension_numbers = #tpu.dot_dimension_numbers<[1], [1], [0], [0], [0, 0, 1, 0], [], []>} : vector<16x16xf32>, vector<32x16xf32>, vector<16x32xf32> -> vector<16x32xf32>
    %c17 = arith.constant 17 : index
    %c0_246 = arith.constant 0 : index
    %c0_247 = arith.constant 0 : index
    %396 = vector.load %arg6[%c17, %c0_246, %c0_247] : memref<48x32x16xf32, #tpu.memory_space<vmem>>, vector<1x32x16xf32>
    %397 = vector.shape_cast %396 : vector<1x32x16xf32> to vector<32x16xf32>
    %cst_248 = arith.constant dense<0.000000e+00> : vector<16x16xf32>
    %398 = tpu.matmul %319, %397, %cst_248 {dimension_numbers = #tpu.dot_dimension_numbers<[1], [0], [0], [1], [0, 0, 1, 1], [], []>} : vector<16x32xf32>, vector<32x16xf32>, vector<16x16xf32> -> vector<16x16xf32>
    %c13_249 = arith.constant 13 : index
    %c0_250 = arith.constant 0 : index
    %c0_251 = arith.constant 0 : index
    %399 = vector.load %arg7[%c13_249, %c0_250, %c0_251] : memref<36x1x16xf32, #tpu.memory_space<vmem>>, vector<1x1x16xf32>
    %400 = vector.shape_cast %399 : vector<1x1x16xf32> to vector<1x16xf32>
    %401 = vector.broadcast %400 : vector<1x16xf32> to vector<16x16xf32>
    %402 = arith.addf %398, %401 : vector<16x16xf32>
    %c19 = arith.constant 19 : index
    %c0_252 = arith.constant 0 : index
    %c0_253 = arith.constant 0 : index
    %403 = vector.load %arg6[%c19, %c0_252, %c0_253] : memref<48x32x16xf32, #tpu.memory_space<vmem>>, vector<1x32x16xf32>
    %404 = vector.shape_cast %403 : vector<1x32x16xf32> to vector<32x16xf32>
    %cst_254 = arith.constant dense<0.000000e+00> : vector<16x16xf32>
    %405 = tpu.matmul %319, %404, %cst_254 {dimension_numbers = #tpu.dot_dimension_numbers<[1], [0], [0], [1], [0, 0, 1, 1], [], []>} : vector<16x32xf32>, vector<32x16xf32>, vector<16x16xf32> -> vector<16x16xf32>
    %c15_255 = arith.constant 15 : index
    %c0_256 = arith.constant 0 : index
    %c0_257 = arith.constant 0 : index
    %406 = vector.load %arg7[%c15_255, %c0_256, %c0_257] : memref<36x1x16xf32, #tpu.memory_space<vmem>>, vector<1x1x16xf32>
    %407 = vector.shape_cast %406 : vector<1x1x16xf32> to vector<1x16xf32>
    %408 = vector.broadcast %407 : vector<1x16xf32> to vector<16x16xf32>
    %409 = arith.addf %405, %408 : vector<16x16xf32>
    %c21 = arith.constant 21 : index
    %c0_258 = arith.constant 0 : index
    %c0_259 = arith.constant 0 : index
    %410 = vector.load %arg6[%c21, %c0_258, %c0_259] : memref<48x32x16xf32, #tpu.memory_space<vmem>>, vector<1x32x16xf32>
    %411 = vector.shape_cast %410 : vector<1x32x16xf32> to vector<32x16xf32>
    %cst_260 = arith.constant dense<0.000000e+00> : vector<16x16xf32>
    %412 = tpu.matmul %319, %411, %cst_260 {dimension_numbers = #tpu.dot_dimension_numbers<[1], [0], [0], [1], [0, 0, 1, 1], [], []>} : vector<16x32xf32>, vector<32x16xf32>, vector<16x16xf32> -> vector<16x16xf32>
    %c17_261 = arith.constant 17 : index
    %c0_262 = arith.constant 0 : index
    %c0_263 = arith.constant 0 : index
    %413 = vector.load %arg7[%c17_261, %c0_262, %c0_263] : memref<36x1x16xf32, #tpu.memory_space<vmem>>, vector<1x1x16xf32>
    %414 = vector.shape_cast %413 : vector<1x1x16xf32> to vector<1x16xf32>
    %415 = vector.broadcast %414 : vector<1x16xf32> to vector<16x16xf32>
    %416 = arith.addf %412, %415 : vector<16x16xf32>
    %417 = vector.extract_strided_slice %402 {offsets = [0, 0], sizes = [8, 16], strides = [1, 1]} : vector<16x16xf32> to vector<8x16xf32>
    %418 = vector.extract_strided_slice %409 {offsets = [0, 0], sizes = [8, 16], strides = [1, 1]} : vector<16x16xf32> to vector<8x16xf32>
    %419 = vector.extract_strided_slice %416 {offsets = [0, 0], sizes = [8, 16], strides = [1, 1]} : vector<16x16xf32> to vector<8x16xf32>
    %cst_264 = arith.constant dense<0.000000e+00> : vector<8x8xf32>
    %420 = tpu.matmul %417, %418, %cst_264 {dimension_numbers = #tpu.dot_dimension_numbers<[1], [1], [0], [0], [0, 0, 1, 0], [], []>} : vector<8x16xf32>, vector<8x16xf32>, vector<8x8xf32> -> vector<8x8xf32>
    %cst_265 = arith.constant 2.500000e-01 : f32
    %421 = vector.broadcast %cst_265 : f32 to vector<8x8xf32>
    %422 = arith.mulf %420, %421 : vector<8x8xf32>
    %cst_266 = arith.constant -1.000000e+09 : f32
    %423 = vector.broadcast %cst_266 : f32 to vector<8x8xf32>
    %424 = arith.select %327, %422, %423 : vector<8x8xi1>, vector<8x8xf32>
    %cst_267 = arith.constant dense<0xFF800000> : vector<8xf32>
    %425 = vector.multi_reduction <maximumf>, %424, %cst_267 [1] : vector<8x8xf32> to vector<8xf32>
    %426 = vector.shape_cast %425 : vector<8xf32> to vector<8x1xf32>
    %427 = vector.broadcast %426 : vector<8x1xf32> to vector<8x8xf32>
    %428 = arith.subf %424, %427 : vector<8x8xf32>
    %429 = math.exp %428 : vector<8x8xf32>
    %cst_268 = arith.constant dense<0.000000e+00> : vector<8xf32>
    %430 = vector.multi_reduction <add>, %429, %cst_268 [1] : vector<8x8xf32> to vector<8xf32>
    %431 = vector.shape_cast %430 : vector<8xf32> to vector<8x1xf32>
    %432 = tpu.reciprocal %431 {approx = true} : vector<8x1xf32> -> vector<8x1xf32>
    %433 = vector.broadcast %432 : vector<8x1xf32> to vector<8x8xf32>
    %434 = arith.mulf %429, %433 : vector<8x8xf32>
    %cst_269 = arith.constant dense<0.000000e+00> : vector<8x16xf32>
    %435 = tpu.matmul %434, %419, %cst_269 {dimension_numbers = #tpu.dot_dimension_numbers<[1], [0], [0], [1], [0, 0, 1, 1], [], []>} : vector<8x8xf32>, vector<8x16xf32>, vector<8x16xf32> -> vector<8x16xf32>
    %436 = vector.extract_strided_slice %402 {offsets = [8, 0], sizes = [8, 16], strides = [1, 1]} : vector<16x16xf32> to vector<8x16xf32>
    %437 = vector.extract_strided_slice %409 {offsets = [8, 0], sizes = [8, 16], strides = [1, 1]} : vector<16x16xf32> to vector<8x16xf32>
    %438 = vector.extract_strided_slice %416 {offsets = [8, 0], sizes = [8, 16], strides = [1, 1]} : vector<16x16xf32> to vector<8x16xf32>
    %cst_270 = arith.constant dense<0.000000e+00> : vector<8x8xf32>
    %439 = tpu.matmul %436, %437, %cst_270 {dimension_numbers = #tpu.dot_dimension_numbers<[1], [1], [0], [0], [0, 0, 1, 0], [], []>} : vector<8x16xf32>, vector<8x16xf32>, vector<8x8xf32> -> vector<8x8xf32>
    %cst_271 = arith.constant 2.500000e-01 : f32
    %440 = vector.broadcast %cst_271 : f32 to vector<8x8xf32>
    %441 = arith.mulf %439, %440 : vector<8x8xf32>
    %cst_272 = arith.constant -1.000000e+09 : f32
    %442 = vector.broadcast %cst_272 : f32 to vector<8x8xf32>
    %443 = arith.select %332, %441, %442 : vector<8x8xi1>, vector<8x8xf32>
    %cst_273 = arith.constant dense<0xFF800000> : vector<8xf32>
    %444 = vector.multi_reduction <maximumf>, %443, %cst_273 [1] : vector<8x8xf32> to vector<8xf32>
    %445 = vector.shape_cast %444 : vector<8xf32> to vector<8x1xf32>
    %446 = vector.broadcast %445 : vector<8x1xf32> to vector<8x8xf32>
    %447 = arith.subf %443, %446 : vector<8x8xf32>
    %448 = math.exp %447 : vector<8x8xf32>
    %cst_274 = arith.constant dense<0.000000e+00> : vector<8xf32>
    %449 = vector.multi_reduction <add>, %448, %cst_274 [1] : vector<8x8xf32> to vector<8xf32>
    %450 = vector.shape_cast %449 : vector<8xf32> to vector<8x1xf32>
    %451 = tpu.reciprocal %450 {approx = true} : vector<8x1xf32> -> vector<8x1xf32>
    %452 = vector.broadcast %451 : vector<8x1xf32> to vector<8x8xf32>
    %453 = arith.mulf %448, %452 : vector<8x8xf32>
    %cst_275 = arith.constant dense<0.000000e+00> : vector<8x16xf32>
    %454 = tpu.matmul %453, %438, %cst_275 {dimension_numbers = #tpu.dot_dimension_numbers<[1], [0], [0], [1], [0, 0, 1, 1], [], []>} : vector<8x8xf32>, vector<8x16xf32>, vector<8x16xf32> -> vector<8x16xf32>
    %455 = tpu.concatenate %435, %454 in 0 : vector<8x16xf32>, vector<8x16xf32> -> vector<16x16xf32>
    %c23 = arith.constant 23 : index
    %c0_276 = arith.constant 0 : index
    %c0_277 = arith.constant 0 : index
    %456 = vector.load %arg6[%c23, %c0_276, %c0_277] : memref<48x32x16xf32, #tpu.memory_space<vmem>>, vector<1x32x16xf32>
    %457 = vector.shape_cast %456 : vector<1x32x16xf32> to vector<32x16xf32>
    %cst_278 = arith.constant dense<0.000000e+00> : vector<16x32xf32>
    %458 = tpu.matmul %455, %457, %cst_278 {dimension_numbers = #tpu.dot_dimension_numbers<[1], [1], [0], [0], [0, 0, 1, 0], [], []>} : vector<16x16xf32>, vector<32x16xf32>, vector<16x32xf32> -> vector<16x32xf32>
    %459 = arith.addf %395, %458 : vector<16x32xf32>
    %460 = arith.addf %319, %459 : vector<16x32xf32>
    %c12_279 = arith.constant 12 : index
    %c0_280 = arith.constant 0 : index
    %c0_281 = arith.constant 0 : index
    %461 = vector.load %arg11[%c12_279, %c0_280, %c0_281] : memref<30x1x32xf32, #tpu.memory_space<vmem>>, vector<1x1x32xf32>
    %462 = vector.shape_cast %461 : vector<1x1x32xf32> to vector<1x32xf32>
    %463 = vector.broadcast %462 : vector<1x32xf32> to vector<16x32xf32>
    %464 = arith.addf %460, %463 : vector<16x32xf32>
    %c13_282 = arith.constant 13 : index
    %c0_283 = arith.constant 0 : index
    %c0_284 = arith.constant 0 : index
    %465 = vector.load %arg11[%c13_282, %c0_283, %c0_284] : memref<30x1x32xf32, #tpu.memory_space<vmem>>, vector<1x1x32xf32>
    %466 = vector.shape_cast %465 : vector<1x1x32xf32> to vector<1x32xf32>
    %c14_285 = arith.constant 14 : index
    %c0_286 = arith.constant 0 : index
    %c0_287 = arith.constant 0 : index
    %467 = vector.load %arg11[%c14_285, %c0_286, %c0_287] : memref<30x1x32xf32, #tpu.memory_space<vmem>>, vector<1x1x32xf32>
    %468 = vector.shape_cast %467 : vector<1x1x32xf32> to vector<1x32xf32>
    %cst_288 = arith.constant dense<0.000000e+00> : vector<16xf32>
    %469 = vector.multi_reduction <add>, %464, %cst_288 [1] : vector<16x32xf32> to vector<16xf32>
    %470 = vector.shape_cast %469 : vector<16xf32> to vector<16x1xf32>
    %cst_289 = arith.constant 3.200000e+01 : f32
    %471 = vector.broadcast %cst_289 : f32 to vector<16x1xf32>
    %472 = arith.divf %470, %471 : vector<16x1xf32>
    %473 = vector.broadcast %472 : vector<16x1xf32> to vector<16x32xf32>
    %474 = arith.subf %464, %473 : vector<16x32xf32>
    %475 = arith.mulf %474, %474 : vector<16x32xf32>
    %cst_290 = arith.constant dense<0.000000e+00> : vector<16xf32>
    %476 = vector.multi_reduction <add>, %475, %cst_290 [1] : vector<16x32xf32> to vector<16xf32>
    %477 = vector.shape_cast %476 : vector<16xf32> to vector<16x1xf32>
    %cst_291 = arith.constant 3.200000e+01 : f32
    %478 = vector.broadcast %cst_291 : f32 to vector<16x1xf32>
    %479 = arith.divf %477, %478 : vector<16x1xf32>
    %cst_292 = arith.constant 9.99999974E-6 : f32
    %480 = vector.broadcast %cst_292 : f32 to vector<16x1xf32>
    %481 = arith.addf %479, %480 : vector<16x1xf32>
    %482 = math.rsqrt %481 : vector<16x1xf32>
    %483 = vector.broadcast %482 : vector<16x1xf32> to vector<16x32xf32>
    %484 = arith.mulf %474, %483 : vector<16x32xf32>
    %485 = vector.broadcast %466 : vector<1x32xf32> to vector<16x32xf32>
    %486 = arith.mulf %484, %485 : vector<16x32xf32>
    %487 = vector.broadcast %468 : vector<1x32xf32> to vector<16x32xf32>
    %488 = arith.addf %486, %487 : vector<16x32xf32>
    %c32 = arith.constant 32 : index
    %c0_293 = arith.constant 0 : index
    %c0_294 = arith.constant 0 : index
    %489 = vector.load %arg6[%c32, %c0_293, %c0_294] : memref<48x32x16xf32, #tpu.memory_space<vmem>>, vector<1x32x16xf32>
    %490 = vector.shape_cast %489 : vector<1x32x16xf32> to vector<32x16xf32>
    %cst_295 = arith.constant dense<0.000000e+00> : vector<16x16xf32>
    %491 = tpu.matmul %488, %490, %cst_295 {dimension_numbers = #tpu.dot_dimension_numbers<[1], [0], [0], [1], [0, 0, 1, 1], [], []>} : vector<16x32xf32>, vector<32x16xf32>, vector<16x16xf32> -> vector<16x16xf32>
    %c24 = arith.constant 24 : index
    %c0_296 = arith.constant 0 : index
    %c0_297 = arith.constant 0 : index
    %492 = vector.load %arg7[%c24, %c0_296, %c0_297] : memref<36x1x16xf32, #tpu.memory_space<vmem>>, vector<1x1x16xf32>
    %493 = vector.shape_cast %492 : vector<1x1x16xf32> to vector<1x16xf32>
    %494 = vector.broadcast %493 : vector<1x16xf32> to vector<16x16xf32>
    %495 = arith.addf %491, %494 : vector<16x16xf32>
    %c34 = arith.constant 34 : index
    %c0_298 = arith.constant 0 : index
    %c0_299 = arith.constant 0 : index
    %496 = vector.load %arg6[%c34, %c0_298, %c0_299] : memref<48x32x16xf32, #tpu.memory_space<vmem>>, vector<1x32x16xf32>
    %497 = vector.shape_cast %496 : vector<1x32x16xf32> to vector<32x16xf32>
    %cst_300 = arith.constant dense<0.000000e+00> : vector<4x16xf32>
    %498 = tpu.matmul %316, %497, %cst_300 {dimension_numbers = #tpu.dot_dimension_numbers<[1], [0], [0], [1], [0, 0, 1, 1], [], []>} : vector<4x32xf32>, vector<32x16xf32>, vector<4x16xf32> -> vector<4x16xf32>
    %c26 = arith.constant 26 : index
    %c0_301 = arith.constant 0 : index
    %c0_302 = arith.constant 0 : index
    %499 = vector.load %arg7[%c26, %c0_301, %c0_302] : memref<36x1x16xf32, #tpu.memory_space<vmem>>, vector<1x1x16xf32>
    %500 = vector.shape_cast %499 : vector<1x1x16xf32> to vector<1x16xf32>
    %501 = vector.broadcast %500 : vector<1x16xf32> to vector<4x16xf32>
    %502 = arith.addf %498, %501 : vector<4x16xf32>
    %c36 = arith.constant 36 : index
    %c0_303 = arith.constant 0 : index
    %c0_304 = arith.constant 0 : index
    %503 = vector.load %arg6[%c36, %c0_303, %c0_304] : memref<48x32x16xf32, #tpu.memory_space<vmem>>, vector<1x32x16xf32>
    %504 = vector.shape_cast %503 : vector<1x32x16xf32> to vector<32x16xf32>
    %cst_305 = arith.constant dense<0.000000e+00> : vector<4x16xf32>
    %505 = tpu.matmul %316, %504, %cst_305 {dimension_numbers = #tpu.dot_dimension_numbers<[1], [0], [0], [1], [0, 0, 1, 1], [], []>} : vector<4x32xf32>, vector<32x16xf32>, vector<4x16xf32> -> vector<4x16xf32>
    %c28 = arith.constant 28 : index
    %c0_306 = arith.constant 0 : index
    %c0_307 = arith.constant 0 : index
    %506 = vector.load %arg7[%c28, %c0_306, %c0_307] : memref<36x1x16xf32, #tpu.memory_space<vmem>>, vector<1x1x16xf32>
    %507 = vector.shape_cast %506 : vector<1x1x16xf32> to vector<1x16xf32>
    %508 = vector.broadcast %507 : vector<1x16xf32> to vector<4x16xf32>
    %509 = arith.addf %505, %508 : vector<4x16xf32>
    %cst_308 = arith.constant dense<0.000000e+00> : vector<16x4xf32>
    %510 = tpu.matmul %495, %502, %cst_308 {dimension_numbers = #tpu.dot_dimension_numbers<[1], [1], [0], [0], [0, 0, 1, 0], [], []>} : vector<16x16xf32>, vector<4x16xf32>, vector<16x4xf32> -> vector<16x4xf32>
    %cst_309 = arith.constant 2.500000e-01 : f32
    %511 = vector.broadcast %cst_309 : f32 to vector<16x4xf32>
    %512 = arith.mulf %510, %511 : vector<16x4xf32>
    %cst_310 = arith.constant dense<0xFF800000> : vector<16xf32>
    %513 = vector.multi_reduction <maximumf>, %512, %cst_310 [1] : vector<16x4xf32> to vector<16xf32>
    %514 = vector.shape_cast %513 : vector<16xf32> to vector<16x1xf32>
    %515 = vector.broadcast %514 : vector<16x1xf32> to vector<16x4xf32>
    %516 = arith.subf %512, %515 : vector<16x4xf32>
    %517 = math.exp %516 : vector<16x4xf32>
    %cst_311 = arith.constant dense<0.000000e+00> : vector<16xf32>
    %518 = vector.multi_reduction <add>, %517, %cst_311 [1] : vector<16x4xf32> to vector<16xf32>
    %519 = vector.shape_cast %518 : vector<16xf32> to vector<16x1xf32>
    %520 = tpu.reciprocal %519 {approx = true} : vector<16x1xf32> -> vector<16x1xf32>
    %521 = vector.broadcast %520 : vector<16x1xf32> to vector<16x4xf32>
    %522 = arith.mulf %517, %521 : vector<16x4xf32>
    %cst_312 = arith.constant dense<0.000000e+00> : vector<16x16xf32>
    %523 = tpu.matmul %522, %509, %cst_312 {dimension_numbers = #tpu.dot_dimension_numbers<[1], [0], [0], [1], [0, 0, 1, 1], [], []>} : vector<16x4xf32>, vector<4x16xf32>, vector<16x16xf32> -> vector<16x16xf32>
    %c38 = arith.constant 38 : index
    %c0_313 = arith.constant 0 : index
    %c0_314 = arith.constant 0 : index
    %524 = vector.load %arg6[%c38, %c0_313, %c0_314] : memref<48x32x16xf32, #tpu.memory_space<vmem>>, vector<1x32x16xf32>
    %525 = vector.shape_cast %524 : vector<1x32x16xf32> to vector<32x16xf32>
    %cst_315 = arith.constant dense<0.000000e+00> : vector<16x32xf32>
    %526 = tpu.matmul %523, %525, %cst_315 {dimension_numbers = #tpu.dot_dimension_numbers<[1], [1], [0], [0], [0, 0, 1, 0], [], []>} : vector<16x16xf32>, vector<32x16xf32>, vector<16x32xf32> -> vector<16x32xf32>
    %c33 = arith.constant 33 : index
    %c0_316 = arith.constant 0 : index
    %c0_317 = arith.constant 0 : index
    %527 = vector.load %arg6[%c33, %c0_316, %c0_317] : memref<48x32x16xf32, #tpu.memory_space<vmem>>, vector<1x32x16xf32>
    %528 = vector.shape_cast %527 : vector<1x32x16xf32> to vector<32x16xf32>
    %cst_318 = arith.constant dense<0.000000e+00> : vector<16x16xf32>
    %529 = tpu.matmul %488, %528, %cst_318 {dimension_numbers = #tpu.dot_dimension_numbers<[1], [0], [0], [1], [0, 0, 1, 1], [], []>} : vector<16x32xf32>, vector<32x16xf32>, vector<16x16xf32> -> vector<16x16xf32>
    %c25 = arith.constant 25 : index
    %c0_319 = arith.constant 0 : index
    %c0_320 = arith.constant 0 : index
    %530 = vector.load %arg7[%c25, %c0_319, %c0_320] : memref<36x1x16xf32, #tpu.memory_space<vmem>>, vector<1x1x16xf32>
    %531 = vector.shape_cast %530 : vector<1x1x16xf32> to vector<1x16xf32>
    %532 = vector.broadcast %531 : vector<1x16xf32> to vector<16x16xf32>
    %533 = arith.addf %529, %532 : vector<16x16xf32>
    %c35 = arith.constant 35 : index
    %c0_321 = arith.constant 0 : index
    %c0_322 = arith.constant 0 : index
    %534 = vector.load %arg6[%c35, %c0_321, %c0_322] : memref<48x32x16xf32, #tpu.memory_space<vmem>>, vector<1x32x16xf32>
    %535 = vector.shape_cast %534 : vector<1x32x16xf32> to vector<32x16xf32>
    %cst_323 = arith.constant dense<0.000000e+00> : vector<4x16xf32>
    %536 = tpu.matmul %316, %535, %cst_323 {dimension_numbers = #tpu.dot_dimension_numbers<[1], [0], [0], [1], [0, 0, 1, 1], [], []>} : vector<4x32xf32>, vector<32x16xf32>, vector<4x16xf32> -> vector<4x16xf32>
    %c27 = arith.constant 27 : index
    %c0_324 = arith.constant 0 : index
    %c0_325 = arith.constant 0 : index
    %537 = vector.load %arg7[%c27, %c0_324, %c0_325] : memref<36x1x16xf32, #tpu.memory_space<vmem>>, vector<1x1x16xf32>
    %538 = vector.shape_cast %537 : vector<1x1x16xf32> to vector<1x16xf32>
    %539 = vector.broadcast %538 : vector<1x16xf32> to vector<4x16xf32>
    %540 = arith.addf %536, %539 : vector<4x16xf32>
    %c37 = arith.constant 37 : index
    %c0_326 = arith.constant 0 : index
    %c0_327 = arith.constant 0 : index
    %541 = vector.load %arg6[%c37, %c0_326, %c0_327] : memref<48x32x16xf32, #tpu.memory_space<vmem>>, vector<1x32x16xf32>
    %542 = vector.shape_cast %541 : vector<1x32x16xf32> to vector<32x16xf32>
    %cst_328 = arith.constant dense<0.000000e+00> : vector<4x16xf32>
    %543 = tpu.matmul %316, %542, %cst_328 {dimension_numbers = #tpu.dot_dimension_numbers<[1], [0], [0], [1], [0, 0, 1, 1], [], []>} : vector<4x32xf32>, vector<32x16xf32>, vector<4x16xf32> -> vector<4x16xf32>
    %c29 = arith.constant 29 : index
    %c0_329 = arith.constant 0 : index
    %c0_330 = arith.constant 0 : index
    %544 = vector.load %arg7[%c29, %c0_329, %c0_330] : memref<36x1x16xf32, #tpu.memory_space<vmem>>, vector<1x1x16xf32>
    %545 = vector.shape_cast %544 : vector<1x1x16xf32> to vector<1x16xf32>
    %546 = vector.broadcast %545 : vector<1x16xf32> to vector<4x16xf32>
    %547 = arith.addf %543, %546 : vector<4x16xf32>
    %cst_331 = arith.constant dense<0.000000e+00> : vector<16x4xf32>
    %548 = tpu.matmul %533, %540, %cst_331 {dimension_numbers = #tpu.dot_dimension_numbers<[1], [1], [0], [0], [0, 0, 1, 0], [], []>} : vector<16x16xf32>, vector<4x16xf32>, vector<16x4xf32> -> vector<16x4xf32>
    %cst_332 = arith.constant 2.500000e-01 : f32
    %549 = vector.broadcast %cst_332 : f32 to vector<16x4xf32>
    %550 = arith.mulf %548, %549 : vector<16x4xf32>
    %cst_333 = arith.constant dense<0xFF800000> : vector<16xf32>
    %551 = vector.multi_reduction <maximumf>, %550, %cst_333 [1] : vector<16x4xf32> to vector<16xf32>
    %552 = vector.shape_cast %551 : vector<16xf32> to vector<16x1xf32>
    %553 = vector.broadcast %552 : vector<16x1xf32> to vector<16x4xf32>
    %554 = arith.subf %550, %553 : vector<16x4xf32>
    %555 = math.exp %554 : vector<16x4xf32>
    %cst_334 = arith.constant dense<0.000000e+00> : vector<16xf32>
    %556 = vector.multi_reduction <add>, %555, %cst_334 [1] : vector<16x4xf32> to vector<16xf32>
    %557 = vector.shape_cast %556 : vector<16xf32> to vector<16x1xf32>
    %558 = tpu.reciprocal %557 {approx = true} : vector<16x1xf32> -> vector<16x1xf32>
    %559 = vector.broadcast %558 : vector<16x1xf32> to vector<16x4xf32>
    %560 = arith.mulf %555, %559 : vector<16x4xf32>
    %cst_335 = arith.constant dense<0.000000e+00> : vector<16x16xf32>
    %561 = tpu.matmul %560, %547, %cst_335 {dimension_numbers = #tpu.dot_dimension_numbers<[1], [0], [0], [1], [0, 0, 1, 1], [], []>} : vector<16x4xf32>, vector<4x16xf32>, vector<16x16xf32> -> vector<16x16xf32>
    %c39 = arith.constant 39 : index
    %c0_336 = arith.constant 0 : index
    %c0_337 = arith.constant 0 : index
    %562 = vector.load %arg6[%c39, %c0_336, %c0_337] : memref<48x32x16xf32, #tpu.memory_space<vmem>>, vector<1x32x16xf32>
    %563 = vector.shape_cast %562 : vector<1x32x16xf32> to vector<32x16xf32>
    %cst_338 = arith.constant dense<0.000000e+00> : vector<16x32xf32>
    %564 = tpu.matmul %561, %563, %cst_338 {dimension_numbers = #tpu.dot_dimension_numbers<[1], [1], [0], [0], [0, 0, 1, 0], [], []>} : vector<16x16xf32>, vector<32x16xf32>, vector<16x32xf32> -> vector<16x32xf32>
    %565 = arith.addf %526, %564 : vector<16x32xf32>
    %566 = arith.addf %488, %565 : vector<16x32xf32>
    %c15_339 = arith.constant 15 : index
    %c0_340 = arith.constant 0 : index
    %c0_341 = arith.constant 0 : index
    %567 = vector.load %arg11[%c15_339, %c0_340, %c0_341] : memref<30x1x32xf32, #tpu.memory_space<vmem>>, vector<1x1x32xf32>
    %568 = vector.shape_cast %567 : vector<1x1x32xf32> to vector<1x32xf32>
    %569 = vector.broadcast %568 : vector<1x32xf32> to vector<16x32xf32>
    %570 = arith.addf %566, %569 : vector<16x32xf32>
    %c16_342 = arith.constant 16 : index
    %c0_343 = arith.constant 0 : index
    %c0_344 = arith.constant 0 : index
    %571 = vector.load %arg11[%c16_342, %c0_343, %c0_344] : memref<30x1x32xf32, #tpu.memory_space<vmem>>, vector<1x1x32xf32>
    %572 = vector.shape_cast %571 : vector<1x1x32xf32> to vector<1x32xf32>
    %c17_345 = arith.constant 17 : index
    %c0_346 = arith.constant 0 : index
    %c0_347 = arith.constant 0 : index
    %573 = vector.load %arg11[%c17_345, %c0_346, %c0_347] : memref<30x1x32xf32, #tpu.memory_space<vmem>>, vector<1x1x32xf32>
    %574 = vector.shape_cast %573 : vector<1x1x32xf32> to vector<1x32xf32>
    %cst_348 = arith.constant dense<0.000000e+00> : vector<16xf32>
    %575 = vector.multi_reduction <add>, %570, %cst_348 [1] : vector<16x32xf32> to vector<16xf32>
    %576 = vector.shape_cast %575 : vector<16xf32> to vector<16x1xf32>
    %cst_349 = arith.constant 3.200000e+01 : f32
    %577 = vector.broadcast %cst_349 : f32 to vector<16x1xf32>
    %578 = arith.divf %576, %577 : vector<16x1xf32>
    %579 = vector.broadcast %578 : vector<16x1xf32> to vector<16x32xf32>
    %580 = arith.subf %570, %579 : vector<16x32xf32>
    %581 = arith.mulf %580, %580 : vector<16x32xf32>
    %cst_350 = arith.constant dense<0.000000e+00> : vector<16xf32>
    %582 = vector.multi_reduction <add>, %581, %cst_350 [1] : vector<16x32xf32> to vector<16xf32>
    %583 = vector.shape_cast %582 : vector<16xf32> to vector<16x1xf32>
    %cst_351 = arith.constant 3.200000e+01 : f32
    %584 = vector.broadcast %cst_351 : f32 to vector<16x1xf32>
    %585 = arith.divf %583, %584 : vector<16x1xf32>
    %cst_352 = arith.constant 9.99999974E-6 : f32
    %586 = vector.broadcast %cst_352 : f32 to vector<16x1xf32>
    %587 = arith.addf %585, %586 : vector<16x1xf32>
    %588 = math.rsqrt %587 : vector<16x1xf32>
    %589 = vector.broadcast %588 : vector<16x1xf32> to vector<16x32xf32>
    %590 = arith.mulf %580, %589 : vector<16x32xf32>
    %591 = vector.broadcast %572 : vector<1x32xf32> to vector<16x32xf32>
    %592 = arith.mulf %590, %591 : vector<16x32xf32>
    %593 = vector.broadcast %574 : vector<1x32xf32> to vector<16x32xf32>
    %594 = arith.addf %592, %593 : vector<16x32xf32>
    %c2_353 = arith.constant 2 : index
    %c0_354 = arith.constant 0 : index
    %c0_355 = arith.constant 0 : index
    %595 = vector.load %arg8[%c2_353, %c0_354, %c0_355] : memref<4x32x64xf32, #tpu.memory_space<vmem>>, vector<1x32x64xf32>
    %596 = vector.shape_cast %595 : vector<1x32x64xf32> to vector<32x64xf32>
    %c2_356 = arith.constant 2 : index
    %c0_357 = arith.constant 0 : index
    %c0_358 = arith.constant 0 : index
    %597 = vector.load %arg9[%c2_356, %c0_357, %c0_358] : memref<4x1x64xf32, #tpu.memory_space<vmem>>, vector<1x1x64xf32>
    %598 = vector.shape_cast %597 : vector<1x1x64xf32> to vector<1x64xf32>
    %c2_359 = arith.constant 2 : index
    %c0_360 = arith.constant 0 : index
    %c0_361 = arith.constant 0 : index
    %599 = vector.load %arg10[%c2_359, %c0_360, %c0_361] : memref<4x64x32xf32, #tpu.memory_space<vmem>>, vector<1x64x32xf32>
    %600 = vector.shape_cast %599 : vector<1x64x32xf32> to vector<64x32xf32>
    %c18_362 = arith.constant 18 : index
    %c0_363 = arith.constant 0 : index
    %c0_364 = arith.constant 0 : index
    %601 = vector.load %arg11[%c18_362, %c0_363, %c0_364] : memref<30x1x32xf32, #tpu.memory_space<vmem>>, vector<1x1x32xf32>
    %602 = vector.shape_cast %601 : vector<1x1x32xf32> to vector<1x32xf32>
    %cst_365 = arith.constant dense<0.000000e+00> : vector<16x64xf32>
    %603 = tpu.matmul %594, %596, %cst_365 {dimension_numbers = #tpu.dot_dimension_numbers<[1], [0], [0], [1], [0, 0, 1, 1], [], []>} : vector<16x32xf32>, vector<32x64xf32>, vector<16x64xf32> -> vector<16x64xf32>
    %604 = vector.broadcast %598 : vector<1x64xf32> to vector<16x64xf32>
    %605 = arith.addf %603, %604 : vector<16x64xf32>
    %cst_366 = arith.constant 0.000000e+00 : f32
    %606 = vector.broadcast %cst_366 : f32 to vector<16x64xf32>
    %607 = arith.maximumf %605, %606 : vector<16x64xf32>
    %cst_367 = arith.constant dense<0.000000e+00> : vector<16x32xf32>
    %608 = tpu.matmul %607, %600, %cst_367 {dimension_numbers = #tpu.dot_dimension_numbers<[1], [0], [0], [1], [0, 0, 1, 1], [], []>} : vector<16x64xf32>, vector<64x32xf32>, vector<16x32xf32> -> vector<16x32xf32>
    %609 = vector.broadcast %602 : vector<1x32xf32> to vector<16x32xf32>
    %610 = arith.addf %608, %609 : vector<16x32xf32>
    %611 = arith.addf %594, %610 : vector<16x32xf32>
    %c19_368 = arith.constant 19 : index
    %c0_369 = arith.constant 0 : index
    %c0_370 = arith.constant 0 : index
    %612 = vector.load %arg11[%c19_368, %c0_369, %c0_370] : memref<30x1x32xf32, #tpu.memory_space<vmem>>, vector<1x1x32xf32>
    %613 = vector.shape_cast %612 : vector<1x1x32xf32> to vector<1x32xf32>
    %c20_371 = arith.constant 20 : index
    %c0_372 = arith.constant 0 : index
    %c0_373 = arith.constant 0 : index
    %614 = vector.load %arg11[%c20_371, %c0_372, %c0_373] : memref<30x1x32xf32, #tpu.memory_space<vmem>>, vector<1x1x32xf32>
    %615 = vector.shape_cast %614 : vector<1x1x32xf32> to vector<1x32xf32>
    %cst_374 = arith.constant dense<0.000000e+00> : vector<16xf32>
    %616 = vector.multi_reduction <add>, %611, %cst_374 [1] : vector<16x32xf32> to vector<16xf32>
    %617 = vector.shape_cast %616 : vector<16xf32> to vector<16x1xf32>
    %cst_375 = arith.constant 3.200000e+01 : f32
    %618 = vector.broadcast %cst_375 : f32 to vector<16x1xf32>
    %619 = arith.divf %617, %618 : vector<16x1xf32>
    %620 = vector.broadcast %619 : vector<16x1xf32> to vector<16x32xf32>
    %621 = arith.subf %611, %620 : vector<16x32xf32>
    %622 = arith.mulf %621, %621 : vector<16x32xf32>
    %cst_376 = arith.constant dense<0.000000e+00> : vector<16xf32>
    %623 = vector.multi_reduction <add>, %622, %cst_376 [1] : vector<16x32xf32> to vector<16xf32>
    %624 = vector.shape_cast %623 : vector<16xf32> to vector<16x1xf32>
    %cst_377 = arith.constant 3.200000e+01 : f32
    %625 = vector.broadcast %cst_377 : f32 to vector<16x1xf32>
    %626 = arith.divf %624, %625 : vector<16x1xf32>
    %cst_378 = arith.constant 9.99999974E-6 : f32
    %627 = vector.broadcast %cst_378 : f32 to vector<16x1xf32>
    %628 = arith.addf %626, %627 : vector<16x1xf32>
    %629 = math.rsqrt %628 : vector<16x1xf32>
    %630 = vector.broadcast %629 : vector<16x1xf32> to vector<16x32xf32>
    %631 = arith.mulf %621, %630 : vector<16x32xf32>
    %632 = vector.broadcast %613 : vector<1x32xf32> to vector<16x32xf32>
    %633 = arith.mulf %631, %632 : vector<16x32xf32>
    %634 = vector.broadcast %615 : vector<1x32xf32> to vector<16x32xf32>
    %635 = arith.addf %633, %634 : vector<16x32xf32>
    %c24_379 = arith.constant 24 : index
    %c0_380 = arith.constant 0 : index
    %c0_381 = arith.constant 0 : index
    %636 = vector.load %arg6[%c24_379, %c0_380, %c0_381] : memref<48x32x16xf32, #tpu.memory_space<vmem>>, vector<1x32x16xf32>
    %637 = vector.shape_cast %636 : vector<1x32x16xf32> to vector<32x16xf32>
    %cst_382 = arith.constant dense<0.000000e+00> : vector<16x16xf32>
    %638 = tpu.matmul %635, %637, %cst_382 {dimension_numbers = #tpu.dot_dimension_numbers<[1], [0], [0], [1], [0, 0, 1, 1], [], []>} : vector<16x32xf32>, vector<32x16xf32>, vector<16x16xf32> -> vector<16x16xf32>
    %c18_383 = arith.constant 18 : index
    %c0_384 = arith.constant 0 : index
    %c0_385 = arith.constant 0 : index
    %639 = vector.load %arg7[%c18_383, %c0_384, %c0_385] : memref<36x1x16xf32, #tpu.memory_space<vmem>>, vector<1x1x16xf32>
    %640 = vector.shape_cast %639 : vector<1x1x16xf32> to vector<1x16xf32>
    %641 = vector.broadcast %640 : vector<1x16xf32> to vector<16x16xf32>
    %642 = arith.addf %638, %641 : vector<16x16xf32>
    %c26_386 = arith.constant 26 : index
    %c0_387 = arith.constant 0 : index
    %c0_388 = arith.constant 0 : index
    %643 = vector.load %arg6[%c26_386, %c0_387, %c0_388] : memref<48x32x16xf32, #tpu.memory_space<vmem>>, vector<1x32x16xf32>
    %644 = vector.shape_cast %643 : vector<1x32x16xf32> to vector<32x16xf32>
    %cst_389 = arith.constant dense<0.000000e+00> : vector<16x16xf32>
    %645 = tpu.matmul %635, %644, %cst_389 {dimension_numbers = #tpu.dot_dimension_numbers<[1], [0], [0], [1], [0, 0, 1, 1], [], []>} : vector<16x32xf32>, vector<32x16xf32>, vector<16x16xf32> -> vector<16x16xf32>
    %c20_390 = arith.constant 20 : index
    %c0_391 = arith.constant 0 : index
    %c0_392 = arith.constant 0 : index
    %646 = vector.load %arg7[%c20_390, %c0_391, %c0_392] : memref<36x1x16xf32, #tpu.memory_space<vmem>>, vector<1x1x16xf32>
    %647 = vector.shape_cast %646 : vector<1x1x16xf32> to vector<1x16xf32>
    %648 = vector.broadcast %647 : vector<1x16xf32> to vector<16x16xf32>
    %649 = arith.addf %645, %648 : vector<16x16xf32>
    %c28_393 = arith.constant 28 : index
    %c0_394 = arith.constant 0 : index
    %c0_395 = arith.constant 0 : index
    %650 = vector.load %arg6[%c28_393, %c0_394, %c0_395] : memref<48x32x16xf32, #tpu.memory_space<vmem>>, vector<1x32x16xf32>
    %651 = vector.shape_cast %650 : vector<1x32x16xf32> to vector<32x16xf32>
    %cst_396 = arith.constant dense<0.000000e+00> : vector<16x16xf32>
    %652 = tpu.matmul %635, %651, %cst_396 {dimension_numbers = #tpu.dot_dimension_numbers<[1], [0], [0], [1], [0, 0, 1, 1], [], []>} : vector<16x32xf32>, vector<32x16xf32>, vector<16x16xf32> -> vector<16x16xf32>
    %c22_397 = arith.constant 22 : index
    %c0_398 = arith.constant 0 : index
    %c0_399 = arith.constant 0 : index
    %653 = vector.load %arg7[%c22_397, %c0_398, %c0_399] : memref<36x1x16xf32, #tpu.memory_space<vmem>>, vector<1x1x16xf32>
    %654 = vector.shape_cast %653 : vector<1x1x16xf32> to vector<1x16xf32>
    %655 = vector.broadcast %654 : vector<1x16xf32> to vector<16x16xf32>
    %656 = arith.addf %652, %655 : vector<16x16xf32>
    %657 = vector.extract_strided_slice %642 {offsets = [0, 0], sizes = [8, 16], strides = [1, 1]} : vector<16x16xf32> to vector<8x16xf32>
    %658 = vector.extract_strided_slice %649 {offsets = [0, 0], sizes = [8, 16], strides = [1, 1]} : vector<16x16xf32> to vector<8x16xf32>
    %659 = vector.extract_strided_slice %656 {offsets = [0, 0], sizes = [8, 16], strides = [1, 1]} : vector<16x16xf32> to vector<8x16xf32>
    %cst_400 = arith.constant dense<0.000000e+00> : vector<8x8xf32>
    %660 = tpu.matmul %657, %658, %cst_400 {dimension_numbers = #tpu.dot_dimension_numbers<[1], [1], [0], [0], [0, 0, 1, 0], [], []>} : vector<8x16xf32>, vector<8x16xf32>, vector<8x8xf32> -> vector<8x8xf32>
    %cst_401 = arith.constant 2.500000e-01 : f32
    %661 = vector.broadcast %cst_401 : f32 to vector<8x8xf32>
    %662 = arith.mulf %660, %661 : vector<8x8xf32>
    %cst_402 = arith.constant -1.000000e+09 : f32
    %663 = vector.broadcast %cst_402 : f32 to vector<8x8xf32>
    %664 = arith.select %327, %662, %663 : vector<8x8xi1>, vector<8x8xf32>
    %cst_403 = arith.constant dense<0xFF800000> : vector<8xf32>
    %665 = vector.multi_reduction <maximumf>, %664, %cst_403 [1] : vector<8x8xf32> to vector<8xf32>
    %666 = vector.shape_cast %665 : vector<8xf32> to vector<8x1xf32>
    %667 = vector.broadcast %666 : vector<8x1xf32> to vector<8x8xf32>
    %668 = arith.subf %664, %667 : vector<8x8xf32>
    %669 = math.exp %668 : vector<8x8xf32>
    %cst_404 = arith.constant dense<0.000000e+00> : vector<8xf32>
    %670 = vector.multi_reduction <add>, %669, %cst_404 [1] : vector<8x8xf32> to vector<8xf32>
    %671 = vector.shape_cast %670 : vector<8xf32> to vector<8x1xf32>
    %672 = tpu.reciprocal %671 {approx = true} : vector<8x1xf32> -> vector<8x1xf32>
    %673 = vector.broadcast %672 : vector<8x1xf32> to vector<8x8xf32>
    %674 = arith.mulf %669, %673 : vector<8x8xf32>
    %cst_405 = arith.constant dense<0.000000e+00> : vector<8x16xf32>
    %675 = tpu.matmul %674, %659, %cst_405 {dimension_numbers = #tpu.dot_dimension_numbers<[1], [0], [0], [1], [0, 0, 1, 1], [], []>} : vector<8x8xf32>, vector<8x16xf32>, vector<8x16xf32> -> vector<8x16xf32>
    %676 = vector.extract_strided_slice %642 {offsets = [8, 0], sizes = [8, 16], strides = [1, 1]} : vector<16x16xf32> to vector<8x16xf32>
    %677 = vector.extract_strided_slice %649 {offsets = [8, 0], sizes = [8, 16], strides = [1, 1]} : vector<16x16xf32> to vector<8x16xf32>
    %678 = vector.extract_strided_slice %656 {offsets = [8, 0], sizes = [8, 16], strides = [1, 1]} : vector<16x16xf32> to vector<8x16xf32>
    %cst_406 = arith.constant dense<0.000000e+00> : vector<8x8xf32>
    %679 = tpu.matmul %676, %677, %cst_406 {dimension_numbers = #tpu.dot_dimension_numbers<[1], [1], [0], [0], [0, 0, 1, 0], [], []>} : vector<8x16xf32>, vector<8x16xf32>, vector<8x8xf32> -> vector<8x8xf32>
    %cst_407 = arith.constant 2.500000e-01 : f32
    %680 = vector.broadcast %cst_407 : f32 to vector<8x8xf32>
    %681 = arith.mulf %679, %680 : vector<8x8xf32>
    %cst_408 = arith.constant -1.000000e+09 : f32
    %682 = vector.broadcast %cst_408 : f32 to vector<8x8xf32>
    %683 = arith.select %332, %681, %682 : vector<8x8xi1>, vector<8x8xf32>
    %cst_409 = arith.constant dense<0xFF800000> : vector<8xf32>
    %684 = vector.multi_reduction <maximumf>, %683, %cst_409 [1] : vector<8x8xf32> to vector<8xf32>
    %685 = vector.shape_cast %684 : vector<8xf32> to vector<8x1xf32>
    %686 = vector.broadcast %685 : vector<8x1xf32> to vector<8x8xf32>
    %687 = arith.subf %683, %686 : vector<8x8xf32>
    %688 = math.exp %687 : vector<8x8xf32>
    %cst_410 = arith.constant dense<0.000000e+00> : vector<8xf32>
    %689 = vector.multi_reduction <add>, %688, %cst_410 [1] : vector<8x8xf32> to vector<8xf32>
    %690 = vector.shape_cast %689 : vector<8xf32> to vector<8x1xf32>
    %691 = tpu.reciprocal %690 {approx = true} : vector<8x1xf32> -> vector<8x1xf32>
    %692 = vector.broadcast %691 : vector<8x1xf32> to vector<8x8xf32>
    %693 = arith.mulf %688, %692 : vector<8x8xf32>
    %cst_411 = arith.constant dense<0.000000e+00> : vector<8x16xf32>
    %694 = tpu.matmul %693, %678, %cst_411 {dimension_numbers = #tpu.dot_dimension_numbers<[1], [0], [0], [1], [0, 0, 1, 1], [], []>} : vector<8x8xf32>, vector<8x16xf32>, vector<8x16xf32> -> vector<8x16xf32>
    %695 = tpu.concatenate %675, %694 in 0 : vector<8x16xf32>, vector<8x16xf32> -> vector<16x16xf32>
    %c30 = arith.constant 30 : index
    %c0_412 = arith.constant 0 : index
    %c0_413 = arith.constant 0 : index
    %696 = vector.load %arg6[%c30, %c0_412, %c0_413] : memref<48x32x16xf32, #tpu.memory_space<vmem>>, vector<1x32x16xf32>
    %697 = vector.shape_cast %696 : vector<1x32x16xf32> to vector<32x16xf32>
    %cst_414 = arith.constant dense<0.000000e+00> : vector<16x32xf32>
    %698 = tpu.matmul %695, %697, %cst_414 {dimension_numbers = #tpu.dot_dimension_numbers<[1], [1], [0], [0], [0, 0, 1, 0], [], []>} : vector<16x16xf32>, vector<32x16xf32>, vector<16x32xf32> -> vector<16x32xf32>
    %c25_415 = arith.constant 25 : index
    %c0_416 = arith.constant 0 : index
    %c0_417 = arith.constant 0 : index
    %699 = vector.load %arg6[%c25_415, %c0_416, %c0_417] : memref<48x32x16xf32, #tpu.memory_space<vmem>>, vector<1x32x16xf32>
    %700 = vector.shape_cast %699 : vector<1x32x16xf32> to vector<32x16xf32>
    %cst_418 = arith.constant dense<0.000000e+00> : vector<16x16xf32>
    %701 = tpu.matmul %635, %700, %cst_418 {dimension_numbers = #tpu.dot_dimension_numbers<[1], [0], [0], [1], [0, 0, 1, 1], [], []>} : vector<16x32xf32>, vector<32x16xf32>, vector<16x16xf32> -> vector<16x16xf32>
    %c19_419 = arith.constant 19 : index
    %c0_420 = arith.constant 0 : index
    %c0_421 = arith.constant 0 : index
    %702 = vector.load %arg7[%c19_419, %c0_420, %c0_421] : memref<36x1x16xf32, #tpu.memory_space<vmem>>, vector<1x1x16xf32>
    %703 = vector.shape_cast %702 : vector<1x1x16xf32> to vector<1x16xf32>
    %704 = vector.broadcast %703 : vector<1x16xf32> to vector<16x16xf32>
    %705 = arith.addf %701, %704 : vector<16x16xf32>
    %c27_422 = arith.constant 27 : index
    %c0_423 = arith.constant 0 : index
    %c0_424 = arith.constant 0 : index
    %706 = vector.load %arg6[%c27_422, %c0_423, %c0_424] : memref<48x32x16xf32, #tpu.memory_space<vmem>>, vector<1x32x16xf32>
    %707 = vector.shape_cast %706 : vector<1x32x16xf32> to vector<32x16xf32>
    %cst_425 = arith.constant dense<0.000000e+00> : vector<16x16xf32>
    %708 = tpu.matmul %635, %707, %cst_425 {dimension_numbers = #tpu.dot_dimension_numbers<[1], [0], [0], [1], [0, 0, 1, 1], [], []>} : vector<16x32xf32>, vector<32x16xf32>, vector<16x16xf32> -> vector<16x16xf32>
    %c21_426 = arith.constant 21 : index
    %c0_427 = arith.constant 0 : index
    %c0_428 = arith.constant 0 : index
    %709 = vector.load %arg7[%c21_426, %c0_427, %c0_428] : memref<36x1x16xf32, #tpu.memory_space<vmem>>, vector<1x1x16xf32>
    %710 = vector.shape_cast %709 : vector<1x1x16xf32> to vector<1x16xf32>
    %711 = vector.broadcast %710 : vector<1x16xf32> to vector<16x16xf32>
    %712 = arith.addf %708, %711 : vector<16x16xf32>
    %c29_429 = arith.constant 29 : index
    %c0_430 = arith.constant 0 : index
    %c0_431 = arith.constant 0 : index
    %713 = vector.load %arg6[%c29_429, %c0_430, %c0_431] : memref<48x32x16xf32, #tpu.memory_space<vmem>>, vector<1x32x16xf32>
    %714 = vector.shape_cast %713 : vector<1x32x16xf32> to vector<32x16xf32>
    %cst_432 = arith.constant dense<0.000000e+00> : vector<16x16xf32>
    %715 = tpu.matmul %635, %714, %cst_432 {dimension_numbers = #tpu.dot_dimension_numbers<[1], [0], [0], [1], [0, 0, 1, 1], [], []>} : vector<16x32xf32>, vector<32x16xf32>, vector<16x16xf32> -> vector<16x16xf32>
    %c23_433 = arith.constant 23 : index
    %c0_434 = arith.constant 0 : index
    %c0_435 = arith.constant 0 : index
    %716 = vector.load %arg7[%c23_433, %c0_434, %c0_435] : memref<36x1x16xf32, #tpu.memory_space<vmem>>, vector<1x1x16xf32>
    %717 = vector.shape_cast %716 : vector<1x1x16xf32> to vector<1x16xf32>
    %718 = vector.broadcast %717 : vector<1x16xf32> to vector<16x16xf32>
    %719 = arith.addf %715, %718 : vector<16x16xf32>
    %720 = vector.extract_strided_slice %705 {offsets = [0, 0], sizes = [8, 16], strides = [1, 1]} : vector<16x16xf32> to vector<8x16xf32>
    %721 = vector.extract_strided_slice %712 {offsets = [0, 0], sizes = [8, 16], strides = [1, 1]} : vector<16x16xf32> to vector<8x16xf32>
    %722 = vector.extract_strided_slice %719 {offsets = [0, 0], sizes = [8, 16], strides = [1, 1]} : vector<16x16xf32> to vector<8x16xf32>
    %cst_436 = arith.constant dense<0.000000e+00> : vector<8x8xf32>
    %723 = tpu.matmul %720, %721, %cst_436 {dimension_numbers = #tpu.dot_dimension_numbers<[1], [1], [0], [0], [0, 0, 1, 0], [], []>} : vector<8x16xf32>, vector<8x16xf32>, vector<8x8xf32> -> vector<8x8xf32>
    %cst_437 = arith.constant 2.500000e-01 : f32
    %724 = vector.broadcast %cst_437 : f32 to vector<8x8xf32>
    %725 = arith.mulf %723, %724 : vector<8x8xf32>
    %cst_438 = arith.constant -1.000000e+09 : f32
    %726 = vector.broadcast %cst_438 : f32 to vector<8x8xf32>
    %727 = arith.select %327, %725, %726 : vector<8x8xi1>, vector<8x8xf32>
    %cst_439 = arith.constant dense<0xFF800000> : vector<8xf32>
    %728 = vector.multi_reduction <maximumf>, %727, %cst_439 [1] : vector<8x8xf32> to vector<8xf32>
    %729 = vector.shape_cast %728 : vector<8xf32> to vector<8x1xf32>
    %730 = vector.broadcast %729 : vector<8x1xf32> to vector<8x8xf32>
    %731 = arith.subf %727, %730 : vector<8x8xf32>
    %732 = math.exp %731 : vector<8x8xf32>
    %cst_440 = arith.constant dense<0.000000e+00> : vector<8xf32>
    %733 = vector.multi_reduction <add>, %732, %cst_440 [1] : vector<8x8xf32> to vector<8xf32>
    %734 = vector.shape_cast %733 : vector<8xf32> to vector<8x1xf32>
    %735 = tpu.reciprocal %734 {approx = true} : vector<8x1xf32> -> vector<8x1xf32>
    %736 = vector.broadcast %735 : vector<8x1xf32> to vector<8x8xf32>
    %737 = arith.mulf %732, %736 : vector<8x8xf32>
    %cst_441 = arith.constant dense<0.000000e+00> : vector<8x16xf32>
    %738 = tpu.matmul %737, %722, %cst_441 {dimension_numbers = #tpu.dot_dimension_numbers<[1], [0], [0], [1], [0, 0, 1, 1], [], []>} : vector<8x8xf32>, vector<8x16xf32>, vector<8x16xf32> -> vector<8x16xf32>
    %739 = vector.extract_strided_slice %705 {offsets = [8, 0], sizes = [8, 16], strides = [1, 1]} : vector<16x16xf32> to vector<8x16xf32>
    %740 = vector.extract_strided_slice %712 {offsets = [8, 0], sizes = [8, 16], strides = [1, 1]} : vector<16x16xf32> to vector<8x16xf32>
    %741 = vector.extract_strided_slice %719 {offsets = [8, 0], sizes = [8, 16], strides = [1, 1]} : vector<16x16xf32> to vector<8x16xf32>
    %cst_442 = arith.constant dense<0.000000e+00> : vector<8x8xf32>
    %742 = tpu.matmul %739, %740, %cst_442 {dimension_numbers = #tpu.dot_dimension_numbers<[1], [1], [0], [0], [0, 0, 1, 0], [], []>} : vector<8x16xf32>, vector<8x16xf32>, vector<8x8xf32> -> vector<8x8xf32>
    %cst_443 = arith.constant 2.500000e-01 : f32
    %743 = vector.broadcast %cst_443 : f32 to vector<8x8xf32>
    %744 = arith.mulf %742, %743 : vector<8x8xf32>
    %cst_444 = arith.constant -1.000000e+09 : f32
    %745 = vector.broadcast %cst_444 : f32 to vector<8x8xf32>
    %746 = arith.select %332, %744, %745 : vector<8x8xi1>, vector<8x8xf32>
    %cst_445 = arith.constant dense<0xFF800000> : vector<8xf32>
    %747 = vector.multi_reduction <maximumf>, %746, %cst_445 [1] : vector<8x8xf32> to vector<8xf32>
    %748 = vector.shape_cast %747 : vector<8xf32> to vector<8x1xf32>
    %749 = vector.broadcast %748 : vector<8x1xf32> to vector<8x8xf32>
    %750 = arith.subf %746, %749 : vector<8x8xf32>
    %751 = math.exp %750 : vector<8x8xf32>
    %cst_446 = arith.constant dense<0.000000e+00> : vector<8xf32>
    %752 = vector.multi_reduction <add>, %751, %cst_446 [1] : vector<8x8xf32> to vector<8xf32>
    %753 = vector.shape_cast %752 : vector<8xf32> to vector<8x1xf32>
    %754 = tpu.reciprocal %753 {approx = true} : vector<8x1xf32> -> vector<8x1xf32>
    %755 = vector.broadcast %754 : vector<8x1xf32> to vector<8x8xf32>
    %756 = arith.mulf %751, %755 : vector<8x8xf32>
    %cst_447 = arith.constant dense<0.000000e+00> : vector<8x16xf32>
    %757 = tpu.matmul %756, %741, %cst_447 {dimension_numbers = #tpu.dot_dimension_numbers<[1], [0], [0], [1], [0, 0, 1, 1], [], []>} : vector<8x8xf32>, vector<8x16xf32>, vector<8x16xf32> -> vector<8x16xf32>
    %758 = tpu.concatenate %738, %757 in 0 : vector<8x16xf32>, vector<8x16xf32> -> vector<16x16xf32>
    %c31 = arith.constant 31 : index
    %c0_448 = arith.constant 0 : index
    %c0_449 = arith.constant 0 : index
    %759 = vector.load %arg6[%c31, %c0_448, %c0_449] : memref<48x32x16xf32, #tpu.memory_space<vmem>>, vector<1x32x16xf32>
    %760 = vector.shape_cast %759 : vector<1x32x16xf32> to vector<32x16xf32>
    %cst_450 = arith.constant dense<0.000000e+00> : vector<16x32xf32>
    %761 = tpu.matmul %758, %760, %cst_450 {dimension_numbers = #tpu.dot_dimension_numbers<[1], [1], [0], [0], [0, 0, 1, 0], [], []>} : vector<16x16xf32>, vector<32x16xf32>, vector<16x32xf32> -> vector<16x32xf32>
    %762 = arith.addf %698, %761 : vector<16x32xf32>
    %763 = arith.addf %635, %762 : vector<16x32xf32>
    %c21_451 = arith.constant 21 : index
    %c0_452 = arith.constant 0 : index
    %c0_453 = arith.constant 0 : index
    %764 = vector.load %arg11[%c21_451, %c0_452, %c0_453] : memref<30x1x32xf32, #tpu.memory_space<vmem>>, vector<1x1x32xf32>
    %765 = vector.shape_cast %764 : vector<1x1x32xf32> to vector<1x32xf32>
    %766 = vector.broadcast %765 : vector<1x32xf32> to vector<16x32xf32>
    %767 = arith.addf %763, %766 : vector<16x32xf32>
    %c22_454 = arith.constant 22 : index
    %c0_455 = arith.constant 0 : index
    %c0_456 = arith.constant 0 : index
    %768 = vector.load %arg11[%c22_454, %c0_455, %c0_456] : memref<30x1x32xf32, #tpu.memory_space<vmem>>, vector<1x1x32xf32>
    %769 = vector.shape_cast %768 : vector<1x1x32xf32> to vector<1x32xf32>
    %c23_457 = arith.constant 23 : index
    %c0_458 = arith.constant 0 : index
    %c0_459 = arith.constant 0 : index
    %770 = vector.load %arg11[%c23_457, %c0_458, %c0_459] : memref<30x1x32xf32, #tpu.memory_space<vmem>>, vector<1x1x32xf32>
    %771 = vector.shape_cast %770 : vector<1x1x32xf32> to vector<1x32xf32>
    %cst_460 = arith.constant dense<0.000000e+00> : vector<16xf32>
    %772 = vector.multi_reduction <add>, %767, %cst_460 [1] : vector<16x32xf32> to vector<16xf32>
    %773 = vector.shape_cast %772 : vector<16xf32> to vector<16x1xf32>
    %cst_461 = arith.constant 3.200000e+01 : f32
    %774 = vector.broadcast %cst_461 : f32 to vector<16x1xf32>
    %775 = arith.divf %773, %774 : vector<16x1xf32>
    %776 = vector.broadcast %775 : vector<16x1xf32> to vector<16x32xf32>
    %777 = arith.subf %767, %776 : vector<16x32xf32>
    %778 = arith.mulf %777, %777 : vector<16x32xf32>
    %cst_462 = arith.constant dense<0.000000e+00> : vector<16xf32>
    %779 = vector.multi_reduction <add>, %778, %cst_462 [1] : vector<16x32xf32> to vector<16xf32>
    %780 = vector.shape_cast %779 : vector<16xf32> to vector<16x1xf32>
    %cst_463 = arith.constant 3.200000e+01 : f32
    %781 = vector.broadcast %cst_463 : f32 to vector<16x1xf32>
    %782 = arith.divf %780, %781 : vector<16x1xf32>
    %cst_464 = arith.constant 9.99999974E-6 : f32
    %783 = vector.broadcast %cst_464 : f32 to vector<16x1xf32>
    %784 = arith.addf %782, %783 : vector<16x1xf32>
    %785 = math.rsqrt %784 : vector<16x1xf32>
    %786 = vector.broadcast %785 : vector<16x1xf32> to vector<16x32xf32>
    %787 = arith.mulf %777, %786 : vector<16x32xf32>
    %788 = vector.broadcast %769 : vector<1x32xf32> to vector<16x32xf32>
    %789 = arith.mulf %787, %788 : vector<16x32xf32>
    %790 = vector.broadcast %771 : vector<1x32xf32> to vector<16x32xf32>
    %791 = arith.addf %789, %790 : vector<16x32xf32>
    %c40 = arith.constant 40 : index
    %c0_465 = arith.constant 0 : index
    %c0_466 = arith.constant 0 : index
    %792 = vector.load %arg6[%c40, %c0_465, %c0_466] : memref<48x32x16xf32, #tpu.memory_space<vmem>>, vector<1x32x16xf32>
    %793 = vector.shape_cast %792 : vector<1x32x16xf32> to vector<32x16xf32>
    %cst_467 = arith.constant dense<0.000000e+00> : vector<16x16xf32>
    %794 = tpu.matmul %791, %793, %cst_467 {dimension_numbers = #tpu.dot_dimension_numbers<[1], [0], [0], [1], [0, 0, 1, 1], [], []>} : vector<16x32xf32>, vector<32x16xf32>, vector<16x16xf32> -> vector<16x16xf32>
    %c30_468 = arith.constant 30 : index
    %c0_469 = arith.constant 0 : index
    %c0_470 = arith.constant 0 : index
    %795 = vector.load %arg7[%c30_468, %c0_469, %c0_470] : memref<36x1x16xf32, #tpu.memory_space<vmem>>, vector<1x1x16xf32>
    %796 = vector.shape_cast %795 : vector<1x1x16xf32> to vector<1x16xf32>
    %797 = vector.broadcast %796 : vector<1x16xf32> to vector<16x16xf32>
    %798 = arith.addf %794, %797 : vector<16x16xf32>
    %c42 = arith.constant 42 : index
    %c0_471 = arith.constant 0 : index
    %c0_472 = arith.constant 0 : index
    %799 = vector.load %arg6[%c42, %c0_471, %c0_472] : memref<48x32x16xf32, #tpu.memory_space<vmem>>, vector<1x32x16xf32>
    %800 = vector.shape_cast %799 : vector<1x32x16xf32> to vector<32x16xf32>
    %cst_473 = arith.constant dense<0.000000e+00> : vector<4x16xf32>
    %801 = tpu.matmul %316, %800, %cst_473 {dimension_numbers = #tpu.dot_dimension_numbers<[1], [0], [0], [1], [0, 0, 1, 1], [], []>} : vector<4x32xf32>, vector<32x16xf32>, vector<4x16xf32> -> vector<4x16xf32>
    %c32_474 = arith.constant 32 : index
    %c0_475 = arith.constant 0 : index
    %c0_476 = arith.constant 0 : index
    %802 = vector.load %arg7[%c32_474, %c0_475, %c0_476] : memref<36x1x16xf32, #tpu.memory_space<vmem>>, vector<1x1x16xf32>
    %803 = vector.shape_cast %802 : vector<1x1x16xf32> to vector<1x16xf32>
    %804 = vector.broadcast %803 : vector<1x16xf32> to vector<4x16xf32>
    %805 = arith.addf %801, %804 : vector<4x16xf32>
    %c44 = arith.constant 44 : index
    %c0_477 = arith.constant 0 : index
    %c0_478 = arith.constant 0 : index
    %806 = vector.load %arg6[%c44, %c0_477, %c0_478] : memref<48x32x16xf32, #tpu.memory_space<vmem>>, vector<1x32x16xf32>
    %807 = vector.shape_cast %806 : vector<1x32x16xf32> to vector<32x16xf32>
    %cst_479 = arith.constant dense<0.000000e+00> : vector<4x16xf32>
    %808 = tpu.matmul %316, %807, %cst_479 {dimension_numbers = #tpu.dot_dimension_numbers<[1], [0], [0], [1], [0, 0, 1, 1], [], []>} : vector<4x32xf32>, vector<32x16xf32>, vector<4x16xf32> -> vector<4x16xf32>
    %c34_480 = arith.constant 34 : index
    %c0_481 = arith.constant 0 : index
    %c0_482 = arith.constant 0 : index
    %809 = vector.load %arg7[%c34_480, %c0_481, %c0_482] : memref<36x1x16xf32, #tpu.memory_space<vmem>>, vector<1x1x16xf32>
    %810 = vector.shape_cast %809 : vector<1x1x16xf32> to vector<1x16xf32>
    %811 = vector.broadcast %810 : vector<1x16xf32> to vector<4x16xf32>
    %812 = arith.addf %808, %811 : vector<4x16xf32>
    %cst_483 = arith.constant dense<0.000000e+00> : vector<16x4xf32>
    %813 = tpu.matmul %798, %805, %cst_483 {dimension_numbers = #tpu.dot_dimension_numbers<[1], [1], [0], [0], [0, 0, 1, 0], [], []>} : vector<16x16xf32>, vector<4x16xf32>, vector<16x4xf32> -> vector<16x4xf32>
    %cst_484 = arith.constant 2.500000e-01 : f32
    %814 = vector.broadcast %cst_484 : f32 to vector<16x4xf32>
    %815 = arith.mulf %813, %814 : vector<16x4xf32>
    %cst_485 = arith.constant dense<0xFF800000> : vector<16xf32>
    %816 = vector.multi_reduction <maximumf>, %815, %cst_485 [1] : vector<16x4xf32> to vector<16xf32>
    %817 = vector.shape_cast %816 : vector<16xf32> to vector<16x1xf32>
    %818 = vector.broadcast %817 : vector<16x1xf32> to vector<16x4xf32>
    %819 = arith.subf %815, %818 : vector<16x4xf32>
    %820 = math.exp %819 : vector<16x4xf32>
    %cst_486 = arith.constant dense<0.000000e+00> : vector<16xf32>
    %821 = vector.multi_reduction <add>, %820, %cst_486 [1] : vector<16x4xf32> to vector<16xf32>
    %822 = vector.shape_cast %821 : vector<16xf32> to vector<16x1xf32>
    %823 = tpu.reciprocal %822 {approx = true} : vector<16x1xf32> -> vector<16x1xf32>
    %824 = vector.broadcast %823 : vector<16x1xf32> to vector<16x4xf32>
    %825 = arith.mulf %820, %824 : vector<16x4xf32>
    %cst_487 = arith.constant dense<0.000000e+00> : vector<16x16xf32>
    %826 = tpu.matmul %825, %812, %cst_487 {dimension_numbers = #tpu.dot_dimension_numbers<[1], [0], [0], [1], [0, 0, 1, 1], [], []>} : vector<16x4xf32>, vector<4x16xf32>, vector<16x16xf32> -> vector<16x16xf32>
    %c46 = arith.constant 46 : index
    %c0_488 = arith.constant 0 : index
    %c0_489 = arith.constant 0 : index
    %827 = vector.load %arg6[%c46, %c0_488, %c0_489] : memref<48x32x16xf32, #tpu.memory_space<vmem>>, vector<1x32x16xf32>
    %828 = vector.shape_cast %827 : vector<1x32x16xf32> to vector<32x16xf32>
    %cst_490 = arith.constant dense<0.000000e+00> : vector<16x32xf32>
    %829 = tpu.matmul %826, %828, %cst_490 {dimension_numbers = #tpu.dot_dimension_numbers<[1], [1], [0], [0], [0, 0, 1, 0], [], []>} : vector<16x16xf32>, vector<32x16xf32>, vector<16x32xf32> -> vector<16x32xf32>
    %c41 = arith.constant 41 : index
    %c0_491 = arith.constant 0 : index
    %c0_492 = arith.constant 0 : index
    %830 = vector.load %arg6[%c41, %c0_491, %c0_492] : memref<48x32x16xf32, #tpu.memory_space<vmem>>, vector<1x32x16xf32>
    %831 = vector.shape_cast %830 : vector<1x32x16xf32> to vector<32x16xf32>
    %cst_493 = arith.constant dense<0.000000e+00> : vector<16x16xf32>
    %832 = tpu.matmul %791, %831, %cst_493 {dimension_numbers = #tpu.dot_dimension_numbers<[1], [0], [0], [1], [0, 0, 1, 1], [], []>} : vector<16x32xf32>, vector<32x16xf32>, vector<16x16xf32> -> vector<16x16xf32>
    %c31_494 = arith.constant 31 : index
    %c0_495 = arith.constant 0 : index
    %c0_496 = arith.constant 0 : index
    %833 = vector.load %arg7[%c31_494, %c0_495, %c0_496] : memref<36x1x16xf32, #tpu.memory_space<vmem>>, vector<1x1x16xf32>
    %834 = vector.shape_cast %833 : vector<1x1x16xf32> to vector<1x16xf32>
    %835 = vector.broadcast %834 : vector<1x16xf32> to vector<16x16xf32>
    %836 = arith.addf %832, %835 : vector<16x16xf32>
    %c43 = arith.constant 43 : index
    %c0_497 = arith.constant 0 : index
    %c0_498 = arith.constant 0 : index
    %837 = vector.load %arg6[%c43, %c0_497, %c0_498] : memref<48x32x16xf32, #tpu.memory_space<vmem>>, vector<1x32x16xf32>
    %838 = vector.shape_cast %837 : vector<1x32x16xf32> to vector<32x16xf32>
    %cst_499 = arith.constant dense<0.000000e+00> : vector<4x16xf32>
    %839 = tpu.matmul %316, %838, %cst_499 {dimension_numbers = #tpu.dot_dimension_numbers<[1], [0], [0], [1], [0, 0, 1, 1], [], []>} : vector<4x32xf32>, vector<32x16xf32>, vector<4x16xf32> -> vector<4x16xf32>
    %c33_500 = arith.constant 33 : index
    %c0_501 = arith.constant 0 : index
    %c0_502 = arith.constant 0 : index
    %840 = vector.load %arg7[%c33_500, %c0_501, %c0_502] : memref<36x1x16xf32, #tpu.memory_space<vmem>>, vector<1x1x16xf32>
    %841 = vector.shape_cast %840 : vector<1x1x16xf32> to vector<1x16xf32>
    %842 = vector.broadcast %841 : vector<1x16xf32> to vector<4x16xf32>
    %843 = arith.addf %839, %842 : vector<4x16xf32>
    %c45 = arith.constant 45 : index
    %c0_503 = arith.constant 0 : index
    %c0_504 = arith.constant 0 : index
    %844 = vector.load %arg6[%c45, %c0_503, %c0_504] : memref<48x32x16xf32, #tpu.memory_space<vmem>>, vector<1x32x16xf32>
    %845 = vector.shape_cast %844 : vector<1x32x16xf32> to vector<32x16xf32>
    %cst_505 = arith.constant dense<0.000000e+00> : vector<4x16xf32>
    %846 = tpu.matmul %316, %845, %cst_505 {dimension_numbers = #tpu.dot_dimension_numbers<[1], [0], [0], [1], [0, 0, 1, 1], [], []>} : vector<4x32xf32>, vector<32x16xf32>, vector<4x16xf32> -> vector<4x16xf32>
    %c35_506 = arith.constant 35 : index
    %c0_507 = arith.constant 0 : index
    %c0_508 = arith.constant 0 : index
    %847 = vector.load %arg7[%c35_506, %c0_507, %c0_508] : memref<36x1x16xf32, #tpu.memory_space<vmem>>, vector<1x1x16xf32>
    %848 = vector.shape_cast %847 : vector<1x1x16xf32> to vector<1x16xf32>
    %849 = vector.broadcast %848 : vector<1x16xf32> to vector<4x16xf32>
    %850 = arith.addf %846, %849 : vector<4x16xf32>
    %cst_509 = arith.constant dense<0.000000e+00> : vector<16x4xf32>
    %851 = tpu.matmul %836, %843, %cst_509 {dimension_numbers = #tpu.dot_dimension_numbers<[1], [1], [0], [0], [0, 0, 1, 0], [], []>} : vector<16x16xf32>, vector<4x16xf32>, vector<16x4xf32> -> vector<16x4xf32>
    %cst_510 = arith.constant 2.500000e-01 : f32
    %852 = vector.broadcast %cst_510 : f32 to vector<16x4xf32>
    %853 = arith.mulf %851, %852 : vector<16x4xf32>
    %cst_511 = arith.constant dense<0xFF800000> : vector<16xf32>
    %854 = vector.multi_reduction <maximumf>, %853, %cst_511 [1] : vector<16x4xf32> to vector<16xf32>
    %855 = vector.shape_cast %854 : vector<16xf32> to vector<16x1xf32>
    %856 = vector.broadcast %855 : vector<16x1xf32> to vector<16x4xf32>
    %857 = arith.subf %853, %856 : vector<16x4xf32>
    %858 = math.exp %857 : vector<16x4xf32>
    %cst_512 = arith.constant dense<0.000000e+00> : vector<16xf32>
    %859 = vector.multi_reduction <add>, %858, %cst_512 [1] : vector<16x4xf32> to vector<16xf32>
    %860 = vector.shape_cast %859 : vector<16xf32> to vector<16x1xf32>
    %861 = tpu.reciprocal %860 {approx = true} : vector<16x1xf32> -> vector<16x1xf32>
    %862 = vector.broadcast %861 : vector<16x1xf32> to vector<16x4xf32>
    %863 = arith.mulf %858, %862 : vector<16x4xf32>
    %cst_513 = arith.constant dense<0.000000e+00> : vector<16x16xf32>
    %864 = tpu.matmul %863, %850, %cst_513 {dimension_numbers = #tpu.dot_dimension_numbers<[1], [0], [0], [1], [0, 0, 1, 1], [], []>} : vector<16x4xf32>, vector<4x16xf32>, vector<16x16xf32> -> vector<16x16xf32>
    %c47 = arith.constant 47 : index
    %c0_514 = arith.constant 0 : index
    %c0_515 = arith.constant 0 : index
    %865 = vector.load %arg6[%c47, %c0_514, %c0_515] : memref<48x32x16xf32, #tpu.memory_space<vmem>>, vector<1x32x16xf32>
    %866 = vector.shape_cast %865 : vector<1x32x16xf32> to vector<32x16xf32>
    %cst_516 = arith.constant dense<0.000000e+00> : vector<16x32xf32>
    %867 = tpu.matmul %864, %866, %cst_516 {dimension_numbers = #tpu.dot_dimension_numbers<[1], [1], [0], [0], [0, 0, 1, 0], [], []>} : vector<16x16xf32>, vector<32x16xf32>, vector<16x32xf32> -> vector<16x32xf32>
    %868 = arith.addf %829, %867 : vector<16x32xf32>
    %869 = arith.addf %791, %868 : vector<16x32xf32>
    %c24_517 = arith.constant 24 : index
    %c0_518 = arith.constant 0 : index
    %c0_519 = arith.constant 0 : index
    %870 = vector.load %arg11[%c24_517, %c0_518, %c0_519] : memref<30x1x32xf32, #tpu.memory_space<vmem>>, vector<1x1x32xf32>
    %871 = vector.shape_cast %870 : vector<1x1x32xf32> to vector<1x32xf32>
    %872 = vector.broadcast %871 : vector<1x32xf32> to vector<16x32xf32>
    %873 = arith.addf %869, %872 : vector<16x32xf32>
    %c25_520 = arith.constant 25 : index
    %c0_521 = arith.constant 0 : index
    %c0_522 = arith.constant 0 : index
    %874 = vector.load %arg11[%c25_520, %c0_521, %c0_522] : memref<30x1x32xf32, #tpu.memory_space<vmem>>, vector<1x1x32xf32>
    %875 = vector.shape_cast %874 : vector<1x1x32xf32> to vector<1x32xf32>
    %c26_523 = arith.constant 26 : index
    %c0_524 = arith.constant 0 : index
    %c0_525 = arith.constant 0 : index
    %876 = vector.load %arg11[%c26_523, %c0_524, %c0_525] : memref<30x1x32xf32, #tpu.memory_space<vmem>>, vector<1x1x32xf32>
    %877 = vector.shape_cast %876 : vector<1x1x32xf32> to vector<1x32xf32>
    %cst_526 = arith.constant dense<0.000000e+00> : vector<16xf32>
    %878 = vector.multi_reduction <add>, %873, %cst_526 [1] : vector<16x32xf32> to vector<16xf32>
    %879 = vector.shape_cast %878 : vector<16xf32> to vector<16x1xf32>
    %cst_527 = arith.constant 3.200000e+01 : f32
    %880 = vector.broadcast %cst_527 : f32 to vector<16x1xf32>
    %881 = arith.divf %879, %880 : vector<16x1xf32>
    %882 = vector.broadcast %881 : vector<16x1xf32> to vector<16x32xf32>
    %883 = arith.subf %873, %882 : vector<16x32xf32>
    %884 = arith.mulf %883, %883 : vector<16x32xf32>
    %cst_528 = arith.constant dense<0.000000e+00> : vector<16xf32>
    %885 = vector.multi_reduction <add>, %884, %cst_528 [1] : vector<16x32xf32> to vector<16xf32>
    %886 = vector.shape_cast %885 : vector<16xf32> to vector<16x1xf32>
    %cst_529 = arith.constant 3.200000e+01 : f32
    %887 = vector.broadcast %cst_529 : f32 to vector<16x1xf32>
    %888 = arith.divf %886, %887 : vector<16x1xf32>
    %cst_530 = arith.constant 9.99999974E-6 : f32
    %889 = vector.broadcast %cst_530 : f32 to vector<16x1xf32>
    %890 = arith.addf %888, %889 : vector<16x1xf32>
    %891 = math.rsqrt %890 : vector<16x1xf32>
    %892 = vector.broadcast %891 : vector<16x1xf32> to vector<16x32xf32>
    %893 = arith.mulf %883, %892 : vector<16x32xf32>
    %894 = vector.broadcast %875 : vector<1x32xf32> to vector<16x32xf32>
    %895 = arith.mulf %893, %894 : vector<16x32xf32>
    %896 = vector.broadcast %877 : vector<1x32xf32> to vector<16x32xf32>
    %897 = arith.addf %895, %896 : vector<16x32xf32>
    %c3_531 = arith.constant 3 : index
    %c0_532 = arith.constant 0 : index
    %c0_533 = arith.constant 0 : index
    %898 = vector.load %arg8[%c3_531, %c0_532, %c0_533] : memref<4x32x64xf32, #tpu.memory_space<vmem>>, vector<1x32x64xf32>
    %899 = vector.shape_cast %898 : vector<1x32x64xf32> to vector<32x64xf32>
    %c3_534 = arith.constant 3 : index
    %c0_535 = arith.constant 0 : index
    %c0_536 = arith.constant 0 : index
    %900 = vector.load %arg9[%c3_534, %c0_535, %c0_536] : memref<4x1x64xf32, #tpu.memory_space<vmem>>, vector<1x1x64xf32>
    %901 = vector.shape_cast %900 : vector<1x1x64xf32> to vector<1x64xf32>
    %c3_537 = arith.constant 3 : index
    %c0_538 = arith.constant 0 : index
    %c0_539 = arith.constant 0 : index
    %902 = vector.load %arg10[%c3_537, %c0_538, %c0_539] : memref<4x64x32xf32, #tpu.memory_space<vmem>>, vector<1x64x32xf32>
    %903 = vector.shape_cast %902 : vector<1x64x32xf32> to vector<64x32xf32>
    %c27_540 = arith.constant 27 : index
    %c0_541 = arith.constant 0 : index
    %c0_542 = arith.constant 0 : index
    %904 = vector.load %arg11[%c27_540, %c0_541, %c0_542] : memref<30x1x32xf32, #tpu.memory_space<vmem>>, vector<1x1x32xf32>
    %905 = vector.shape_cast %904 : vector<1x1x32xf32> to vector<1x32xf32>
    %cst_543 = arith.constant dense<0.000000e+00> : vector<16x64xf32>
    %906 = tpu.matmul %897, %899, %cst_543 {dimension_numbers = #tpu.dot_dimension_numbers<[1], [0], [0], [1], [0, 0, 1, 1], [], []>} : vector<16x32xf32>, vector<32x64xf32>, vector<16x64xf32> -> vector<16x64xf32>
    %907 = vector.broadcast %901 : vector<1x64xf32> to vector<16x64xf32>
    %908 = arith.addf %906, %907 : vector<16x64xf32>
    %cst_544 = arith.constant 0.000000e+00 : f32
    %909 = vector.broadcast %cst_544 : f32 to vector<16x64xf32>
    %910 = arith.maximumf %908, %909 : vector<16x64xf32>
    %cst_545 = arith.constant dense<0.000000e+00> : vector<16x32xf32>
    %911 = tpu.matmul %910, %903, %cst_545 {dimension_numbers = #tpu.dot_dimension_numbers<[1], [0], [0], [1], [0, 0, 1, 1], [], []>} : vector<16x64xf32>, vector<64x32xf32>, vector<16x32xf32> -> vector<16x32xf32>
    %912 = vector.broadcast %905 : vector<1x32xf32> to vector<16x32xf32>
    %913 = arith.addf %911, %912 : vector<16x32xf32>
    %914 = arith.addf %897, %913 : vector<16x32xf32>
    %c28_546 = arith.constant 28 : index
    %c0_547 = arith.constant 0 : index
    %c0_548 = arith.constant 0 : index
    %915 = vector.load %arg11[%c28_546, %c0_547, %c0_548] : memref<30x1x32xf32, #tpu.memory_space<vmem>>, vector<1x1x32xf32>
    %916 = vector.shape_cast %915 : vector<1x1x32xf32> to vector<1x32xf32>
    %c29_549 = arith.constant 29 : index
    %c0_550 = arith.constant 0 : index
    %c0_551 = arith.constant 0 : index
    %917 = vector.load %arg11[%c29_549, %c0_550, %c0_551] : memref<30x1x32xf32, #tpu.memory_space<vmem>>, vector<1x1x32xf32>
    %918 = vector.shape_cast %917 : vector<1x1x32xf32> to vector<1x32xf32>
    %cst_552 = arith.constant dense<0.000000e+00> : vector<16xf32>
    %919 = vector.multi_reduction <add>, %914, %cst_552 [1] : vector<16x32xf32> to vector<16xf32>
    %920 = vector.shape_cast %919 : vector<16xf32> to vector<16x1xf32>
    %cst_553 = arith.constant 3.200000e+01 : f32
    %921 = vector.broadcast %cst_553 : f32 to vector<16x1xf32>
    %922 = arith.divf %920, %921 : vector<16x1xf32>
    %923 = vector.broadcast %922 : vector<16x1xf32> to vector<16x32xf32>
    %924 = arith.subf %914, %923 : vector<16x32xf32>
    %925 = arith.mulf %924, %924 : vector<16x32xf32>
    %cst_554 = arith.constant dense<0.000000e+00> : vector<16xf32>
    %926 = vector.multi_reduction <add>, %925, %cst_554 [1] : vector<16x32xf32> to vector<16xf32>
    %927 = vector.shape_cast %926 : vector<16xf32> to vector<16x1xf32>
    %cst_555 = arith.constant 3.200000e+01 : f32
    %928 = vector.broadcast %cst_555 : f32 to vector<16x1xf32>
    %929 = arith.divf %927, %928 : vector<16x1xf32>
    %cst_556 = arith.constant 9.99999974E-6 : f32
    %930 = vector.broadcast %cst_556 : f32 to vector<16x1xf32>
    %931 = arith.addf %929, %930 : vector<16x1xf32>
    %932 = math.rsqrt %931 : vector<16x1xf32>
    %933 = vector.broadcast %932 : vector<16x1xf32> to vector<16x32xf32>
    %934 = arith.mulf %924, %933 : vector<16x32xf32>
    %935 = vector.broadcast %916 : vector<1x32xf32> to vector<16x32xf32>
    %936 = arith.mulf %934, %935 : vector<16x32xf32>
    %937 = vector.broadcast %918 : vector<1x32xf32> to vector<16x32xf32>
    %938 = arith.addf %936, %937 : vector<16x32xf32>
    %c0_557 = arith.constant 0 : index
    %c0_558 = arith.constant 0 : index
    %939 = vector.load %arg14[%c0_557, %c0_558] : memref<32x4xf32, #tpu.memory_space<vmem>>, vector<32x4xf32>
    %cst_559 = arith.constant dense<0.000000e+00> : vector<16x4xf32>
    %940 = tpu.matmul %938, %939, %cst_559 {dimension_numbers = #tpu.dot_dimension_numbers<[1], [0], [0], [1], [0, 0, 1, 1], [], []>} : vector<16x32xf32>, vector<32x4xf32>, vector<16x4xf32> -> vector<16x4xf32>
    %c0_560 = arith.constant 0 : index
    %c0_561 = arith.constant 0 : index
    %941 = vector.load %arg15[%c0_560, %c0_561] : memref<1x4xf32, #tpu.memory_space<vmem>>, vector<1x4xf32>
    %942 = vector.broadcast %941 : vector<1x4xf32> to vector<16x4xf32>
    %943 = arith.addf %940, %942 : vector<16x4xf32>
    %c0_562 = arith.constant 0 : index
    %c0_563 = arith.constant 0 : index
    %944 = vector.load %arg16[%c0_562, %c0_563] : memref<16x4xf32, #tpu.memory_space<vmem>>, vector<16x4xf32>
    tpu.vector_store %arg16[%c0_562, %c0_563], %943 {strides = array<i32>} : memref<16x4xf32, #tpu.memory_space<vmem>>, vector<16x4xf32>,
    return
  }
}

</mosaic_0001>

<bundles_post_ra>
// kernel: netformer_forward.1
= control target key start
LH: loop header
LB: loop body
LE: loop exit
PB: predicated region body
PF: predicated region fallthrough
CT: control target
= control target key end

     0   :  { %vm63_vm0 = vcmask 1045504   ;;  %vm56_vm1 = vcmask 48128   ;;  %vm153_vm2 = vcmask 261120   ;;  %vm411_vm3 = vcmask 130048   ;;  %s12844_s4 = inlined_call_operand.vmem [shape: f32[6,32], index: 4, kind: input, shape index: {}]   ;;  %s12845_s0 = inlined_call_operand.vmem [shape: f32[9,6], index: 0, kind: input, shape index: {}]   ;;  %s12846_s6 = inlined_call_operand.vmem [shape: f32[48,32,16], index: 6, kind: input, shape index: {}]   ;;  %s12847_s7 = inlined_call_operand.vmem [shape: f32[36,1,16], index: 7, kind: input, shape index: {}]   ;;  %s12848_s11 = inlined_call_operand.vmem [shape: f32[30,1,32], index: 11, kind: input, shape index: {}]   ;;  %s12849_s8 = inlined_call_operand.vmem [shape: f32[4,32,64], index: 8, kind: input, shape index: {}]   ;;  %s12850_s10 = inlined_call_operand.vmem [shape: f32[4,64,32], index: 10, kind: input, shape index: {}]   ;;  %s12851_s9 = inlined_call_operand.vmem [shape: f32[4,1,64], index: 9, kind: input, shape index: {}]   ;;  %s12852_s5 = inlined_call_operand.vmem [shape: f32[5,32], index: 5, kind: input, shape index: {}]   ;;  %s12853_s1 = inlined_call_operand.vmem [shape: f32[16,5], index: 1, kind: input, shape index: {}]   ;;  %s12854_s12 = inlined_call_operand.vmem [shape: f32[2,32,32], index: 12, kind: input, shape index: {}]   ;;  %s12855_s13 = inlined_call_operand.vmem [shape: f32[2,1,32], index: 13, kind: input, shape index: {}]   ;;  %s12856_s3 = inlined_call_operand.vmem [shape: f32[1,32], index: 3, kind: input, shape index: {}]   ;;  %s12857_s2 = inlined_call_operand.vmem [shape: f32[4,32], index: 2, kind: input, shape index: {}]   ;;  %s12858_s14 = inlined_call_operand.vmem [shape: f32[32,4], index: 14, kind: input, shape index: {}]   ;;  %s12859_s15 = inlined_call_operand.vmem [shape: f32[1,4], index: 15, kind: input, shape index: {}]   ;;  %s12860_s16 = inlined_call_operand.vmem [shape: f32[16,4], index: 16, kind: output, shape index: {}]  }
   0x1   :  { %12861 = sst [smem:[#allocation2_spill]] %s12844_s4  ;;  %v53_v1 = vld [vmem:[%s12845_s0] sm:$0xff]  ;;  %v54_v2 = vld [vmem:[%s12845_s0 + $0x8] sm:$0x1]  ;;  %v145_v3 = vld [vmem:[%s12846_s6 + $0x18] sm:$0xff]  ;;  %vm531_vm4 = vcmask 1040384  }
   0x2   :  { %s12862_s23 = sld [smem:[#allocation2_spill]]  ;;  %10066 = vmatprep.mubr.msk.f32.mxu0 %vm56_vm1, %v53_v1  ;;  %v9014_v4 = vld [vmem:[%s12846_s6 + $0x58] sm:$0xff]  ;;  %v144_v5 = vld [vmem:[%s12846_s6 + $0x10] sm:$0xff]  ;;  %10069 = vmatprep.subr.mxu1 %v145_v3  ;;  %v143_v7 = vld [vmem:[%s12846_s6 + $0x8] sm:$0xff]  ;;  %vm501_vm5 = vcmask 72704   ;;  %vm505_vm6 = vcmask 65536  }
   0x3   :  { %10070 = vmatpush3.msra.mxu1 %v145_v3  ;;  %v9013_v6 = vld [vmem:[%s12846_s6 + $0x50] sm:$0xff]  ;;  %v9012_v8 = vld [vmem:[%s12846_s6 + $0x48] sm:$0xff]  ;;  %v142_v9 = vld [vmem:[%s12846_s6] sm:$0xff]  ;;  %vm1283_vm7 = vcmask 253952   ;;  %vm1434_vm8 = vcmask 523264   ;;  %vm3143_vm9 = vcmask 1044480  }
   0x4   :  { %10071 = vmatprep.subr.mxu1 %v144_v5  ;;  %v9011_v10 = vld [vmem:[%s12846_s6 + $0x40] sm:$0xff]  ;;  %v9022_v11 = vld [vmem:[%s12846_s6 + $0x98] sm:$0xff]  ;;  %v9021_v14 = vld [vmem:[%s12846_s6 + $0x90] sm:$0xff]  ;;  %vm3136_vm10 = vcmask 39936   ;;  %vm11073_vm11 = vmmov 0  }
   0x5   :  { %10072 = vmatpush3.msra.mxu1 %v144_v5  ;;  %v9020_v15 = vld [vmem:[%s12846_s6 + $0x88] sm:$0xff]  ;;  %v9019_v16 = vld [vmem:[%s12846_s6 + $0x80] sm:$0xff]  ;;  %v9041_v27 = vld [vmem:[%s12846_s6 + $0x38] sm:$0xff] }
   0x6   :  { %10073 = vmatprep.subr.mxu1 %v143_v7  ;;  %v9016_v17 = vld [vmem:[%s12847_s7 + $0x2] ss:$0 sm:$0xff]  ;;  %v9008_v21 = vld [vmem:[%s12847_s7] ss:$0 sm:$0xff]  ;;  %v9024_v26 = vld [vmem:[%s12847_s7 + $0x4] ss:$0 sm:$0xff] }
   0x7   :  { %10074 = vmatpush3.msra.mxu1 %v143_v7  ;;  %v9040_v33 = vld [vmem:[%s12846_s6 + $0x30] sm:$0xff]  ;;  %v9039_v34 = vld [vmem:[%s12846_s6 + $0x28] sm:$0xff]  ;;  %v9038_v35 = vld [vmem:[%s12846_s6 + $0x20] sm:$0xff] }
   0x8   :  { %v55_v0 = vld [vmem:[%s12862_s23] sm:$0x3f]  ;;  %10075 = vmatprep.subr.mxu1 %v142_v9  ;;  %v9057_v36 = vld [vmem:[%s12846_s6 + $0xb8] sm:$0xff]  ;;  %v9056_v37 = vld [vmem:[%s12846_s6 + $0xb0] sm:$0xff] }
   0x9   :  { %10064 = vmatprep.subr.msk.mxu0 %vm63_vm0, %v55_v0  ;;  %10076 = vmatpush3.msra.mxu1 %v142_v9  ;;  %v9055_v38 = vld [vmem:[%s12846_s6 + $0xa8] sm:$0xff]  ;;  %v9054_v39 = vld [vmem:[%s12846_s6 + $0xa0] sm:$0xff]  ;;  %v9049_v1 = vld [vmem:[%s12846_s6 + $0x78] sm:$0xff] }
   0xa   :  { %10065 = vmatpush3.msk.msra.mxu0 %vm63_vm0, %v55_v0  ;;  %10091 = vmatprep.subr.mxu1 %v9022_v11  ;;  %v9043_v45 = vld [vmem:[%s12847_s7 + $0x1] ss:$0 sm:$0xff]  ;;  %v9059_v50 = vld [vmem:[%s12847_s7 + $0x5] ss:$0 sm:$0xff]  ;;  %v9047_v9 = vld [vmem:[%s12846_s6 + $0x68] sm:$0xff] }
   0xb   :  { %10067 = vmatmul.mubr.msk.f32.vlgmr.msra.gmra.mxu0 %vm56_vm1, %v54_v2  ;;  %10080 = vmatprep.subr.mxu0 %v9014_v4 }
   0xc   :  { %10081 = vmatpush3.msra.mxu0 %v9014_v4 }
   0xd   :  { %10082 = vmatprep.subr.mxu0 %v9013_v6 }
   0xe   :  { %10083 = vmatpush3.msra.mxu0 %v9013_v6 }
   0xf   :  { %10084 = vmatprep.subr.mxu0 %v9012_v8 }
  0x10   :  { %10085 = vmatpush3.msra.mxu0 %v9012_v8  ;;  %v9048_v8 = vld [vmem:[%s12846_s6 + $0x70] sm:$0xff] }
  0x11   :  { %10086 = vmatprep.subr.mxu0 %v9011_v10 }
  0x12   :  { %10087 = vmatpush3.msra.mxu0 %v9011_v10  ;;  %v9046_v10 = vld [vmem:[%s12846_s6 + $0x60] sm:$0xff] }
  0xcb   :  { %v11196_v12 = vpop.f32.mrf.mxu0 }
  0xcd   :  { %v11198_v13 = vpop.f32.mrf.mxu0 }
  0xce   :  { %10077 = vmatprep.mubr.msk.f32.mxu1 %vm153_vm2, %v11198_v13  ;;  %10088 = vmatprep.mubr.msk.f32.mxu0 %vm153_vm2, %v11198_v13 }
  0xcf   :  { %10078 = vmatmul.mubr.msk.f32.vlgmr.msra.gmra.mxu1 %vm153_vm2, %v11196_v12  ;;  %10089 = vmatmul.mubr.msk.f32.vlgmr.msra.gmra.mxu0 %vm153_vm2, %v11196_v12 }
  0xd0   :  { %10092 = vmatpush3.msra.mxu1 %v9022_v11  ;;  %10099 = vmatprep.mubr.msk.f32.mxu1 %vm153_vm2, %v11198_v13 }
  0xd1   :  { %10093 = vmatprep.subr.mxu1 %v9021_v14 }
  0xd2   :  { %10094 = vmatpush3.msra.mxu1 %v9021_v14 }
  0xd3   :  { %10095 = vmatprep.subr.mxu1 %v9020_v15 }
  0xd4   :  { %10096 = vmatpush3.msra.mxu1 %v9020_v15 }
  0xd5   :  { %10097 = vmatprep.subr.mxu1 %v9019_v16 }
  0xd6   :  { %10098 = vmatpush3.msra.mxu1 %v9019_v16  ;;  %v9051_v16 = vld [vmem:[%s12847_s7 + $0x3] ss:$0 sm:$0xff] }
  0xd7   :  { %10100 = vmatmul.mubr.msk.f32.vlgmr.msra.gmra.mxu1 %vm153_vm2, %v11196_v12 }
 0x18f   :  { %v10079_v18 = vpop.f32.mrf.mxu1  ;;  %v10090_v19 = vpop.f32.mrf.mxu0 }
 0x190   :  { %v320_v20 = vadd.f32 %v10090_v19, %v9016_v17  ;;  %v232_v29 = vadd.f32 %v10079_v18, %v9008_v21 }
 0x191   :  { %v226_v22 = vpop.f32.mrf.mxu1  ;;  %v314_v23 = vpop.f32.mrf.mxu0 }
 0x192   :  { %v227_v24 = vadd.f32 %v9008_v21, %v226_v22  ;;  %v315_v25 = vadd.f32 %v9016_v17, %v314_v23  ;;  %10102 = vmatprep.subr.msk.mxu0 %vm411_vm3, %v320_v20 }
 0x193   :  { %10103 = vmatpush3.xpose.msk.msra.mxu0 %vm411_vm3, %v320_v20 }
 0x194   :  { %10104 = vmatprep.subr.msk.mxu0 %vm411_vm3, %v315_v25  ;;  %10106 = vmatprep.mubr.msk.f32.mxu0 %vm411_vm3, %v227_v24 }
 0x197   :  { %v10101_v28 = vpop.f32.mrf.mxu1  ;;  %10105 = vmatpush3.xpose.msk.msra.mxu0 %vm411_vm3, %v315_v25 }
 0x198   :  { %v408_v30 = vadd.f32 %v10101_v28, %v9024_v26  ;;  %10116 = vmatprep.subr.mxu0 %v9041_v27 }
 0x199   :  { %v402_v31 = vpop.f32.mrf.mxu1 }
 0x19a   :  { %v403_v32 = vadd.f32 %v9024_v26, %v402_v31  ;;  %10109 = vmatprep.subr.msk.mxu1 %vm531_vm4, %v408_v30  ;;  %10107 = vmatmul.mubr.msk.f32.vlgmr.msra.gmra.mxu0 %vm411_vm3, %v232_v29 }
 0x19b   :  { %10110 = vmatpush3.msk.msra.mxu1 %vm531_vm4, %v408_v30  ;;  %10117 = vmatpush3.msra.mxu0 %v9041_v27 }
 0x19c   :  { %10111 = vmatprep.subr.mxu1 %v403_v32  ;;  %10124 = vmatprep.mubr.msk.f32.mxu0 %vm153_vm2, %v11198_v13 }
 0x19d   :  { %10112 = vmatpush3.msra.mxu1 %v403_v32  ;;  %10118 = vmatprep.subr.mxu0 %v9040_v33 }
 0x19e   :  { %10119 = vmatpush3.msra.mxu0 %v9040_v33  ;;  %10127 = vmatprep.subr.mxu1 %v9049_v1 }
 0x19f   :  { %10120 = vmatprep.subr.mxu0 %v9039_v34 }
 0x1a0   :  { %10121 = vmatpush3.msra.mxu0 %v9039_v34 }
 0x1a1   :  { %10122 = vmatprep.subr.mxu0 %v9038_v35 }
 0x1a2   :  { %10123 = vmatpush3.msra.mxu0 %v9038_v35 }
 0x1a3   :  { %10125 = vmatmul.mubr.msk.f32.vlgmr.msra.gmra.mxu0 %vm153_vm2, %v11196_v12  ;;  %10138 = vmatprep.subr.mxu0 %v9057_v36 }
 0x1a4   :  { %10139 = vmatpush3.msra.mxu0 %v9057_v36  ;;  %10146 = vmatprep.mubr.msk.f32.mxu0 %vm153_vm2, %v11198_v13 }
 0x1a5   :  { %10140 = vmatprep.subr.mxu0 %v9056_v37 }
 0x1a6   :  { %10141 = vmatpush3.msra.mxu0 %v9056_v37  ;;  %v9037_v37 = vld [vmem:[%s12846_s6 + $0xd8] sm:$0xff] }
 0x1a7   :  { %10142 = vmatprep.subr.mxu0 %v9055_v38 }
 0x1a8   :  { %10143 = vmatpush3.msra.mxu0 %v9055_v38  ;;  %v9072_v38 = vld [vmem:[%s12846_s6 + $0xf8] sm:$0xff] }
 0x1a9   :  { %10144 = vmatprep.subr.mxu0 %v9054_v39 }
 0x1aa   :  { %10145 = vmatpush3.msra.mxu0 %v9054_v39  ;;  %v9071_v39 = vld [vmem:[%s12846_s6 + $0xf0] sm:$0xff] }
 0x1ab   :  { %10147 = vmatmul.mubr.msk.f32.vlgmr.msra.gmra.mxu0 %vm153_vm2, %v11196_v12 }
 0x25a   :  { %v10108_v40 = vpop.f32.mrf.mxu0 }
 0x25b   :  { %v500_v43 = vmul.f32 0.25, %v10108_v40  ;;  %v9070_v40 = vld [vmem:[%s12846_s6 + $0xe8] sm:$0xff] }
 0x25c   :  { %v490_v41 = vpop.f32.mrf.mxu0 }
 0x25d   :  { %v499_v42 = vmul.f32 0.25, %v490_v41  ;;  %v506_v47 = vsel %vm505_vm6, %v500_v43, -inf }
 0x25f   :  { %v502_v44 = vsel %vm501_vm5, %v499_v42, -inf }
 0x260   :  { %503 = vmax.xlane.f32.xlu0 %v502_v44 }
 0x263   :  { %v10126_v46 = vpop.f32.mrf.mxu0 }
 0x264   :  { %v11275_v48 = vadd.f32 %v10126_v46, %v9043_v45  ;;  %507 = vmax.xlane.f32.xlu0 %v506_v47  ;;  %v9036_v47 = vld [vmem:[%s12846_s6 + $0xd0] sm:$0xff] }
 0x265   :  { %v694_v49 = vpop.f32.mrf.mxu0 }
 0x266   :  { %v695_v11 = vadd.f32 %v9043_v45, %v694_v49  ;;  %v9034_v49 = vld [vmem:[%s12846_s6 + $0xc0] sm:$0xff] }
 0x26b   :  { %v10148_v51 = vpop.f32.mrf.mxu0 }
 0x26c   :  { %v876_v52 = vadd.f32 %v10148_v51, %v9059_v50 }
 0x26d   :  { %v870_v53 = vpop.f32.mrf.mxu0 }
 0x26e   :  { %v871_v54 = vadd.f32 %v9059_v50, %v870_v53  ;;  %10156 = vmatprep.subr.msk.mxu0 %vm531_vm4, %v876_v52  ;;  %v9069_v50 = vld [vmem:[%s12846_s6 + $0xe0] sm:$0xff] }
 0x26f   :  { %10157 = vmatpush3.msk.msra.mxu0 %vm531_vm4, %v876_v52 }
 0x270   :  { %10158 = vmatprep.subr.mxu0 %v871_v54 }
 0x271   :  { %10159 = vmatpush3.msra.mxu0 %v871_v54 }
 0x272   :  { %10174 = vmatprep.subr.msk.mxu0 %vm411_vm3, %v9037_v37 }
 0x2e9   :  { %v504_v55 = vpop.xlane.xlu0 %503 }
 0x2ea   :  { %v509_v56 = vsub.f32 %v499_v42, %v504_v55 }
 0x2ec   :  { %v511_v57 = vmul.f32 1.442695, %v509_v56 }
 0x2ed   :  { %v508_v58 = vpop.xlane.xlu0 %507 }
 0x2ee   :  { %10936 = vpow2.f32 %v511_v57  ;;  %v510_v59 = vsub.f32 %v500_v43, %v508_v58  ;;  %v9085_v58 = vld [vmem:[%s12848_s11] ss:$0 sm:$0xff] }
 0x2f0   :  { %v513_v60 = vmul.f32 1.442695, %v510_v59 }
 0x2f2   :  { %10938 = vpow2.f32 %v513_v60 }
 0x2fb   :  { %v10937_v61 = vpop.eup %10936 }
 0x2fc   :  { %v515_v62 = vsel %vm501_vm5, %v10937_v61, 0.0 }
 0x2fd   :  { %516 = vadd.xlane.f32.xlu1 %v515_v62 }
 0x2ff   :  { %v10939_v63 = vpop.eup %10938 }
 0x300   :  { %v518_v0 = vsel %vm505_vm6, %v10939_v63, 0.0 }
 0x301   :  { %519 = vadd.xlane.f32.xlu1 %v518_v0 }
 0x386   :  { %v517_v2 = vpop.xlane.xlu1 %516 }
 0x387   :  { %10940 = vrcp.f32 %v517_v2 }
 0x38a   :  { %v520_v3 = vpop.xlane.xlu1 %519 }
 0x38b   :  { %10942 = vrcp.f32 %v520_v3 }
 0x394   :  { %v10941_v4 = vpop.eup %10940 }
 0x395   :  { %v523_v5 = vmul.f32 %v10941_v4, %v10937_v61 }
 0x397   :  { %10113 = vmatprep.mubr.msk.f32.mxu1 %vm501_vm5, %v523_v5 }
 0x398   :  { %v10943_v6 = vpop.eup %10942 }
 0x399   :  { %v524_v7 = vmul.f32 %v10943_v6, %v10939_v63 }
 0x39b   :  { %10114 = vmatmul.mubr.msk.f32.vlgmr.msra.gmra.mxu1 %vm501_vm5, %v524_v7 }
 0x39c   :  { %10128 = vmatpush3.msra.mxu1 %v9049_v1  ;;  %10135 = vmatprep.mubr.msk.f32.mxu1 %vm153_vm2, %v11198_v13 }
 0x39d   :  { %10129 = vmatprep.subr.mxu1 %v9048_v8 }
 0x39e   :  { %10130 = vmatpush3.msra.mxu1 %v9048_v8 }
 0x39f   :  { %10131 = vmatprep.subr.mxu1 %v9047_v9 }
 0x3a0   :  { %10132 = vmatpush3.msra.mxu1 %v9047_v9 }
 0x3a1   :  { %10133 = vmatprep.subr.mxu1 %v9046_v10 }
 0x3a2   :  { %10134 = vmatpush3.msra.mxu1 %v9046_v10  ;;  %v1327_v10 = vld [vmem:[%s12849_s8 + $0x18] sm:$0xff] }
 0x3a3   :  { %10136 = vmatmul.mubr.msk.f32.vlgmr.msra.gmra.mxu1 %vm153_vm2, %v11196_v12 }
 0x3a4   :  { %10153 = vmatprep.mubr.msk.f32.mxu1 %vm411_vm3, %v695_v11  ;;  %v1326_v11 = vld [vmem:[%s12849_s8 + $0x10] sm:$0xff] }
 0x45b   :  { %v11303_v14 = vpop.f32.mrf.mxu1 }
 0x45d   :  { %v601_v15 = vpop.f32.mrf.mxu1 }
 0x463   :  { %v10137_v17 = vpop.f32.mrf.mxu1 }
 0x464   :  { %v788_v18 = vadd.f32 %v10137_v17, %v9051_v16  ;;  %v1335_v17 = vld [vmem:[%s12850_s10 + $0x30] sm:$0xff] }
 0x465   :  { %v782_v19 = vpop.f32.mrf.mxu1 }
 0x466   :  { %v783_v20 = vadd.f32 %v9051_v16, %v782_v19  ;;  %10149 = vmatprep.subr.msk.mxu1 %vm411_vm3, %v788_v18  ;;  %v1336_v16 = vld [vmem:[%s12850_s10 + $0x38] sm:$0xff]  ;;  %v1333_v19 = vld [vmem:[%s12850_s10 + $0x20] sm:$0xff] }
 0x467   :  { %10150 = vmatpush3.xpose.msk.msra.mxu1 %vm411_vm3, %v788_v18  ;;  %v1334_v18 = vld [vmem:[%s12850_s10 + $0x28] sm:$0xff] }
 0x468   :  { %10151 = vmatprep.subr.msk.mxu1 %vm411_vm3, %v783_v20 }
 0x46b   :  { %10152 = vmatpush3.xpose.msk.msra.mxu1 %vm411_vm3, %v783_v20 }
 0x46c   :  { %10163 = vmatprep.subr.msk.mxu1 %vm411_vm3, %v9072_v38 }
 0x46e   :  { %10154 = vmatmul.mubr.msk.f32.vlgmr.msra.gmra.mxu1 %vm411_vm3, %v11275_v48  ;;  %v9035_v48 = vld [vmem:[%s12846_s6 + $0xc8] sm:$0xff] }
 0x46f   :  { %10164 = vmatpush3.xpose.msk.msra.mxu1 %vm411_vm3, %v9072_v38  ;;  %v1330_v38 = vld [vmem:[%s12850_s10 + $0x8] sm:$0xff] }
 0x470   :  { %10165 = vmatprep.subr.msk.mxu1 %vm411_vm3, %v9071_v39 }
 0x473   :  { %10166 = vmatpush3.xpose.msk.msra.mxu1 %vm411_vm3, %v9071_v39  ;;  %v1329_v39 = vld [vmem:[%s12850_s10] sm:$0xff] }
 0x474   :  { %10167 = vmatprep.subr.msk.mxu1 %vm411_vm3, %v9070_v40 }
 0x477   :  { %10168 = vmatpush3.xpose.msk.msra.mxu1 %vm411_vm3, %v9070_v40  ;;  %v9091_v40 = vld [vmem:[%s12851_s9] ss:$0 sm:$0xff] }
 0x478   :  { %10169 = vmatprep.subr.msk.mxu1 %vm411_vm3, %v9069_v50 }
 0x47b   :  { %10170 = vmatpush3.xpose.msk.msra.mxu1 %vm411_vm3, %v9069_v50 }
 0x47c   :  { %10185 = vmatprep.subr.mxu1 %v1327_v10 }
 0x52e   :  { %v10155_v21 = vpop.f32.mrf.mxu1 }
 0x52f   :  { %v967_v22 = vmul.f32 0.25, %v10155_v21 }
 0x530   :  { %v957_v23 = vpop.f32.mrf.mxu1 }
 0x531   :  { %v966_v24 = vmul.f32 0.25, %v957_v23  ;;  %v971_v25 = vsel %vm505_vm6, %v967_v22, -inf }
 0x532   :  { %972 = vmax.xlane.f32.xlu1 %v971_v25 }
 0x533   :  { %v968_v26 = vsel %vm501_vm5, %v966_v24, -inf }
 0x534   :  { %969 = vmax.xlane.f32.xlu0 %v968_v26 }
 0x5bb   :  { %v973_v27 = vpop.xlane.xlu1 %972 }
 0x5bc   :  { %v975_v28 = vsub.f32 %v967_v22, %v973_v27  ;;  %v9088_v27 = vld [vmem:[%s12848_s11 + $0x1] ss:$0 sm:$0xff] }
 0x5bd   :  { %v970_v29 = vpop.xlane.xlu0 %969 }
 0x5be   :  { %v978_v30 = vmul.f32 1.442695, %v975_v28  ;;  %v974_v31 = vsub.f32 %v966_v24, %v970_v29 }
 0x5c0   :  { %10944 = vpow2.f32 %v978_v30  ;;  %v976_v32 = vmul.f32 1.442695, %v974_v31 }
 0x5c2   :  { %10946 = vpow2.f32 %v976_v32  ;;  %v9089_v32 = vld [vmem:[%s12848_s11 + $0x2] ss:$0 sm:$0xff] }
 0x5cd   :  { %v10945_v33 = vpop.eup %10944 }
 0x5ce   :  { %v983_v34 = vsel %vm505_vm6, %v10945_v33, 0.0 }
 0x5cf   :  { %v10947_v35 = vpop.eup %10946  ;;  %984 = vadd.xlane.f32.xlu1 %v983_v34 }
 0x5d0   :  { %v980_v36 = vsel %vm501_vm5, %v10947_v35, 0.0 }
 0x5d1   :  { %981 = vadd.xlane.f32.xlu0 %v980_v36  ;;  %v1332_v36 = vld [vmem:[%s12850_s10 + $0x18] sm:$0xff] }
 0x658   :  { %v985_v41 = vpop.xlane.xlu1 %984 }
 0x659   :  { %10948 = vrcp.f32 %v985_v41 }
 0x65a   :  { %v982_v42 = vpop.xlane.xlu0 %981 }
 0x65b   :  { %10950 = vrcp.f32 %v982_v42 }
 0x666   :  { %v10949_v43 = vpop.eup %10948 }
 0x667   :  { %v989_v46 = vmul.f32 %v10949_v43, %v10945_v33 }
 0x668   :  { %v10951_v44 = vpop.eup %10950 }
 0x669   :  { %v988_v45 = vmul.f32 %v10951_v44, %v10947_v35 }
 0x66b   :  { %10160 = vmatprep.mubr.msk.f32.mxu0 %vm501_vm5, %v988_v45 }
 0x66c   :  { %10161 = vmatmul.mubr.msk.f32.vlgmr.msra.gmra.mxu0 %vm501_vm5, %v989_v46 }
 0x66d   :  { %10175 = vmatpush3.xpose.msk.msra.mxu0 %vm411_vm3, %v9037_v37  ;;  %10182 = vmatprep.mubr.msk.f32.mxu0 %vm411_vm3, %v601_v15  ;;  %v1324_v15 = vld [vmem:[%s12849_s8] sm:$0xff]  ;;  %v1331_v37 = vld [vmem:[%s12850_s10 + $0x10] sm:$0xff] }
 0x66e   :  { %10176 = vmatprep.subr.msk.mxu0 %vm411_vm3, %v9036_v47 }
 0x671   :  { %10177 = vmatpush3.xpose.msk.msra.mxu0 %vm411_vm3, %v9036_v47  ;;  %v9094_v47 = vld [vmem:[%s12848_s11 + $0x3] ss:$0 sm:$0xff] }
 0x672   :  { %10178 = vmatprep.subr.msk.mxu0 %vm411_vm3, %v9035_v48 }
 0x675   :  { %10179 = vmatpush3.xpose.msk.msra.mxu0 %vm411_vm3, %v9035_v48 }
 0x676   :  { %10180 = vmatprep.subr.msk.mxu0 %vm411_vm3, %v9034_v49 }
 0x679   :  { %10181 = vmatpush3.xpose.msk.msra.mxu0 %vm411_vm3, %v9034_v49 }
 0x67a   :  { %10196 = vmatprep.subr.mxu0 %v1336_v16 }
 0x67c   :  { %10183 = vmatmul.mubr.msk.f32.vlgmr.msra.gmra.mxu0 %vm411_vm3, %v11303_v14  ;;  %v1325_v14 = vld [vmem:[%s12849_s8 + $0x8] sm:$0xff] }
 0x67d   :  { %10197 = vmatpush3.msra.mxu0 %v1336_v16 }
 0x67e   :  { %10198 = vmatprep.subr.mxu0 %v1335_v17 }
 0x67f   :  { %10199 = vmatpush3.msra.mxu0 %v1335_v17 }
 0x680   :  { %10200 = vmatprep.subr.mxu0 %v1334_v18 }
 0x681   :  { %10201 = vmatpush3.msra.mxu0 %v1334_v18  ;;  %v9099_v18 = vld [vmem:[%s12848_s11 + $0x4] ss:$0 sm:$0xff] }
 0x682   :  { %10202 = vmatprep.subr.mxu0 %v1333_v19 }
 0x683   :  { %10203 = vmatpush3.msra.mxu0 %v1333_v19 }
 0x684   :  { %10204 = vmatprep.subr.mxu0 %v1332_v36 }
 0x685   :  { %10205 = vmatpush3.msra.mxu0 %v1332_v36 }
 0x686   :  { %10206 = vmatprep.subr.mxu0 %v1331_v37 }
 0x687   :  { %10207 = vmatpush3.msra.mxu0 %v1331_v37 }
 0x688   :  { %10208 = vmatprep.subr.mxu0 %v1330_v38 }
 0x689   :  { %10209 = vmatpush3.msra.mxu0 %v1330_v38 }
 0x68a   :  { %10210 = vmatprep.subr.mxu0 %v1329_v39 }
 0x68b   :  { %10211 = vmatpush3.msra.mxu0 %v1329_v39  ;;  %v9114_v39 = vld [vmem:[%s12847_s7 + $0x8] ss:$0 sm:$0xff] }
 0x72c   :  { %v10162_v51 = vpop.f32.mrf.mxu0 }
 0x72e   :  { %v1065_v52 = vpop.f32.mrf.mxu0 }
 0x72f   :  { %10171 = vmatprep.mubr.msk.f32.mxu1 %vm411_vm3, %v1065_v52 }
 0x730   :  { %10172 = vmatmul.mubr.msk.f32.vlgmr.msra.gmra.mxu1 %vm411_vm3, %v10162_v51 }
 0x731   :  { %10186 = vmatpush3.msra.mxu1 %v1327_v10 }
 0x732   :  { %10187 = vmatprep.subr.mxu1 %v1326_v11 }
 0x733   :  { %10188 = vmatpush3.msra.mxu1 %v1326_v11 }
 0x734   :  { %10189 = vmatprep.subr.mxu1 %v1325_v14 }
 0x735   :  { %10190 = vmatpush3.msra.mxu1 %v1325_v14 }
 0x736   :  { %10191 = vmatprep.subr.mxu1 %v1324_v15 }
 0x737   :  { %10192 = vmatpush3.msra.mxu1 %v1324_v15 }
 0x73c   :  { %v10184_v53 = vpop.f32.mrf.mxu0 }
 0x73e   :  { %v1256_v56 = vpop.f32.mrf.mxu0 }
 0x7f0   :  { %v10173_v54 = vpop.f32.mrf.mxu1 }
 0x7f1   :  { %v1262_v55 = vadd.f32 %v10184_v53, %v10173_v54 }
 0x7f2   :  { %v1163_v57 = vpop.f32.mrf.mxu1 }
 0x7f3   :  { %v1266_v59 = vadd.f32 %v11196_v12, %v1262_v55  ;;  %v1257_v60 = vadd.f32 %v1256_v56, %v1163_v57 }
 0x7f5   :  { %v1265_v61 = vadd.f32 %v1257_v60, %v11198_v13  ;;  %v1275_v62 = vadd.f32 %v9085_v58, %v1266_v59 }
 0x7f7   :  { %v1284_v63 = vsel %vm1283_vm7, %v1275_v62, 0.0  ;;  %v1274_v0 = vadd.f32 %v9085_v58, %v1265_v61 }
 0x7f8   :  { %1285 = vadd.xlane.f32.xlu1 %v1284_v63 }
 0x7f9   :  { %v1280_v1 = vsel %vm153_vm2, %v1274_v0, 0.0 }
 0x7fa   :  { %1281 = vadd.xlane.f32.xlu0 %v1280_v1 }
 0x881   :  { %v1286_v2 = vpop.xlane.xlu1 %1285 }
 0x882   :  { %v1289_v3 = vmul.f32 0.03125, %v1286_v2  ;;  %v9104_v2 = vld [vmem:[%s12846_s6 + $0x118] sm:$0xff] }
 0x883   :  { %v1282_v4 = vpop.xlane.xlu0 %1281  ;;  %10215 = vmatprep.subr.mxu1 %v9104_v2 }
 0x884   :  { %v1291_v5 = vsub.f32 %v1275_v62, %v1289_v3  ;;  %v1288_v6 = vmul.f32 0.03125, %v1282_v4  ;;  %v9120_v3 = vld [vmem:[%s12846_s6 + $0x198] sm:$0xff]  ;;  %v9103_v4 = vld [vmem:[%s12846_s6 + $0x110] sm:$0xff] }
 0x885   :  { %10237 = vmatprep.subr.mxu0 %v9120_v3 }
 0x886   :  { %v1290_v7 = vsub.f32 %v1274_v0, %v1288_v6  ;;  %v1293_v8 = vmul.f32 %v1291_v5, %v1291_v5  ;;  %v9102_v6 = vld [vmem:[%s12846_s6 + $0x108] sm:$0xff] }
 0x888   :  { %v1297_v12 = vsel %vm1283_vm7, %v1293_v8, 0.0  ;;  %v1292_v9 = vmul.f32 %v1290_v7, %v1290_v7  ;;  %v9101_v8 = vld [vmem:[%s12846_s6 + $0x100] sm:$0xff] }
 0x889   :  { %1298 = vadd.xlane.f32.xlu1 %v1297_v12  ;;  %v9117_v12 = vld [vmem:[%s12846_s6 + $0x180] sm:$0xff] }
 0x88a   :  { %v1294_v13 = vsel %vm153_vm2, %v1292_v9, 0.0  ;;  %v9112_v9 = vld [vmem:[%s12846_s6 + $0x158] sm:$0xff] }
 0x88b   :  { %1295 = vadd.xlane.f32.xlu0 %v1294_v13 }
 0x912   :  { %v1299_v20 = vpop.xlane.xlu1 %1298 }
 0x913   :  { %v1301_v21 = vmul.f32 0.03125, %v1299_v20 }
 0x914   :  { %v1296_v22 = vpop.xlane.xlu0 %1295 }
 0x915   :  { %v1303_v23 = vadd.f32 1e-05, %v1301_v21  ;;  %v1300_v24 = vmul.f32 0.03125, %v1296_v22 }
 0x917   :  { %10952 = vrsqrt.f32 %v1303_v23  ;;  %v1302_v25 = vadd.f32 1e-05, %v1300_v24  ;;  %v9100_v23 = vld [vmem:[%s12848_s11 + $0x5] ss:$0 sm:$0xff] }
 0x919   :  { %10954 = vrsqrt.f32 %v1302_v25 }
 0x924   :  { %v10953_v26 = vpop.eup %10952 }
 0x925   :  { %v1307_v28 = vmul.f32 %v10953_v26, %v1291_v5  ;;  %v9119_v5 = vld [vmem:[%s12846_s6 + $0x190] sm:$0xff] }
 0x926   :  { %v10955_v29 = vpop.eup %10954 }
 0x927   :  { %v1306_v30 = vmul.f32 %v10955_v29, %v1290_v7  ;;  %v1315_v31 = vmul.f32 %v9088_v27, %v1307_v28  ;;  %v9118_v7 = vld [vmem:[%s12846_s6 + $0x188] sm:$0xff]  ;;  %v9109_v29 = vld [vmem:[%s12846_s6 + $0x140] sm:$0xff] }
 0x928   :  { %v9110_v28 = vld [vmem:[%s12846_s6 + $0x148] sm:$0xff] }
 0x929   :  { %v1314_v33 = vmul.f32 %v9088_v27, %v1306_v30  ;;  %v1323_v35 = vadd.f32 %v9089_v32, %v1315_v31  ;;  %v9111_v27 = vld [vmem:[%s12846_s6 + $0x150] sm:$0xff]  ;;  %v9122_v30 = vld [vmem:[%s12847_s7 + $0xa] ss:$0 sm:$0xff] }
 0x92b   :  { %v1322_v34 = vadd.f32 %v9089_v32, %v1314_v33 }
 0x92d   :  { %10193 = vmatprep.mubr.msk.f32.mxu1 %vm153_vm2, %v1322_v34 }
 0x92e   :  { %10194 = vmatmul.mubr.msk.f32.vlgmr.msra.gmra.mxu1 %vm153_vm2, %v1323_v35 }
 0x92f   :  { %10216 = vmatpush3.msra.mxu1 %v9104_v2 }
 0x930   :  { %10217 = vmatprep.subr.mxu1 %v9103_v4 }
 0x931   :  { %10218 = vmatpush3.msra.mxu1 %v9103_v4 }
 0x932   :  { %10219 = vmatprep.subr.mxu1 %v9102_v6 }
 0x933   :  { %10220 = vmatpush3.msra.mxu1 %v9102_v6  ;;  %v9139_v6 = vld [vmem:[%s12846_s6 + $0x138] sm:$0xff] }
 0x934   :  { %10221 = vmatprep.subr.mxu1 %v9101_v8 }
 0x935   :  { %10222 = vmatpush3.msra.mxu1 %v9101_v8 }
 0x936   :  { %10226 = vmatprep.subr.mxu1 %v9112_v9 }
 0x9ee   :  { %v10195_v41 = vpop.f32.mrf.mxu1 }
 0x9ef   :  { %v1423_v42 = vadd.f32 %v10195_v41, %v9091_v40 }
 0x9f0   :  { %v1417_v43 = vpop.f32.mrf.mxu1 }
 0x9f1   :  { %v1418_v44 = vadd.f32 %v9091_v40, %v1417_v43  ;;  %v1427_v46 = vmax.f32 %v1423_v42, 0.0 }
 0x9f3   :  { %v1426_v45 = vmax.f32 %v1418_v44, 0.0  ;;  %v9147_v44 = vld [vmem:[%s12846_s6 + $0x178] sm:$0xff] }
 0x9f5   :  { %10212 = vmatprep.mubr.msk.f32.mxu0 %vm1434_vm8, %v1426_v45 }
 0x9f6   :  { %10213 = vmatmul.mubr.msk.f32.vlgmr.msra.gmra.mxu0 %vm1434_vm8, %v1427_v46  ;;  %v9146_v46 = vld [vmem:[%s12846_s6 + $0x170] sm:$0xff] }
 0x9f7   :  { %10238 = vmatpush3.msra.mxu0 %v9120_v3 }
 0x9f8   :  { %10239 = vmatprep.subr.mxu0 %v9119_v5 }
 0x9f9   :  { %10240 = vmatpush3.msra.mxu0 %v9119_v5 }
 0x9fa   :  { %10241 = vmatprep.subr.mxu0 %v9118_v7 }
 0x9fb   :  { %10242 = vmatpush3.msra.mxu0 %v9118_v7 }
 0x9fc   :  { %10243 = vmatprep.subr.mxu0 %v9117_v12 }
 0x9fd   :  { %10244 = vmatpush3.msra.mxu0 %v9117_v12 }
 0xab6   :  { %v10214_v48 = vpop.f32.mrf.mxu0 }
 0xab7   :  { %v1513_v49 = vadd.f32 %v10214_v48, %v9094_v47  ;;  %v9144_v48 = vld [vmem:[%s12846_s6 + $0x160] sm:$0xff] }
 0xab8   :  { %v1507_v50 = vpop.f32.mrf.mxu0 }
 0xab9   :  { %v1508_v51 = vadd.f32 %v9094_v47, %v1507_v50  ;;  %v1517_v52 = vadd.f32 %v1513_v49, %v1323_v35  ;;  %v9145_v47 = vld [vmem:[%s12846_s6 + $0x168] sm:$0xff] }
 0xabb   :  { %v1525_v53 = vsel %vm1283_vm7, %v1517_v52, 0.0  ;;  %v1516_v54 = vadd.f32 %v1508_v51, %v1322_v34  ;;  %v9106_v34 = vld [vmem:[%s12847_s7 + $0x6] ss:$0 sm:$0xff] }
 0xabc   :  { %1526 = vadd.xlane.f32.xlu1 %v1525_v53 }
 0xabd   :  { %v1522_v55 = vsel %vm153_vm2, %v1516_v54, 0.0 }
 0xabe   :  { %1523 = vadd.xlane.f32.xlu0 %v1522_v55  ;;  %v9149_v55 = vld [vmem:[%s12847_s7 + $0x9] ss:$0 sm:$0xff] }
 0xb45   :  { %v1527_v56 = vpop.xlane.xlu1 %1526 }
 0xb46   :  { %v1529_v57 = vmul.f32 0.03125, %v1527_v56 }
 0xb47   :  { %v1524_v58 = vpop.xlane.xlu0 %1523 }
 0xb48   :  { %v1531_v59 = vsub.f32 %v1517_v52, %v1529_v57  ;;  %v1528_v60 = vmul.f32 0.03125, %v1524_v58 }
 0xb4a   :  { %v1530_v61 = vsub.f32 %v1516_v54, %v1528_v60  ;;  %v1533_v62 = vmul.f32 %v1531_v59, %v1531_v59 }
 0xb4c   :  { %v1537_v63 = vsel %vm1283_vm7, %v1533_v62, 0.0  ;;  %v1532_v0 = vmul.f32 %v1530_v61, %v1530_v61 }
 0xb4d   :  { %1538 = vadd.xlane.f32.xlu1 %v1537_v63 }
 0xb4e   :  { %v1534_v1 = vsel %vm153_vm2, %v1532_v0, 0.0 }
 0xb4f   :  { %1535 = vadd.xlane.f32.xlu0 %v1534_v1 }
 0xbd6   :  { %v1539_v13 = vpop.xlane.xlu1 %1538 }
 0xbd7   :  { %v1541_v10 = vmul.f32 0.03125, %v1539_v13 }
 0xbd8   :  { %v1536_v11 = vpop.xlane.xlu0 %1535 }
 0xbd9   :  { %v1543_v14 = vadd.f32 1e-05, %v1541_v10  ;;  %v1540_v15 = vmul.f32 0.03125, %v1536_v11  ;;  %v9138_v11 = vld [vmem:[%s12846_s6 + $0x130] sm:$0xff] }
 0xbdb   :  { %10956 = vrsqrt.f32 %v1543_v14  ;;  %v1542_v16 = vadd.f32 1e-05, %v1540_v15  ;;  %v9137_v14 = vld [vmem:[%s12846_s6 + $0x128] sm:$0xff]  ;;  %v9136_v15 = vld [vmem:[%s12846_s6 + $0x120] sm:$0xff] }
 0xbdd   :  { %10958 = vrsqrt.f32 %v1542_v16  ;;  %v9155_v16 = vld [vmem:[%s12846_s6 + $0x1b8] sm:$0xff] }
 0xbe8   :  { %v10957_v17 = vpop.eup %10956 }
 0xbe9   :  { %v1547_v19 = vmul.f32 %v10957_v17, %v1531_v59  ;;  %v9154_v17 = vld [vmem:[%s12846_s6 + $0x1b0] sm:$0xff] }
 0xbea   :  { %v10959_v20 = vpop.eup %10958 }
 0xbeb   :  { %v1546_v21 = vmul.f32 %v10959_v20, %v1530_v61  ;;  %v1555_v22 = vmul.f32 %v9099_v18, %v1547_v19  ;;  %v9152_v19 = vld [vmem:[%s12846_s6 + $0x1a0] sm:$0xff] }
 0xbed   :  { %v1554_v24 = vmul.f32 %v9099_v18, %v1546_v21  ;;  %v11465_v26 = vadd.f32 %v9100_v23, %v1555_v22  ;;  %v9153_v18 = vld [vmem:[%s12846_s6 + $0x1a8] sm:$0xff] }
 0xbef   :  { %v11463_v25 = vadd.f32 %v9100_v23, %v1554_v24  ;;  %v9141_v23 = vld [vmem:[%s12847_s7 + $0x7] ss:$0 sm:$0xff] }
 0xbf1   :  { %10223 = vmatprep.mubr.msk.f32.mxu1 %vm153_vm2, %v11463_v25  ;;  %10245 = vmatprep.mubr.msk.f32.mxu0 %vm153_vm2, %v11463_v25 }
 0xbf2   :  { %10224 = vmatmul.mubr.msk.f32.vlgmr.msra.gmra.mxu1 %vm153_vm2, %v11465_v26  ;;  %10246 = vmatmul.mubr.msk.f32.vlgmr.msra.gmra.mxu0 %vm153_vm2, %v11465_v26 }
 0xbf3   :  { %10227 = vmatpush3.msra.mxu1 %v9112_v9  ;;  %10234 = vmatprep.mubr.msk.f32.mxu1 %vm153_vm2, %v11463_v25 }
 0xbf4   :  { %10228 = vmatprep.subr.mxu1 %v9111_v27 }
 0xbf5   :  { %10229 = vmatpush3.msra.mxu1 %v9111_v27 }
 0xbf6   :  { %10230 = vmatprep.subr.mxu1 %v9110_v28 }
 0xbf7   :  { %10231 = vmatpush3.msra.mxu1 %v9110_v28 }
 0xbf8   :  { %10232 = vmatprep.subr.mxu1 %v9109_v29 }
 0xbf9   :  { %10233 = vmatpush3.msra.mxu1 %v9109_v29  ;;  %v9157_v29 = vld [vmem:[%s12847_s7 + $0xb] ss:$0 sm:$0xff] }
 0xbfa   :  { %10235 = vmatmul.mubr.msk.f32.vlgmr.msra.gmra.mxu1 %vm153_vm2, %v11465_v26 }
 0xcb2   :  { %v10225_v31 = vpop.f32.mrf.mxu1  ;;  %v10247_v32 = vpop.f32.mrf.mxu0 }
 0xcb3   :  { %v1831_v33 = vadd.f32 %v10247_v32, %v9122_v30  ;;  %v1655_v45 = vadd.f32 %v10225_v31, %v9106_v34 }
 0xcb4   :  { %v1649_v35 = vpop.f32.mrf.mxu1  ;;  %v1825_v36 = vpop.f32.mrf.mxu0 }
 0xcb5   :  { %v1650_v37 = vadd.f32 %v9106_v34, %v1649_v35  ;;  %v1826_v38 = vadd.f32 %v9122_v30, %v1825_v36  ;;  %10255 = vmatprep.subr.msk.mxu0 %vm531_vm4, %v1831_v33 }
 0xcb6   :  { %10256 = vmatpush3.msk.msra.mxu0 %vm531_vm4, %v1831_v33 }
 0xcb7   :  { %10252 = vmatprep.mubr.msk.f32.mxu1 %vm411_vm3, %v1650_v37  ;;  %10257 = vmatprep.subr.mxu0 %v1826_v38 }
 0xcb8   :  { %10258 = vmatpush3.msra.mxu0 %v1826_v38 }
 0xcb9   :  { %10262 = vmatprep.subr.mxu0 %v9139_v6 }
 0xcba   :  { %v10236_v40 = vpop.f32.mrf.mxu1 }
 0xcbb   :  { %v1743_v41 = vadd.f32 %v10236_v40, %v9114_v39 }
 0xcbc   :  { %v1737_v42 = vpop.f32.mrf.mxu1 }
 0xcbd   :  { %v1738_v43 = vadd.f32 %v9114_v39, %v1737_v42  ;;  %10248 = vmatprep.subr.msk.mxu1 %vm411_vm3, %v1743_v41 }
 0xcbe   :  { %10249 = vmatpush3.xpose.msk.msra.mxu1 %vm411_vm3, %v1743_v41 }
 0xcbf   :  { %10250 = vmatprep.subr.msk.mxu1 %vm411_vm3, %v1738_v43 }
 0xcc2   :  { %10251 = vmatpush3.xpose.msk.msra.mxu1 %vm411_vm3, %v1738_v43 }
 0xcc3   :  { %10273 = vmatprep.subr.mxu1 %v9147_v44 }
 0xcc5   :  { %10253 = vmatmul.mubr.msk.f32.vlgmr.msra.gmra.mxu1 %vm411_vm3, %v1655_v45 }
 0xcc6   :  { %10274 = vmatpush3.msra.mxu1 %v9147_v44  ;;  %10281 = vmatprep.mubr.msk.f32.mxu1 %vm153_vm2, %v11463_v25 }
 0xcc7   :  { %10275 = vmatprep.subr.mxu1 %v9146_v46 }
 0xcc8   :  { %10276 = vmatpush3.msra.mxu1 %v9146_v46 }
 0xcc9   :  { %10277 = vmatprep.subr.mxu1 %v9145_v47 }
 0xcca   :  { %10278 = vmatpush3.msra.mxu1 %v9145_v47 }
 0xccb   :  { %10279 = vmatprep.subr.mxu1 %v9144_v48 }
 0xccc   :  { %10280 = vmatpush3.msra.mxu1 %v9144_v48 }
 0xccd   :  { %10282 = vmatmul.mubr.msk.f32.vlgmr.msra.gmra.mxu1 %vm153_vm2, %v11465_v26 }
 0xd85   :  { %v10254_v49 = vpop.f32.mrf.mxu1 }
 0xd86   :  { %v1922_v50 = vmul.f32 0.25, %v10254_v49 }
 0xd87   :  { %v1912_v51 = vpop.f32.mrf.mxu1 }
 0xd88   :  { %v1921_v52 = vmul.f32 0.25, %v1912_v51  ;;  %v1926_v53 = vsel %vm505_vm6, %v1922_v50, -inf  ;;  %v9170_v51 = vld [vmem:[%s12846_s6 + $0x1f8] sm:$0xff] }
 0xd89   :  { %1927 = vmax.xlane.f32.xlu1 %v1926_v53  ;;  %v9168_v53 = vld [vmem:[%s12846_s6 + $0x1e8] sm:$0xff] }
 0xd8a   :  { %v1923_v54 = vsel %vm501_vm5, %v1921_v52, -inf }
 0xd8b   :  { %1924 = vmax.xlane.f32.xlu0 %v1923_v54 }
 0xd8d   :  { %v10283_v56 = vpop.f32.mrf.mxu1 }
 0xd8e   :  { %v2207_v57 = vadd.f32 %v10283_v56, %v9149_v55 }
 0xd8f   :  { %v2201_v58 = vpop.f32.mrf.mxu1 }
 0xd90   :  { %v2202_v59 = vadd.f32 %v9149_v55, %v2201_v58  ;;  %10295 = vmatprep.subr.msk.mxu1 %vm411_vm3, %v2207_v57 }
 0xd91   :  { %10296 = vmatpush3.xpose.msk.msra.mxu1 %vm411_vm3, %v2207_v57 }
 0xd92   :  { %10297 = vmatprep.subr.msk.mxu1 %vm411_vm3, %v2202_v59 }
 0xd95   :  { %10298 = vmatpush3.xpose.msk.msra.mxu1 %vm411_vm3, %v2202_v59 }
 0xd96   :  { %10309 = vmatprep.subr.msk.mxu1 %vm411_vm3, %v9170_v51 }
 0xe12   :  { %v1928_v60 = vpop.xlane.xlu1 %1927 }
 0xe13   :  { %v1930_v61 = vsub.f32 %v1922_v50, %v1928_v60  ;;  %v9135_v50 = vld [vmem:[%s12846_s6 + $0x1d8] sm:$0xff]  ;;  %v9134_v60 = vld [vmem:[%s12846_s6 + $0x1d0] sm:$0xff] }
 0xe14   :  { %v1925_v62 = vpop.xlane.xlu0 %1924 }
 0xe15   :  { %v1933_v63 = vmul.f32 1.442695, %v1930_v61  ;;  %v1929_v0 = vsub.f32 %v1921_v52, %v1925_v62  ;;  %v9169_v52 = vld [vmem:[%s12846_s6 + $0x1f0] sm:$0xff]  ;;  %v9133_v61 = vld [vmem:[%s12846_s6 + $0x1c8] sm:$0xff]  ;;  %v9132_v62 = vld [vmem:[%s12846_s6 + $0x1c0] sm:$0xff] }
 0xe17   :  { %10960 = vpow2.f32 %v1933_v63  ;;  %v1931_v1 = vmul.f32 1.442695, %v1929_v0  ;;  %v9167_v63 = vld [vmem:[%s12846_s6 + $0x1e0] sm:$0xff] }
 0xe19   :  { %10962 = vpow2.f32 %v1931_v1 }
 0xe24   :  { %v10961_v2 = vpop.eup %10960 }
 0xe25   :  { %v1938_v3 = vsel %vm505_vm6, %v10961_v2, 0.0 }
 0xe26   :  { %v10963_v4 = vpop.eup %10962  ;;  %1939 = vadd.xlane.f32.xlu1 %v1938_v3 }
 0xe27   :  { %v1935_v5 = vsel %vm501_vm5, %v10963_v4, 0.0 }
 0xe28   :  { %1936 = vadd.xlane.f32.xlu0 %v1935_v5 }
 0xeaf   :  { %v1940_v7 = vpop.xlane.xlu1 %1939 }
 0xeb0   :  { %10964 = vrcp.f32 %v1940_v7  ;;  %v9184_v7 = vld [vmem:[%s12848_s11 + $0x6] ss:$0 sm:$0xff] }
 0xeb1   :  { %v1937_v8 = vpop.xlane.xlu0 %1936 }
 0xeb2   :  { %10966 = vrcp.f32 %v1937_v8 }
 0xebd   :  { %v10965_v12 = vpop.eup %10964 }
 0xebe   :  { %v1944_v10 = vmul.f32 %v10965_v12, %v10961_v2 }
 0xebf   :  { %v10967_v9 = vpop.eup %10966 }
 0xec0   :  { %v1943_v13 = vmul.f32 %v10967_v9, %v10963_v4 }
 0xec2   :  { %10259 = vmatprep.mubr.msk.f32.mxu0 %vm501_vm5, %v1943_v13 }
 0xec3   :  { %10260 = vmatmul.mubr.msk.f32.vlgmr.msra.gmra.mxu0 %vm501_vm5, %v1944_v10 }
 0xec4   :  { %10263 = vmatpush3.msra.mxu0 %v9139_v6  ;;  %10270 = vmatprep.mubr.msk.f32.mxu0 %vm153_vm2, %v11463_v25 }
 0xec5   :  { %10264 = vmatprep.subr.mxu0 %v9138_v11 }
 0xec6   :  { %10265 = vmatpush3.msra.mxu0 %v9138_v11 }
 0xec7   :  { %10266 = vmatprep.subr.mxu0 %v9137_v14 }
 0xec8   :  { %10267 = vmatpush3.msra.mxu0 %v9137_v14 }
 0xec9   :  { %10268 = vmatprep.subr.mxu0 %v9136_v15 }
 0xeca   :  { %10269 = vmatpush3.msra.mxu0 %v9136_v15 }
 0xecb   :  { %10271 = vmatmul.mubr.msk.f32.vlgmr.msra.gmra.mxu0 %vm153_vm2, %v11465_v26  ;;  %10284 = vmatprep.subr.mxu0 %v9155_v16 }
 0xecc   :  { %10285 = vmatpush3.msra.mxu0 %v9155_v16  ;;  %10292 = vmatprep.mubr.msk.f32.mxu0 %vm153_vm2, %v11463_v25 }
 0xecd   :  { %10286 = vmatprep.subr.mxu0 %v9154_v17 }
 0xece   :  { %10287 = vmatpush3.msra.mxu0 %v9154_v17 }
 0xecf   :  { %10288 = vmatprep.subr.mxu0 %v9153_v18 }
 0xed0   :  { %10289 = vmatpush3.msra.mxu0 %v9153_v18 }
 0xed1   :  { %10290 = vmatprep.subr.mxu0 %v9152_v19 }
 0xed2   :  { %10291 = vmatpush3.msra.mxu0 %v9152_v19 }
 0xed3   :  { %10293 = vmatmul.mubr.msk.f32.vlgmr.msra.gmra.mxu0 %vm153_vm2, %v11465_v26 }
 0xf83   :  { %v11566_v20 = vpop.f32.mrf.mxu0 }
 0xf85   :  { %v2020_v21 = vpop.f32.mrf.mxu0 }
 0xf8b   :  { %v10272_v22 = vpop.f32.mrf.mxu0 }
 0xf8c   :  { %v2119_v28 = vadd.f32 %v10272_v22, %v9141_v23 }
 0xf8d   :  { %v2113_v24 = vpop.f32.mrf.mxu0 }
 0xf8e   :  { %v2114_v27 = vadd.f32 %v9141_v23, %v2113_v24  ;;  %v9192_v23 = vld [vmem:[%s12849_s8 + $0x38] sm:$0xff]  ;;  %v9191_v24 = vld [vmem:[%s12849_s8 + $0x30] sm:$0xff] }
 0xf90   :  { %10299 = vmatprep.mubr.msk.f32.mxu1 %vm411_vm3, %v2114_v27  ;;  %v9190_v27 = vld [vmem:[%s12849_s8 + $0x28] sm:$0xff] }
 0xf91   :  { %10300 = vmatmul.mubr.msk.f32.vlgmr.msra.gmra.mxu1 %vm411_vm3, %v2119_v28  ;;  %v9189_v28 = vld [vmem:[%s12849_s8 + $0x20] sm:$0xff] }
 0xf92   :  { %10310 = vmatpush3.xpose.msk.msra.mxu1 %vm411_vm3, %v9170_v51  ;;  %v9195_v51 = vld [vmem:[%s12850_s10 + $0x48] sm:$0xff] }
 0xf93   :  { %v10294_v30 = vpop.f32.mrf.mxu0  ;;  %10311 = vmatprep.subr.msk.mxu1 %vm411_vm3, %v9169_v52 }
 0xf94   :  { %v2295_v31 = vadd.f32 %v10294_v30, %v9157_v29  ;;  %v9200_v30 = vld [vmem:[%s12850_s10 + $0x70] sm:$0xff] }
 0xf95   :  { %v2289_v32 = vpop.f32.mrf.mxu0 }
 0xf96   :  { %v2290_v33 = vadd.f32 %v9157_v29, %v2289_v32  ;;  %10302 = vmatprep.subr.msk.mxu0 %vm531_vm4, %v2295_v31  ;;  %10312 = vmatpush3.xpose.msk.msra.mxu1 %vm411_vm3, %v9169_v52  ;;  %v9201_v29 = vld [vmem:[%s12850_s10 + $0x78] sm:$0xff]  ;;  %v9198_v32 = vld [vmem:[%s12850_s10 + $0x60] sm:$0xff] }
 0xf97   :  { %10303 = vmatpush3.msk.msra.mxu0 %vm531_vm4, %v2295_v31  ;;  %10313 = vmatprep.subr.msk.mxu1 %vm411_vm3, %v9168_v53  ;;  %v9199_v31 = vld [vmem:[%s12850_s10 + $0x68] sm:$0xff]  ;;  %v9194_v52 = vld [vmem:[%s12850_s10 + $0x40] sm:$0xff]  ;;  %vm3589_vm4 = vcmask 64512  }
 0xf98   :  { %10304 = vmatprep.subr.mxu0 %v2290_v33 }
 0xf99   :  { %10305 = vmatpush3.msra.mxu0 %v2290_v33 }
 0xf9a   :  { %10320 = vmatprep.subr.msk.mxu0 %vm411_vm3, %v9135_v50  ;;  %10314 = vmatpush3.xpose.msk.msra.mxu1 %vm411_vm3, %v9168_v53  ;;  %v9203_v53 = vld [vmem:[%s12851_s9 + $0x1] ss:$0 sm:$0xff] }
 0xf9b   :  { %10315 = vmatprep.subr.msk.mxu1 %vm411_vm3, %v9167_v63 }
 0xf9e   :  { %10316 = vmatpush3.xpose.msk.msra.mxu1 %vm411_vm3, %v9167_v63 }
 0xf9f   :  { %10331 = vmatprep.subr.mxu1 %v9192_v23 }
0x1051   :  { %v10301_v34 = vpop.f32.mrf.mxu1 }
0x1052   :  { %v2386_v35 = vmul.f32 0.25, %v10301_v34 }
0x1053   :  { %v2376_v36 = vpop.f32.mrf.mxu1 }
0x1054   :  { %v2385_v37 = vmul.f32 0.25, %v2376_v36  ;;  %v2390_v38 = vsel %vm505_vm6, %v2386_v35, -inf }
0x1055   :  { %2391 = vmax.xlane.f32.xlu1 %v2390_v38 }
0x1056   :  { %v2387_v39 = vsel %vm501_vm5, %v2385_v37, -inf }
0x1057   :  { %2388 = vmax.xlane.f32.xlu0 %v2387_v39 }
0x10de   :  { %v2392_v40 = vpop.xlane.xlu1 %2391 }
0x10df   :  { %v2394_v41 = vsub.f32 %v2386_v35, %v2392_v40  ;;  %v9187_v40 = vld [vmem:[%s12848_s11 + $0x7] ss:$0 sm:$0xff] }
0x10e0   :  { %v2389_v42 = vpop.xlane.xlu0 %2388 }
0x10e1   :  { %v2397_v43 = vmul.f32 1.442695, %v2394_v41  ;;  %v2393_v44 = vsub.f32 %v2385_v37, %v2389_v42 }
0x10e3   :  { %10968 = vpow2.f32 %v2397_v43  ;;  %v2395_v45 = vmul.f32 1.442695, %v2393_v44 }
0x10e5   :  { %10970 = vpow2.f32 %v2395_v45  ;;  %v9188_v45 = vld [vmem:[%s12848_s11 + $0x8] ss:$0 sm:$0xff] }
0x10f0   :  { %v10969_v46 = vpop.eup %10968 }
0x10f1   :  { %v2402_v47 = vsel %vm505_vm6, %v10969_v46, 0.0  ;;  %vm5056_vm6 = vcmask 1043456  }
0x10f2   :  { %v10971_v48 = vpop.eup %10970  ;;  %2403 = vadd.xlane.f32.xlu1 %v2402_v47 }
0x10f3   :  { %v2399_v49 = vsel %vm501_vm5, %v10971_v48, 0.0 }
0x10f4   :  { %2400 = vadd.xlane.f32.xlu0 %v2399_v49  ;;  %v9197_v49 = vld [vmem:[%s12850_s10 + $0x58] sm:$0xff] }
0x117b   :  { %v2404_v54 = vpop.xlane.xlu1 %2403 }
0x117c   :  { %10972 = vrcp.f32 %v2404_v54 }
0x117d   :  { %v2401_v55 = vpop.xlane.xlu0 %2400 }
0x117e   :  { %10974 = vrcp.f32 %v2401_v55 }
0x1189   :  { %v10973_v56 = vpop.eup %10972 }
0x118a   :  { %v2408_v59 = vmul.f32 %v10973_v56, %v10969_v46 }
0x118b   :  { %v10975_v57 = vpop.eup %10974 }
0x118c   :  { %v2407_v58 = vmul.f32 %v10975_v57, %v10971_v48 }
0x118e   :  { %10306 = vmatprep.mubr.msk.f32.mxu0 %vm501_vm5, %v2407_v58 }
0x118f   :  { %10307 = vmatmul.mubr.msk.f32.vlgmr.msra.gmra.mxu0 %vm501_vm5, %v2408_v59 }
0x1190   :  { %10321 = vmatpush3.xpose.msk.msra.mxu0 %vm411_vm3, %v9135_v50  ;;  %10328 = vmatprep.mubr.msk.f32.mxu0 %vm411_vm3, %v2020_v21  ;;  %v9196_v50 = vld [vmem:[%s12850_s10 + $0x50] sm:$0xff] }
0x1191   :  { %10322 = vmatprep.subr.msk.mxu0 %vm411_vm3, %v9134_v60 }
0x1194   :  { %10323 = vmatpush3.xpose.msk.msra.mxu0 %vm411_vm3, %v9134_v60  ;;  %v3135_v60 = vld [vmem:[%s12852_s5] sm:$0x1f] }
0x1195   :  { %10324 = vmatprep.subr.msk.mxu0 %vm411_vm3, %v9133_v61 }
0x1198   :  { %10325 = vmatpush3.xpose.msk.msra.mxu0 %vm411_vm3, %v9133_v61  ;;  %v11693_v61 = vld [vmem:[%s12853_s1] sm:$0xff] }
0x1199   :  { %10326 = vmatprep.subr.msk.mxu0 %vm411_vm3, %v9132_v62  ;;  %vm3227_vm13 = vcmp.ne.f32.partialorder %v11693_v61, 1e-09 }
0x119c   :  { %10327 = vmatpush3.xpose.msk.msra.mxu0 %vm411_vm3, %v9132_v62  ;;  %v11698_v62 = vld [vmem:[%s12853_s1 + $0x8] sm:$0xff] }
0x119d   :  { %10342 = vmatprep.subr.mxu0 %v9201_v29  ;;  %vm3234_vm12 = vcmp.ne.f32.partialorder %v11698_v62, 1e-09 }
0x119f   :  { %10329 = vmatmul.mubr.msk.f32.vlgmr.msra.gmra.mxu0 %vm411_vm3, %v11566_v20 }
0x11a0   :  { %10343 = vmatpush3.msra.mxu0 %v9201_v29  ;;  %v9211_v29 = vld [vmem:[%s12848_s11 + $0xa] ss:$0 sm:$0xff] }
0x11a1   :  { %10344 = vmatprep.subr.mxu0 %v9200_v30 }
0x11a2   :  { %10345 = vmatpush3.msra.mxu0 %v9200_v30 }
0x11a3   :  { %10346 = vmatprep.subr.mxu0 %v9199_v31 }
0x11a4   :  { %10347 = vmatpush3.msra.mxu0 %v9199_v31  ;;  %v9212_v31 = vld [vmem:[%s12848_s11 + $0xb] ss:$0 sm:$0xff] }
0x11a5   :  { %10348 = vmatprep.subr.mxu0 %v9198_v32 }
0x11a6   :  { %10349 = vmatpush3.msra.mxu0 %v9198_v32 }
0x11a7   :  { %10350 = vmatprep.subr.mxu0 %v9197_v49 }
0x11a8   :  { %10351 = vmatpush3.msra.mxu0 %v9197_v49 }
0x11a9   :  { %10352 = vmatprep.subr.mxu0 %v9196_v50 }
0x11aa   :  { %10353 = vmatpush3.msra.mxu0 %v9196_v50 }
0x11ab   :  { %10354 = vmatprep.subr.mxu0 %v9195_v51 }
0x11ac   :  { %10355 = vmatpush3.msra.mxu0 %v9195_v51 }
0x11ad   :  { %10356 = vmatprep.subr.mxu0 %v9194_v52 }
0x11ae   :  { %10357 = vmatpush3.msra.mxu0 %v9194_v52  ;;  %v9218_v52 = vld [vmem:[%s12855_s13 + $0x1] sm:$0x1] }
0x11af   :  { %10383 = vmatprep.subr.msk.mxu0 %vm3143_vm9, %v3135_v60 }
0x124f   :  { %v10308_v0 = vpop.f32.mrf.mxu0 }
0x1251   :  { %v2484_v1 = vpop.f32.mrf.mxu0 }
0x1252   :  { %10317 = vmatprep.mubr.msk.f32.mxu1 %vm411_vm3, %v2484_v1 }
0x1253   :  { %10318 = vmatmul.mubr.msk.f32.vlgmr.msra.gmra.mxu1 %vm411_vm3, %v10308_v0  ;;  %v9206_v0 = vld [vmem:[%s12848_s11 + $0x9] ss:$0 sm:$0xff] }
0x1254   :  { %10332 = vmatpush3.msra.mxu1 %v9192_v23 }
0x1255   :  { %10333 = vmatprep.subr.mxu1 %v9191_v24 }
0x1256   :  { %10334 = vmatpush3.msra.mxu1 %v9191_v24 }
0x1257   :  { %10335 = vmatprep.subr.mxu1 %v9190_v27 }
0x1258   :  { %10336 = vmatpush3.msra.mxu1 %v9190_v27 }
0x1259   :  { %10337 = vmatprep.subr.mxu1 %v9189_v28 }
0x125a   :  { %10338 = vmatpush3.msra.mxu1 %v9189_v28 }
0x125f   :  { %v10330_v2 = vpop.f32.mrf.mxu0 }
0x1261   :  { %v2675_v5 = vpop.f32.mrf.mxu0 }
0x1313   :  { %v10319_v3 = vpop.f32.mrf.mxu1 }
0x1314   :  { %v2681_v4 = vadd.f32 %v10330_v2, %v10319_v3 }
0x1315   :  { %v2582_v6 = vpop.f32.mrf.mxu1 }
0x1316   :  { %v2685_v8 = vadd.f32 %v2681_v4, %v11465_v26  ;;  %v2676_v12 = vadd.f32 %v2675_v5, %v2582_v6 }
0x1318   :  { %v2684_v9 = vadd.f32 %v2676_v12, %v11463_v25  ;;  %v2695_v13 = vadd.f32 %v9184_v7, %v2685_v8 }
0x131a   :  { %v2703_v10 = vsel %vm1283_vm7, %v2695_v13, 0.0  ;;  %v2694_v11 = vadd.f32 %v9184_v7, %v2684_v9  ;;  %v11072_v9 = vmov 0.0  }
0x131b   :  { %2704 = vadd.xlane.f32.xlu1 %v2703_v10  ;;  %10361 = vmatprep.subr.mxu1 %v11072_v9  ;;  %v2969_v10 = vld [vmem:[%s12854_s12 + $0x10] sm:$0xff] }
0x131c   :  { %v2700_v14 = vsel %vm153_vm2, %v2694_v11, 0.0 }
0x131d   :  { %2701 = vadd.xlane.f32.xlu0 %v2700_v14  ;;  %v2968_v14 = vld [vmem:[%s12854_s12 + $0x8] sm:$0xff] }
0x13a4   :  { %v2705_v15 = vpop.xlane.xlu1 %2704 }
0x13a5   :  { %v2707_v16 = vmul.f32 0.03125, %v2705_v15  ;;  %v9225_v15 = vld [vmem:[%s12846_s6 + $0x210] sm:$0xff] }
0x13a6   :  { %v2702_v17 = vpop.xlane.xlu0 %2701 }
0x13a7   :  { %v2709_v18 = vsub.f32 %v2695_v13, %v2707_v16  ;;  %v2706_v19 = vmul.f32 0.03125, %v2702_v17  ;;  %v2970_v13 = vld [vmem:[%s12854_s12 + $0x18] sm:$0xff]  ;;  %v2967_v16 = vld [vmem:[%s12854_s12] sm:$0xff]  ;;  %v9224_v17 = vld [vmem:[%s12846_s6 + $0x208] sm:$0xff] }
0x13a9   :  { %v2708_v20 = vsub.f32 %v2694_v11, %v2706_v19  ;;  %v2711_v21 = vmul.f32 %v2709_v18, %v2709_v18  ;;  %v9226_v11 = vld [vmem:[%s12846_s6 + $0x218] sm:$0xff]  ;;  %v9223_v19 = vld [vmem:[%s12846_s6 + $0x200] sm:$0xff] }
0x13ab   :  { %v2715_v26 = vsel %vm1283_vm7, %v2711_v21, 0.0  ;;  %v2710_v22 = vmul.f32 %v2708_v20, %v2708_v20  ;;  %v9242_v21 = vld [vmem:[%s12846_s6 + $0x298] sm:$0xff]  ;;  %vm5027_vm7 = vcmask 31744  }
0x13ac   :  { %2716 = vadd.xlane.f32.xlu1 %v2715_v26  ;;  %v9241_v26 = vld [vmem:[%s12846_s6 + $0x290] sm:$0xff] }
0x13ad   :  { %v2712_v25 = vsel %vm153_vm2, %v2710_v22, 0.0  ;;  %v9240_v22 = vld [vmem:[%s12846_s6 + $0x288] sm:$0xff] }
0x13ae   :  { %2713 = vadd.xlane.f32.xlu0 %v2712_v25  ;;  %v9239_v25 = vld [vmem:[%s12846_s6 + $0x280] sm:$0xff] }
0x1435   :  { %v2717_v33 = vpop.xlane.xlu1 %2716 }
0x1436   :  { %v2719_v34 = vmul.f32 0.03125, %v2717_v33 }
0x1437   :  { %v2714_v35 = vpop.xlane.xlu0 %2713 }
0x1438   :  { %v2721_v36 = vadd.f32 1e-05, %v2719_v34  ;;  %v2718_v37 = vmul.f32 0.03125, %v2714_v35  ;;  %v9217_v34 = vld [vmem:[%s12854_s12 + $0x38] sm:$0xff]  ;;  %v9216_v35 = vld [vmem:[%s12854_s12 + $0x30] sm:$0xff] }
0x143a   :  { %10976 = vrsqrt.f32 %v2721_v36  ;;  %v2720_v38 = vadd.f32 1e-05, %v2718_v37  ;;  %v9215_v36 = vld [vmem:[%s12854_s12 + $0x28] sm:$0xff]  ;;  %v9214_v37 = vld [vmem:[%s12854_s12 + $0x20] sm:$0xff] }
0x143c   :  { %10978 = vrsqrt.f32 %v2720_v38  ;;  %v9234_v38 = vld [vmem:[%s12846_s6 + $0x258] sm:$0xff] }
0x1447   :  { %v10977_v39 = vpop.eup %10976 }
0x1448   :  { %v2725_v41 = vmul.f32 %v10977_v39, %v2709_v18  ;;  %v9233_v39 = vld [vmem:[%s12846_s6 + $0x250] sm:$0xff] }
0x1449   :  { %v10979_v42 = vpop.eup %10978 }
0x144a   :  { %v2724_v43 = vmul.f32 %v10979_v42, %v2708_v20  ;;  %v2733_v44 = vmul.f32 %v9187_v40, %v2725_v41  ;;  %v9231_v41 = vld [vmem:[%s12846_s6 + $0x240] sm:$0xff] }
0x144c   :  { %v2732_v46 = vmul.f32 %v9187_v40, %v2724_v43  ;;  %v2741_v48 = vadd.f32 %v9188_v45, %v2733_v44  ;;  %v9232_v40 = vld [vmem:[%s12846_s6 + $0x248] sm:$0xff] }
0x144e   :  { %v2740_v47 = vadd.f32 %v9188_v45, %v2732_v46  ;;  %v9244_v45 = vld [vmem:[%s12847_s7 + $0x10] ss:$0 sm:$0xff] }
0x1450   :  { %10339 = vmatprep.mubr.msk.f32.mxu1 %vm153_vm2, %v2740_v47 }
0x1451   :  { %10340 = vmatmul.mubr.msk.f32.vlgmr.msra.gmra.mxu1 %vm153_vm2, %v2741_v48 }
0x1452   :  { %10362 = vmatpush3.msra.mxu1 %v2970_v13  ;;  %10369 = vmatprep.mubr.msk.f32.mxu1 %vm11073_vm11, %v11072_v9 }
0x1453   :  { %10363 = vmatprep.subr.mxu1 %v11072_v9 }
0x1454   :  { %10364 = vmatpush3.msra.mxu1 %v2969_v10  ;;  %v9276_v10 = vld [vmem:[%s12846_s6 + $0x2b8] sm:$0xff] }
0x1455   :  { %10365 = vmatprep.subr.mxu1 %v11072_v9 }
0x1456   :  { %10366 = vmatpush3.msra.mxu1 %v2968_v14  ;;  %v9275_v14 = vld [vmem:[%s12846_s6 + $0x2b0] sm:$0xff] }
0x1457   :  { %10367 = vmatprep.subr.mxu1 %v11072_v9 }
0x1458   :  { %10368 = vmatpush3.msra.mxu1 %v2967_v16  ;;  %v9274_v16 = vld [vmem:[%s12846_s6 + $0x2a8] sm:$0xff] }
0x1459   :  { %10372 = vmatprep.subr.mxu1 %v11072_v9 }
0x1511   :  { %v10341_v54 = vpop.f32.mrf.mxu1 }
0x1512   :  { %v2844_v55 = vadd.f32 %v10341_v54, %v9203_v53 }
0x1513   :  { %v2838_v56 = vpop.f32.mrf.mxu1 }
0x1514   :  { %v2839_v57 = vadd.f32 %v9203_v53, %v2838_v56  ;;  %v2848_v59 = vmax.f32 %v2844_v55, 0.0 }
0x1516   :  { %v2847_v58 = vmax.f32 %v2839_v57, 0.0  ;;  %v9236_v57 = vld [vmem:[%s12847_s7 + $0xe] ss:$0 sm:$0xff] }
0x1518   :  { %10358 = vmatprep.mubr.msk.f32.mxu0 %vm1434_vm8, %v2847_v58 }
0x1519   :  { %10359 = vmatmul.mubr.msk.f32.vlgmr.msra.gmra.mxu0 %vm1434_vm8, %v2848_v59  ;;  %v9228_v59 = vld [vmem:[%s12847_s7 + $0xc] ss:$0 sm:$0xff] }
0x151a   :  { %10385 = vmatprep.mubr.msk.f32.mxu0 %vm3136_vm10, %v11693_v61  ;;  %10384 = vmatpush3.msk.msra.mxu0 %vm3143_vm9, %v3135_v60  ;;  %v9260_v61 = vld [vmem:[%s12846_s6 + $0x238] sm:$0xff] }
0x151b   :  { %10388 = vmatprep.subr.mxu0 %v9226_v11 }
0x151d   :  { %10386 = vmatmul.mubr.msk.f32.vlgmr.msra.gmra.mxu0 %vm3136_vm10, %v11698_v62 }
0x151e   :  { %10389 = vmatpush3.msra.mxu0 %v9226_v11 }
0x151f   :  { %10390 = vmatprep.subr.mxu0 %v9225_v15 }
0x1520   :  { %10391 = vmatpush3.msra.mxu0 %v9225_v15 }
0x1521   :  { %10392 = vmatprep.subr.mxu0 %v9224_v17 }
0x1522   :  { %10393 = vmatpush3.msra.mxu0 %v9224_v17  ;;  %v9273_v17 = vld [vmem:[%s12846_s6 + $0x2a0] sm:$0xff] }
0x1523   :  { %10394 = vmatprep.subr.mxu0 %v9223_v19 }
0x1524   :  { %10395 = vmatpush3.msra.mxu0 %v9223_v19  ;;  %v3128_v19 = vlaneseq }
0x1525   :  { %10410 = vmatprep.subr.mxu0 %v9242_v21 }
0x15d9   :  { %v10360_v63 = vpop.f32.mrf.mxu0 }
0x15db   :  { %v2927_v1 = vpop.f32.mrf.mxu0 }
0x15dc   :  { %v2928_v2 = vadd.f32 %v9206_v0, %v2927_v1 }
0x15dd   :  { %v11732_v18 = vpop.f32.mrf.mxu0 }
0x15de   :  { %v2935_v3 = vadd.f32 %v2928_v2, %v2740_v47  ;;  %v11074_v47 = vmov 0   ;;  %v9259_v2 = vld [vmem:[%s12846_s6 + $0x230] sm:$0xff] }
0x15df   :  { %v11740_v20 = vpop.f32.mrf.mxu0  ;;  %10935 = vset.pattern.permute.xlu1 %v11074_v47  ;;  %v3235_v48 = vsel %vm3234_vm12, 1, %v11074_v47  ;;  %10934 = vset.pattern.permute.xlu0 %v11074_v47  ;;  %v3228_v49 = vsel %vm3227_vm13, 1, %v11074_v47 }
0x15e0   :  { %v2940_v4 = vsel %vm153_vm2, %v2935_v3, 0.0  ;;  %10396 = vmatprep.mubr.msk.f32.mxu0 %vm153_vm2, %v11740_v20 }
0x15e1   :  { %2941 = vadd.xlane.f32.xlu0 %v2940_v4  ;;  %10397 = vmatmul.mubr.msk.f32.vlgmr.msra.gmra.mxu0 %vm153_vm2, %v11732_v18 }
0x15e2   :  { %10411 = vmatpush3.msra.mxu0 %v9242_v21  ;;  %10418 = vmatprep.mubr.msk.f32.mxu0 %vm153_vm2, %v11740_v20  ;;  %v3225_v21 = vand.u32 127, %v3128_v19 }
0x15e3   :  { %10412 = vmatprep.subr.mxu0 %v9241_v26 }
0x15e4   :  { %10413 = vmatpush3.msra.mxu0 %v9241_v26 }
0x15e5   :  { %10414 = vmatprep.subr.mxu0 %v9240_v22 }
0x15e6   :  { %10415 = vmatpush3.msra.mxu0 %v9240_v22  ;;  %v11876_v22 = vshrl.u32 %v3128_v19, 7 }
0x15e7   :  { %10416 = vmatprep.subr.mxu0 %v9239_v25 }
0x15e8   :  { %10417 = vmatpush3.msra.mxu0 %v9239_v25  ;;  %vm3226_vm14 = vcmp.le.s32.totalorder %v3225_v21, %v11876_v22 }
0x15e9   :  { %10419 = vmatmul.mubr.msk.f32.vlgmr.msra.gmra.mxu0 %vm153_vm2, %v11732_v18  ;;  %10431 = vmatprep.subr.mxu0 %v11072_v9 }
0x15ea   :  { %10433 = vmatprep.mubr.msk.f32.mxu0 %vm11073_vm11, %v11072_v9 }
0x15f7   :  { %3230 = vperm.xlu0 %10934, %v3228_v49  }
0x166a   :  { %v2942_v5 = vpop.xlane.xlu0 %2941 }
0x166b   :  { %v2943_v6 = vmul.f32 0.03125, %v2942_v5  ;;  %v9258_v5 = vld [vmem:[%s12846_s6 + $0x228] sm:$0xff] }
0x166d   :  { %v2944_v7 = vsub.f32 %v2935_v3, %v2943_v6  ;;  %v2971_v6 = vld [vmem:[%s12855_s13] sm:$0x1] }
0x166f   :  { %v2945_v8 = vmul.f32 %v2944_v7, %v2944_v7 }
0x1671   :  { %v2946_v12 = vsel %vm153_vm2, %v2945_v8, 0.0  ;;  %v9257_v8 = vld [vmem:[%s12846_s6 + $0x220] sm:$0xff] }
0x1672   :  { %2947 = vadd.xlane.f32.xlu1 %v2946_v12  ;;  %v3231_v25 = vpop.permute.xlu0 %3230 }
0x1673   :  { %vm3232_vm0 = vcmp.eq.s32.totalorder %v3231_v25, 1 }
0x1674   :  { %vm11883_vm5 = vmand %vm3232_vm0, %vm3226_vm14 }
0x1683   :  { %3237 = vperm.xlu1 %10935, %v3235_v48  }
0x16a1   :  { %v10398_v42 = vpop.f32.mrf.mxu0 }
0x16a2   :  { %v3332_v0 = vadd.f32 %v10398_v42, %v9228_v59 }
0x16a3   :  { %v3326_v43 = vpop.f32.mrf.mxu0 }
0x16a4   :  { %v3327_v3 = vadd.f32 %v9228_v59, %v3326_v43 }
0x16a9   :  { %v10420_v44 = vpop.f32.mrf.mxu0 }
0x16aa   :  { %v11812_v46 = vadd.f32 %v10420_v44, %v9244_v45 }
0x16ab   :  { %v3502_v1 = vpop.f32.mrf.mxu0 }
0x16ac   :  { %v3503_v4 = vadd.f32 %v9244_v45, %v3502_v1 }
0x16fb   :  { %v2948_v23 = vpop.xlane.xlu1 %2947 }
0x16fc   :  { %v2949_v24 = vmul.f32 0.03125, %v2948_v23 }
0x16fe   :  { %v2950_v27 = vadd.f32 1e-05, %v2949_v24 }
0x16ff   :  { %v3238_v26 = vpop.permute.xlu1 %3237 }
0x1700   :  { %10980 = vrsqrt.f32 %v2950_v27  ;;  %vm3239_vm15 = vcmp.eq.s32.totalorder %v3238_v26, 1 }
0x1701   :  { %vm11879_vm1 = vmand %vm3239_vm15, %vm3226_vm14 }
0x170d   :  { %v10981_v28 = vpop.eup %10980 }
0x170e   :  { %v2952_v30 = vmul.f32 %v10981_v28, %v2944_v7  ;;  %v3124_v7 = vld [vmem:[%s12856_s3] sm:$0x1] }
0x1710   :  { %v2959_v32 = vmul.f32 %v9211_v29, %v2952_v30  ;;  %v9482_v30 = vld [vmem:[%s12846_s6 + $0x3f8] sm:$0xff] }
0x1712   :  { %v2966_v33 = vadd.f32 %v9212_v31, %v2959_v32 }
0x1714   :  { %10370 = vmatmul.mubr.msk.f32.vlgmr.msra.gmra.mxu1 %vm153_vm2, %v2966_v33 }
0x1715   :  { %10373 = vmatpush3.msra.mxu1 %v9217_v34  ;;  %10380 = vmatprep.mubr.msk.f32.mxu1 %vm11073_vm11, %v11072_v9 }
0x1716   :  { %10374 = vmatprep.subr.mxu1 %v11072_v9 }
0x1717   :  { %10375 = vmatpush3.msra.mxu1 %v9216_v35 }
0x1718   :  { %10376 = vmatprep.subr.mxu1 %v11072_v9 }
0x1719   :  { %10377 = vmatpush3.msra.mxu1 %v9215_v36 }
0x171a   :  { %10378 = vmatprep.subr.mxu1 %v11072_v9 }
0x171b   :  { %10379 = vmatpush3.msra.mxu1 %v9214_v37 }
0x171c   :  { %10381 = vmatmul.mubr.msk.f32.vlgmr.msra.gmra.mxu1 %vm153_vm2, %v2966_v33  ;;  %10399 = vmatprep.subr.mxu1 %v9234_v38 }
0x171d   :  { %10400 = vmatpush3.msra.mxu1 %v9234_v38  ;;  %10407 = vmatprep.mubr.msk.f32.mxu1 %vm153_vm2, %v11740_v20 }
0x171e   :  { %10401 = vmatprep.subr.mxu1 %v9233_v39 }
0x171f   :  { %10402 = vmatpush3.msra.mxu1 %v9233_v39  ;;  %v9278_v39 = vld [vmem:[%s12847_s7 + $0x11] ss:$0 sm:$0xff] }
0x1720   :  { %10403 = vmatprep.subr.mxu1 %v9232_v40 }
0x1721   :  { %10404 = vmatpush3.msra.mxu1 %v9232_v40 }
0x1722   :  { %10405 = vmatprep.subr.mxu1 %v9231_v41 }
0x1723   :  { %10406 = vmatpush3.msra.mxu1 %v9231_v41 }
0x1724   :  { %10408 = vmatmul.mubr.msk.f32.vlgmr.msra.gmra.mxu1 %vm153_vm2, %v11732_v18  ;;  %10421 = vmatprep.subr.mxu1 %v11072_v9 }
0x1725   :  { %10423 = vmatprep.mubr.msk.f32.mxu1 %vm11073_vm11, %v11072_v9 }
0x17d4   :  { %v3041_v50 = vpop.f32.mrf.mxu1 }
0x17d5   :  { %v3042_v13 = vadd.f32 %v3041_v50, %v2971_v6 }
0x17d6   :  { %v10371_v51 = vpop.f32.mrf.mxu1 }
0x17dc   :  { %v3118_v53 = vpop.f32.mrf.mxu1 }
0x17dd   :  { %v3119_v54 = vadd.f32 %v9218_v52, %v3118_v53 }
0x17de   :  { %v10382_v55 = vpop.f32.mrf.mxu1 }
0x17df   :  { %v3122_v56 = vmul.f32 1.442695, %v3119_v54 }
0x17e1   :  { %10982 = vpow2.f32 %v3122_v56 }
0x17e4   :  { %v10409_v58 = vpop.f32.mrf.mxu1 }
0x17e5   :  { %v3420_v60 = vadd.f32 %v10409_v58, %v9236_v57 }
0x17e6   :  { %v3414_v62 = vpop.f32.mrf.mxu1 }
0x17e7   :  { %v3415_v63 = vadd.f32 %v9236_v57, %v3414_v62  ;;  %10432 = vmatpush3.xpose.msk.msra.mxu0 %vm411_vm3, %v3420_v60  ;;  %v9268_v57 = vld [vmem:[%s12846_s6 + $0x278] sm:$0xff]  ;;  %v9267_v60 = vld [vmem:[%s12846_s6 + $0x270] sm:$0xff] }
0x17e8   :  { %10441 = vmatprep.subr.mxu0 %v9260_v61 }
0x17e9   :  { %10422 = vmatpush3.xpose.msk.msra.mxu1 %vm411_vm3, %v3415_v63 }
0x17ea   :  { %10434 = vmatmul.mubr.msk.f32.vlgmr.msra.gmra.mxu0 %vm411_vm3, %v3332_v0  ;;  %10426 = vmatprep.subr.mxu1 %v11072_v9 }
0x17eb   :  { %10442 = vmatpush3.msra.mxu0 %v9260_v61  ;;  %10449 = vmatprep.mubr.msk.f32.mxu0 %vm153_vm2, %v11740_v20  ;;  %v9266_v61 = vld [vmem:[%s12846_s6 + $0x268] sm:$0xff] }
0x17ec   :  { %10424 = vmatmul.mubr.msk.f32.vlgmr.msra.gmra.mxu1 %vm411_vm3, %v3327_v3  ;;  %10443 = vmatprep.subr.mxu0 %v9259_v2 }
0x17ed   :  { %10427 = vmatpush3.msra.mxu1 %v3503_v4  ;;  %10444 = vmatpush3.msra.mxu0 %v9259_v2  ;;  %v9270_v2 = vld [vmem:[%s12847_s7 + $0xf] ss:$0 sm:$0xff]  ;;  %v9262_v4 = vld [vmem:[%s12847_s7 + $0xd] ss:$0 sm:$0xff] }
0x17ee   :  { %v10983_v12 = vpop.eup %10982  ;;  %10445 = vmatprep.subr.mxu0 %v9258_v5  ;;  %10428 = vmatprep.mubr.msk.f32.mxu1 %vm11073_vm11, %v11072_v9 }
0x17ef   :  { %10446 = vmatpush3.msra.mxu0 %v9258_v5  ;;  %v3125_v11 = vmul.f32 %v10983_v12, %v3124_v7  ;;  %10436 = vmatprep.subr.mxu1 %v11072_v9 }
0x17f0   :  { %10447 = vmatprep.subr.mxu0 %v9257_v8 }
0x17f1   :  { %10448 = vmatpush3.msra.mxu0 %v9257_v8  ;;  %v11859_v15 = vadd.f32 %v3125_v11, %v3042_v13 }
0x17f2   :  { %10450 = vmatmul.mubr.msk.f32.vlgmr.msra.gmra.mxu0 %vm153_vm2, %v11732_v18  ;;  %10463 = vmatprep.subr.mxu0 %v9276_v10 }
0x17f3   :  { %10464 = vmatpush3.msra.mxu0 %v9276_v10  ;;  %10471 = vmatprep.mubr.msk.f32.mxu0 %vm153_vm2, %v11740_v20 }
0x17f4   :  { %10465 = vmatprep.subr.mxu0 %v9275_v14 }
0x17f5   :  { %10466 = vmatpush3.msra.mxu0 %v9275_v14 }
0x17f6   :  { %10467 = vmatprep.subr.mxu0 %v9274_v16 }
0x17f7   :  { %10468 = vmatpush3.msra.mxu0 %v9274_v16 }
0x17f8   :  { %10469 = vmatprep.subr.mxu0 %v9273_v17 }
0x17f9   :  { %10470 = vmatpush3.msra.mxu0 %v9273_v17 }
0x17fa   :  { %10472 = vmatmul.mubr.msk.f32.vlgmr.msra.gmra.mxu0 %vm153_vm2, %v11732_v18  ;;  %10484 = vmatprep.subr.mxu0 %v11072_v9 }
0x17fb   :  { %10486 = vmatprep.mubr.msk.f32.mxu0 %vm11073_vm11, %v11072_v9 }
0x18aa   :  { %v3746_v23 = vpop.f32.mrf.mxu0 }
0x18ab   :  { %v3750_v27 = vmul.f32 0.25, %v3746_v23 }
0x18ac   :  { %v3583_v28 = vpop.f32.mrf.mxu1  ;;  %v10435_v29 = vpop.f32.mrf.mxu0 }
0x18ad   :  { %v3587_v31 = vmul.f32 0.25, %v3583_v28  ;;  %v3751_v32 = vsel %vm11879_vm1, %v3750_v27, -1e+09 }
0x18ae   :  { %v10425_v33 = vpop.f32.mrf.mxu1  ;;  %v3752_v34 = vsel %vm3589_vm4, %v3751_v32, -inf }
0x18af   :  { %3753 = vmax.xlane.f32.xlu0 %v3752_v34  ;;  %v3588_v35 = vsel %vm11883_vm5, %v3587_v31, -1e+09 }
0x18b0   :  { %v3590_v36 = vsel %vm3589_vm4, %v3588_v35, -inf }
0x18b1   :  { %3591 = vmax.xlane.f32.xlu1 %v3590_v36 }
0x18b2   :  { %v10451_v37 = vpop.f32.mrf.mxu0 }
0x18b3   :  { %v3926_v8 = vadd.f32 %v10451_v37, %v9262_v4 }
0x18b4   :  { %v3920_v38 = vpop.f32.mrf.mxu0 }
0x18b5   :  { %v3921_v13 = vadd.f32 %v9262_v4, %v3920_v38 }
0x18ba   :  { %v10473_v40 = vpop.f32.mrf.mxu0 }
0x18bb   :  { %v11896_v41 = vadd.f32 %v10473_v40, %v9278_v39  ;;  %v9289_v40 = vld [vmem:[%s12846_s6 + $0x2f0] sm:$0xff] }
0x18bc   :  { %v4096_v12 = vpop.f32.mrf.mxu0 }
0x18bd   :  { %v4097_v10 = vadd.f32 %v9278_v39, %v4096_v12  ;;  %v9290_v39 = vld [vmem:[%s12846_s6 + $0x2f8] sm:$0xff] }
0x1938   :  { %v3754_v42 = vpop.xlane.xlu0 %3753 }
0x1939   :  { %v3755_v43 = vsub.f32 %v3751_v32, %v3754_v42  ;;  %v9288_v42 = vld [vmem:[%s12846_s6 + $0x2e8] sm:$0xff] }
0x193a   :  { %v3592_v44 = vpop.xlane.xlu1 %3591 }
0x193b   :  { %v3593_v45 = vsub.f32 %v3588_v35, %v3592_v44  ;;  %v3756_v47 = vmul.f32 1.442695, %v3755_v43 }
0x193d   :  { %v3594_v48 = vmul.f32 1.442695, %v3593_v45 }
0x193f   :  { %10984 = vpow2.f32 %v3594_v48  ;;  %v9256_v48 = vld [vmem:[%s12846_s6 + $0x2d8] sm:$0xff] }
0x1940   :  { %10986 = vpow2.f32 %v3756_v47 }
0x194c   :  { %v10985_v49 = vpop.eup %10984 }
0x194d   :  { %v3596_v50 = vsel %vm3589_vm4, %v10985_v49, 0.0  ;;  %v10987_v51 = vpop.eup %10986 }
0x194e   :  { %3597 = vadd.xlane.f32.xlu1 %v3596_v50  ;;  %v3758_v52 = vsel %vm3589_vm4, %v10987_v51, 0.0 }
0x1952   :  { %3759 = vadd.xlane.f32.xlu1 %v3758_v52  ;;  %v9253_v52 = vld [vmem:[%s12846_s6 + $0x2c0] sm:$0xff] }
0x19d7   :  { %v3598_v53 = vpop.xlane.xlu1 %3597 }
0x19d8   :  { %10988 = vrcp.f32 %v3598_v53  ;;  %v3130_v53 = vsub.s32 0, %v11876_v22  ;;  %v9318_v22 = vld [vmem:[%s12846_s6 + $0x448] sm:$0xff] }
0x19db   :  { %v3760_v54 = vpop.xlane.xlu1 %3759 }
0x19dc   :  { %10990 = vrcp.f32 %v3760_v54  ;;  %v9320_v54 = vld [vmem:[%s12846_s6 + $0x458] sm:$0xff] }
0x19e5   :  { %v10989_v55 = vpop.eup %10988 }
0x19e6   :  { %v3600_v56 = vmul.f32 %v10989_v55, %v10985_v49  ;;  %v9319_v55 = vld [vmem:[%s12846_s6 + $0x450] sm:$0xff] }
0x19e8   :  { %10429 = vmatmul.mubr.msk.f32.vlgmr.msra.gmra.mxu1 %vm3589_vm4, %v3600_v56  ;;  %v3131_v56 = vrot.slane %v11859_v15, %v3130_v53  ;;  %v9287_v15 = vld [vmem:[%s12846_s6 + $0x2e0] sm:$0xff]  ;;  %v9326_v53 = vld [vmem:[%s12846_s6 + $0x490] sm:$0xff] }
0x19e9   :  { %v10991_v58 = vpop.eup %10990  ;;  %10437 = vmatpush3.msra.mxu1 %v11812_v46  ;;  %10438 = vmatprep.mubr.msk.f32.mxu1 %vm11073_vm11, %v11072_v9  ;;  %v9265_v46 = vld [vmem:[%s12846_s6 + $0x260] sm:$0xff] }
0x19ea   :  { %10452 = vmatprep.subr.mxu1 %v9268_v57  ;;  %v3762_v59 = vmul.f32 %v10991_v58, %v10987_v51  ;;  %v9255_v51 = vld [vmem:[%s12846_s6 + $0x2d0] sm:$0xff]  ;;  %v9317_v58 = vld [vmem:[%s12846_s6 + $0x440] sm:$0xff] }
0x19ec   :  { %10439 = vmatmul.mubr.msk.f32.vlgmr.msra.gmra.mxu1 %vm3589_vm4, %v3762_v59 }
0x19ed   :  { %10453 = vmatpush3.msra.mxu1 %v9268_v57  ;;  %10460 = vmatprep.mubr.msk.f32.mxu1 %vm153_vm2, %v11740_v20  ;;  %v3127_v57 = vld [vmem:[%s12857_s2] sm:$0xf] }
0x19ee   :  { %10454 = vmatprep.subr.mxu1 %v9267_v60  ;;  %v12016_v59 = vadd.f32 %v3131_v56, %v3127_v57  ;;  %v9344_v56 = vld [vmem:[%s12846_s6 + $0x438] sm:$0xff]  ;;  %v9342_v57 = vld [vmem:[%s12846_s6 + $0x428] sm:$0xff] }
0x19ef   :  { %10455 = vmatpush3.msra.mxu1 %v9267_v60 }
0x19f0   :  { %10456 = vmatprep.subr.mxu1 %v9266_v61 }
0x19f1   :  { %10457 = vmatpush3.msra.mxu1 %v9266_v61 }
0x19f2   :  { %10458 = vmatprep.subr.mxu1 %v9265_v46 }
0x19f3   :  { %10459 = vmatpush3.msra.mxu1 %v9265_v46 }
0x19f4   :  { %10461 = vmatmul.mubr.msk.f32.vlgmr.msra.gmra.mxu1 %vm153_vm2, %v11732_v18  ;;  %10474 = vmatprep.subr.mxu1 %v11072_v9 }
0x19f5   :  { %10476 = vmatprep.mubr.msk.f32.mxu1 %vm11073_vm11, %v11072_v9 }
0x1aa8   :  { %v11924_v62 = vpop.f32.mrf.mxu1 }
0x1aaa   :  { %v10430_v63 = vpop.f32.mrf.mxu1 }
0x1aac   :  { %v11926_v0 = vpop.f32.mrf.mxu1 }
0x1aae   :  { %v10440_v1 = vpop.f32.mrf.mxu1 }
0x1aaf   :  { %v9322_v1 = vld [vmem:[%s12847_s7 + $0x1a] ss:$0 sm:$0xff] }
0x1ab4   :  { %v10462_v3 = vpop.f32.mrf.mxu1 }
0x1ab5   :  { %v4014_v5 = vadd.f32 %v10462_v3, %v9270_v2 }
0x1ab6   :  { %v4008_v6 = vpop.f32.mrf.mxu1 }
0x1ab7   :  { %v4009_v7 = vadd.f32 %v9270_v2, %v4008_v6  ;;  %10485 = vmatpush3.xpose.msk.msra.mxu0 %vm411_vm3, %v4014_v5 }
0x1ab8   :  { %10494 = vmatprep.subr.msk.mxu0 %vm411_vm3, %v9290_v39 }
0x1ab9   :  { %10475 = vmatpush3.xpose.msk.msra.mxu1 %vm411_vm3, %v4009_v7 }
0x1aba   :  { %10487 = vmatmul.mubr.msk.f32.vlgmr.msra.gmra.mxu0 %vm411_vm3, %v3926_v8  ;;  %10479 = vmatprep.subr.mxu1 %v11072_v9  ;;  %v9304_v8 = vld [vmem:[%s12848_s11 + $0xc] ss:$0 sm:$0xff] }
0x1abb   :  { %10495 = vmatpush3.xpose.msk.msra.mxu0 %vm411_vm3, %v9290_v39 }
0x1abc   :  { %10477 = vmatmul.mubr.msk.f32.vlgmr.msra.gmra.mxu1 %vm411_vm3, %v3921_v13  ;;  %10496 = vmatprep.subr.msk.mxu0 %vm411_vm3, %v9289_v40 }
0x1abd   :  { %10480 = vmatpush3.msra.mxu1 %v4097_v10  ;;  %10481 = vmatprep.mubr.msk.f32.mxu1 %vm11073_vm11, %v11072_v9 }
0x1abe   :  { %10489 = vmatprep.subr.mxu1 %v11072_v9 }
0x1abf   :  { %10497 = vmatpush3.xpose.msk.msra.mxu0 %vm411_vm3, %v9289_v40 }
0x1ac0   :  { %10498 = vmatprep.subr.msk.mxu0 %vm411_vm3, %v9288_v42 }
0x1ac3   :  { %10499 = vmatpush3.xpose.msk.msra.mxu0 %vm411_vm3, %v9288_v42 }
0x1ac4   :  { %10500 = vmatprep.subr.msk.mxu0 %vm411_vm3, %v9287_v15 }
0x1ac7   :  { %10501 = vmatpush3.xpose.msk.msra.mxu0 %vm411_vm3, %v9287_v15  ;;  %v9359_v15 = vld [vmem:[%s12846_s6 + $0x4b8] sm:$0xff] }
0x1b7a   :  { %v4339_v11 = vpop.f32.mrf.mxu0 }
0x1b7b   :  { %v4343_v17 = vmul.f32 0.25, %v4339_v11 }
0x1b7c   :  { %v4177_v14 = vpop.f32.mrf.mxu1  ;;  %v10488_v16 = vpop.f32.mrf.mxu0 }
0x1b7d   :  { %v4181_v19 = vmul.f32 0.25, %v4177_v14  ;;  %v4344_v23 = vsel %vm11879_vm1, %v4343_v17, -1e+09 }
0x1b7e   :  { %v10478_v21 = vpop.f32.mrf.mxu1  ;;  %v4345_v27 = vsel %vm3589_vm4, %v4344_v23, -inf }
0x1b7f   :  { %v4182_v26 = vsel %vm11883_vm5, %v4181_v19, -1e+09 }
0x1b80   :  { %v4183_v25 = vsel %vm3589_vm4, %v4182_v26, -inf }
0x1b81   :  { %4184 = vmax.xlane.f32.xlu1 %v4183_v25 }
0x1b85   :  { %4346 = vmax.xlane.f32.xlu1 %v4345_v27 }
0x1c0a   :  { %v4185_v28 = vpop.xlane.xlu1 %4184 }
0x1c0b   :  { %v4186_v29 = vsub.f32 %v4182_v26, %v4185_v28 }
0x1c0d   :  { %v4187_v31 = vmul.f32 1.442695, %v4186_v29 }
0x1c0e   :  { %v4347_v32 = vpop.xlane.xlu1 %4346 }
0x1c0f   :  { %10992 = vpow2.f32 %v4187_v31  ;;  %v4348_v33 = vsub.f32 %v4344_v23, %v4347_v32  ;;  %v9312_v31 = vld [vmem:[%s12846_s6 + $0x418] sm:$0xff]  ;;  %v9311_v32 = vld [vmem:[%s12846_s6 + $0x410] sm:$0xff] }
0x1c10   :  { %10516 = vmatprep.subr.mxu0 %v9312_v31 }
0x1c11   :  { %v4349_v34 = vmul.f32 1.442695, %v4348_v33  ;;  %v9310_v33 = vld [vmem:[%s12846_s6 + $0x408] sm:$0xff] }
0x1c13   :  { %10994 = vpow2.f32 %v4349_v34  ;;  %v9309_v34 = vld [vmem:[%s12846_s6 + $0x400] sm:$0xff] }
0x1c1c   :  { %v10993_v35 = vpop.eup %10992 }
0x1c1d   :  { %v4189_v36 = vsel %vm3589_vm4, %v10993_v35, 0.0 }
0x1c1e   :  { %4190 = vadd.xlane.f32.xlu1 %v4189_v36 }
0x1c20   :  { %v10995_v37 = vpop.eup %10994 }
0x1c21   :  { %v4351_v38 = vsel %vm3589_vm4, %v10995_v37, 0.0 }
0x1c22   :  { %4352 = vadd.xlane.f32.xlu1 %v4351_v38 }
0x1ca7   :  { %v4191_v43 = vpop.xlane.xlu1 %4190 }
0x1ca8   :  { %10996 = vrcp.f32 %v4191_v43  ;;  %v9307_v43 = vld [vmem:[%s12848_s11 + $0xd] ss:$0 sm:$0xff] }
0x1cab   :  { %v4353_v44 = vpop.xlane.xlu1 %4352 }
0x1cac   :  { %10998 = vrcp.f32 %v4353_v44 }
0x1cb5   :  { %v10997_v45 = vpop.eup %10996 }
0x1cb6   :  { %v4193_v47 = vmul.f32 %v10997_v45, %v10993_v35 }
0x1cb8   :  { %10482 = vmatmul.mubr.msk.f32.vlgmr.msra.gmra.mxu1 %vm3589_vm4, %v4193_v47 }
0x1cb9   :  { %v10999_v49 = vpop.eup %10998  ;;  %10490 = vmatpush3.msra.mxu1 %v11896_v41  ;;  %10491 = vmatprep.mubr.msk.f32.mxu1 %vm11073_vm11, %v11072_v9  ;;  %v9254_v41 = vld [vmem:[%s12846_s6 + $0x2c8] sm:$0xff] }
0x1cba   :  { %10505 = vmatprep.subr.msk.mxu1 %vm411_vm3, %v9256_v48  ;;  %v4355_v50 = vmul.f32 %v10999_v49, %v10995_v37  ;;  %v9308_v49 = vld [vmem:[%s12848_s11 + $0xe] ss:$0 sm:$0xff] }
0x1cbc   :  { %10492 = vmatmul.mubr.msk.f32.vlgmr.msra.gmra.mxu1 %vm3589_vm4, %v4355_v50 }
0x1cbd   :  { %10506 = vmatpush3.xpose.msk.msra.mxu1 %vm411_vm3, %v9256_v48  ;;  %10513 = vmatprep.mubr.msk.f32.mxu1 %vm411_vm3, %v11924_v62 }
0x1cbe   :  { %10507 = vmatprep.subr.msk.mxu1 %vm411_vm3, %v9255_v51 }
0x1cc1   :  { %10508 = vmatpush3.xpose.msk.msra.mxu1 %vm411_vm3, %v9255_v51 }
0x1cc2   :  { %10509 = vmatprep.subr.msk.mxu1 %vm411_vm3, %v9254_v41 }
0x1cc5   :  { %10510 = vmatpush3.xpose.msk.msra.mxu1 %vm411_vm3, %v9254_v41 }
0x1cc6   :  { %10511 = vmatprep.subr.msk.mxu1 %vm411_vm3, %v9253_v52 }
0x1cc9   :  { %10512 = vmatpush3.xpose.msk.msra.mxu1 %vm411_vm3, %v9253_v52  ;;  %v9327_v52 = vld [vmem:[%s12846_s6 + $0x498] sm:$0xff] }
0x1cca   :  { %10527 = vmatprep.subr.mxu1 %v11072_v9 }
0x1ccc   :  { %10514 = vmatmul.mubr.msk.f32.vlgmr.msra.gmra.mxu1 %vm411_vm3, %v11926_v0 }
0x1ccd   :  { %10528 = vmatpush3.msra.mxu1 %v9320_v54  ;;  %10535 = vmatprep.mubr.msk.f32.mxu1 %vm11073_vm11, %v11072_v9  ;;  %v9325_v54 = vld [vmem:[%s12846_s6 + $0x488] sm:$0xff] }
0x1cce   :  { %10529 = vmatprep.subr.mxu1 %v11072_v9 }
0x1ccf   :  { %10530 = vmatpush3.msra.mxu1 %v9319_v55  ;;  %v9324_v55 = vld [vmem:[%s12846_s6 + $0x480] sm:$0xff] }
0x1cd0   :  { %10531 = vmatprep.subr.mxu1 %v11072_v9 }
0x1cd1   :  { %10532 = vmatpush3.msra.mxu1 %v9318_v22  ;;  %v9343_v22 = vld [vmem:[%s12846_s6 + $0x430] sm:$0xff] }
0x1cd2   :  { %10533 = vmatprep.subr.mxu1 %v11072_v9 }
0x1cd3   :  { %10534 = vmatpush3.msra.mxu1 %v9317_v58  ;;  %v9341_v58 = vld [vmem:[%s12846_s6 + $0x420] sm:$0xff] }
0x1cd4   :  { %10536 = vmatmul.mubr.msk.f32.vlgmr.msra.gmra.mxu1 %vm153_vm2, %v12016_v59 }
0x1d78   :  { %v4263_v60 = vpop.f32.mrf.mxu1 }
0x1d79   :  { %10502 = vmatprep.mubr.msk.f32.mxu0 %vm411_vm3, %v4263_v60  ;;  %v9358_v60 = vld [vmem:[%s12846_s6 + $0x4b0] sm:$0xff] }
0x1d7a   :  { %v10483_v61 = vpop.f32.mrf.mxu1 }
0x1d7b   :  { %v9357_v61 = vld [vmem:[%s12846_s6 + $0x4a8] sm:$0xff] }
0x1d7c   :  { %v4425_v46 = vpop.f32.mrf.mxu1 }
0x1d7d   :  { %10503 = vmatmul.mubr.msk.f32.vlgmr.msra.gmra.mxu0 %vm411_vm3, %v4425_v46  ;;  %v9356_v46 = vld [vmem:[%s12846_s6 + $0x4a0] sm:$0xff] }
0x1d7e   :  { %v10493_v62 = vpop.f32.mrf.mxu1  ;;  %10517 = vmatpush3.msra.mxu0 %v9312_v31 }
0x1d7f   :  { %10518 = vmatprep.subr.mxu0 %v9311_v32 }
0x1d80   :  { %10519 = vmatpush3.msra.mxu0 %v9311_v32 }
0x1d81   :  { %10520 = vmatprep.subr.mxu0 %v9310_v33 }
0x1d82   :  { %10521 = vmatpush3.msra.mxu0 %v9310_v33 }
0x1d83   :  { %10522 = vmatprep.subr.mxu0 %v9309_v34 }
0x1d84   :  { %10523 = vmatpush3.msra.mxu0 %v9309_v34 }
0x1d85   :  { %10538 = vmatprep.subr.mxu0 %v11072_v9 }
0x1d8c   :  { %v10515_v63 = vpop.f32.mrf.mxu1 }
0x1d8e   :  { %v4611_v0 = vpop.f32.mrf.mxu1 }
0x1d94   :  { %v4854_v2 = vpop.f32.mrf.mxu1 }
0x1d95   :  { %v4855_v3 = vadd.f32 %v9322_v1, %v4854_v2 }
0x1d96   :  { %v10537_v4 = vpop.f32.mrf.mxu1 }
0x1d97   :  { %10549 = vmatprep.subr.msk.mxu1 %vm411_vm3, %v4855_v3 }
0x1d98   :  { %10550 = vmatpush3.xpose.msk.msra.mxu1 %vm411_vm3, %v4855_v3  ;;  %v9329_v3 = vld [vmem:[%s12847_s7 + $0x1c] ss:$0 sm:$0xff] }
0x1e3d   :  { %v10504_v5 = vpop.f32.mrf.mxu0 }
0x1e3e   :  { %v4617_v6 = vadd.f32 %v10515_v63, %v10504_v5  ;;  %v9314_v63 = vld [vmem:[%s12847_s7 + $0x18] ss:$0 sm:$0xff] }
0x1e3f   :  { %v4518_v7 = vpop.f32.mrf.mxu0 }
0x1e40   :  { %v4621_v12 = vadd.f32 %v11732_v18, %v4617_v6  ;;  %v4612_v13 = vadd.f32 %v4611_v0, %v4518_v7  ;;  %v9346_v7 = vld [vmem:[%s12847_s7 + $0x19] ss:$0 sm:$0xff] }
0x1e42   :  { %v4620_v10 = vadd.f32 %v4612_v13, %v11740_v20  ;;  %v4631_v11 = vadd.f32 %v9304_v8, %v4621_v12 }
0x1e44   :  { %v4639_v14 = vsel %vm153_vm2, %v4631_v11, 0.0  ;;  %v4630_v16 = vadd.f32 %v9304_v8, %v4620_v10 }
0x1e45   :  { %4640 = vadd.xlane.f32.xlu1 %v4639_v14 }
0x1e46   :  { %v4636_v17 = vsel %vm153_vm2, %v4630_v16, 0.0 }
0x1e47   :  { %4637 = vadd.xlane.f32.xlu0 %v4636_v17 }
0x1ece   :  { %v4641_v19 = vpop.xlane.xlu1 %4640 }
0x1ecf   :  { %v4643_v21 = vmul.f32 0.03125, %v4641_v19 }
0x1ed0   :  { %v4638_v26 = vpop.xlane.xlu0 %4637 }
0x1ed1   :  { %v4645_v25 = vsub.f32 %v4631_v11, %v4643_v21  ;;  %v4642_v23 = vmul.f32 0.03125, %v4638_v26 }
0x1ed3   :  { %v4644_v27 = vsub.f32 %v4630_v16, %v4642_v23  ;;  %v4647_v28 = vmul.f32 %v4645_v25, %v4645_v25 }
0x1ed5   :  { %v4651_v18 = vsel %vm153_vm2, %v4647_v28, 0.0  ;;  %v4646_v29 = vmul.f32 %v4644_v27, %v4644_v27 }
0x1ed6   :  { %4652 = vadd.xlane.f32.xlu1 %v4651_v18 }
0x1ed7   :  { %v4648_v20 = vsel %vm153_vm2, %v4646_v29, 0.0 }
0x1ed8   :  { %4649 = vadd.xlane.f32.xlu0 %v4648_v20 }
0x1f5f   :  { %v4653_v35 = vpop.xlane.xlu1 %4652 }
0x1f60   :  { %v4655_v36 = vmul.f32 0.03125, %v4653_v35 }
0x1f61   :  { %v4650_v37 = vpop.xlane.xlu0 %4649 }
0x1f62   :  { %v4657_v38 = vadd.f32 1e-05, %v4655_v36  ;;  %v4654_v39 = vmul.f32 0.03125, %v4650_v37 }
0x1f64   :  { %11000 = vrsqrt.f32 %v4657_v38  ;;  %v4656_v40 = vadd.f32 1e-05, %v4654_v39 }
0x1f66   :  { %11002 = vrsqrt.f32 %v4656_v40  ;;  %v9352_v40 = vld [vmem:[%s12846_s6 + $0x478] sm:$0xff] }
0x1f71   :  { %v11001_v42 = vpop.eup %11000 }
0x1f72   :  { %v4661_v44 = vmul.f32 %v11001_v42, %v4645_v25  ;;  %v9351_v42 = vld [vmem:[%s12846_s6 + $0x470] sm:$0xff] }
0x1f73   :  { %v11003_v45 = vpop.eup %11002 }
0x1f74   :  { %v4660_v47 = vmul.f32 %v11003_v45, %v4644_v27  ;;  %v4669_v48 = vmul.f32 %v9307_v43, %v4661_v44  ;;  %v9349_v44 = vld [vmem:[%s12846_s6 + $0x460] sm:$0xff] }
0x1f76   :  { %v4668_v50 = vmul.f32 %v9307_v43, %v4660_v47  ;;  %v12063_v41 = vadd.f32 %v9308_v49, %v4669_v48  ;;  %v9350_v43 = vld [vmem:[%s12846_s6 + $0x468] sm:$0xff] }
0x1f78   :  { %v12061_v51 = vadd.f32 %v9308_v49, %v4668_v50  ;;  %v9354_v49 = vld [vmem:[%s12847_s7 + $0x1b] ss:$0 sm:$0xff]  ;;  %v9361_v50 = vld [vmem:[%s12847_s7 + $0x1d] ss:$0 sm:$0xff] }
0x1f7a   :  { %10524 = vmatprep.mubr.msk.f32.mxu0 %vm153_vm2, %v12061_v51 }
0x1f7b   :  { %10525 = vmatmul.mubr.msk.f32.vlgmr.msra.gmra.mxu0 %vm153_vm2, %v12063_v41 }
0x1f7c   :  { %10539 = vmatpush3.msra.mxu0 %v9327_v52  ;;  %10546 = vmatprep.mubr.msk.f32.mxu0 %vm11073_vm11, %v11072_v9 }
0x1f7d   :  { %10540 = vmatprep.subr.mxu0 %v11072_v9 }
0x1f7e   :  { %10541 = vmatpush3.msra.mxu0 %v9326_v53 }
0x1f7f   :  { %10542 = vmatprep.subr.mxu0 %v11072_v9 }
0x1f80   :  { %10543 = vmatpush3.msra.mxu0 %v9325_v54 }
0x1f81   :  { %10544 = vmatprep.subr.mxu0 %v11072_v9 }
0x1f82   :  { %10545 = vmatpush3.msra.mxu0 %v9324_v55 }
0x1f83   :  { %10547 = vmatmul.mubr.msk.f32.vlgmr.msra.gmra.mxu0 %vm153_vm2, %v12016_v59  ;;  %10559 = vmatprep.subr.mxu0 %v9344_v56 }
0x1f84   :  { %10560 = vmatpush3.msra.mxu0 %v9344_v56  ;;  %10567 = vmatprep.mubr.msk.f32.mxu0 %vm153_vm2, %v12061_v51 }
0x1f85   :  { %10561 = vmatprep.subr.mxu0 %v9343_v22 }
0x1f86   :  { %10562 = vmatpush3.msra.mxu0 %v9343_v22 }
0x1f87   :  { %10563 = vmatprep.subr.mxu0 %v9342_v57 }
0x1f88   :  { %10564 = vmatpush3.msra.mxu0 %v9342_v57 }
0x1f89   :  { %10565 = vmatprep.subr.mxu0 %v9341_v58 }
0x1f8a   :  { %10566 = vmatpush3.msra.mxu0 %v9341_v58 }
0x1f8b   :  { %10568 = vmatmul.mubr.msk.f32.vlgmr.msra.gmra.mxu0 %vm153_vm2, %v12063_v41  ;;  %10581 = vmatprep.subr.mxu0 %v11072_v9 }
0x1f8c   :  { %10582 = vmatpush3.msra.mxu0 %v9359_v15  ;;  %10589 = vmatprep.mubr.msk.f32.mxu0 %vm11073_vm11, %v11072_v9 }
0x1f8d   :  { %10583 = vmatprep.subr.mxu0 %v11072_v9 }
0x1f8e   :  { %10584 = vmatpush3.msra.mxu0 %v9358_v60 }
0x1f8f   :  { %10585 = vmatprep.subr.mxu0 %v11072_v9 }
0x1f90   :  { %10586 = vmatpush3.msra.mxu0 %v9357_v61 }
0x1f91   :  { %10587 = vmatprep.subr.mxu0 %v11072_v9 }
0x1f92   :  { %10588 = vmatpush3.msra.mxu0 %v9356_v46 }
0x1f93   :  { %10590 = vmatmul.mubr.msk.f32.vlgmr.msra.gmra.mxu0 %vm153_vm2, %v12016_v59 }
0x203b   :  { %v10526_v62 = vpop.f32.mrf.mxu0 }
0x203c   :  { %v4769_v2 = vadd.f32 %v10526_v62, %v9314_v63 }
0x203d   :  { %v4763_v0 = vpop.f32.mrf.mxu0 }
0x203e   :  { %v4764_v1 = vadd.f32 %v9314_v63, %v4763_v0 }
0x2040   :  { %10551 = vmatprep.mubr.msk.f32.mxu1 %vm411_vm3, %v4764_v1 }
0x2041   :  { %10552 = vmatmul.mubr.msk.f32.vlgmr.msra.gmra.mxu1 %vm411_vm3, %v4769_v2 }
0x2043   :  { %v4937_v4 = vpop.f32.mrf.mxu0 }
0x2044   :  { %v4938_v5 = vadd.f32 %v9329_v3, %v4937_v4 }
0x2045   :  { %v10548_v6 = vpop.f32.mrf.mxu0 }
0x2046   :  { %10554 = vmatprep.subr.msk.mxu1 %vm5056_vm6, %v4938_v5  ;;  %v9340_v6 = vld [vmem:[%s12846_s6 + $0x4d8] sm:$0xff] }
0x2047   :  { %10555 = vmatpush3.msk.msra.mxu1 %vm5056_vm6, %v4938_v5 }
0x2048   :  { %10570 = vmatprep.subr.mxu1 %v11072_v9 }
0x204b   :  { %v10569_v8 = vpop.f32.mrf.mxu0 }
0x204c   :  { %v12138_v12 = vadd.f32 %v10569_v8, %v9346_v7  ;;  %v9371_v8 = vld [vmem:[%s12846_s6 + $0x4f0] sm:$0xff] }
0x204d   :  { %v5219_v13 = vpop.f32.mrf.mxu0 }
0x204e   :  { %v5220_v45 = vadd.f32 %v9346_v7, %v5219_v13  ;;  %v9372_v7 = vld [vmem:[%s12846_s6 + $0x4f8] sm:$0xff] }
0x204f   :  { %10602 = vmatprep.subr.msk.mxu0 %vm411_vm3, %v9372_v7 }
0x2050   :  { %10603 = vmatpush3.xpose.msk.msra.mxu0 %vm411_vm3, %v9372_v7 }
0x2051   :  { %10604 = vmatprep.subr.msk.mxu0 %vm411_vm3, %v9371_v8 }
0x2053   :  { %v5390_v10 = vpop.f32.mrf.mxu0 }
0x2054   :  { %v5391_v55 = vadd.f32 %v9361_v50, %v5390_v10  ;;  %10605 = vmatpush3.xpose.msk.msra.mxu0 %vm411_vm3, %v9371_v8  ;;  %v9394_v50 = vld [vmem:[%s12849_s8 + $0x58] sm:$0xff] }
0x2055   :  { %v10591_v11 = vpop.f32.mrf.mxu0 }
0x2101   :  { %v10553_v14 = vpop.f32.mrf.mxu1 }
0x2102   :  { %v5026_v16 = vmul.f32 0.25, %v10553_v14 }
0x2103   :  { %v5016_v17 = vpop.f32.mrf.mxu1 }
0x2104   :  { %v5025_v19 = vmul.f32 0.25, %v5016_v17  ;;  %v5031_v21 = vsel %vm5027_vm7, %v5026_v16, -inf }
0x2105   :  { %5032 = vmax.xlane.f32.xlu1 %v5031_v21  ;;  %v9338_v21 = vld [vmem:[%s12846_s6 + $0x4c8] sm:$0xff] }
0x2106   :  { %v5028_v26 = vsel %vm5027_vm7, %v5025_v19, -inf }
0x2107   :  { %5029 = vmax.xlane.f32.xlu0 %v5028_v26  ;;  %v9337_v26 = vld [vmem:[%s12846_s6 + $0x4c0] sm:$0xff] }
0x218e   :  { %v5033_v25 = vpop.xlane.xlu1 %5032 }
0x218f   :  { %v5035_v23 = vsub.f32 %v5026_v16, %v5033_v25  ;;  %v9369_v25 = vld [vmem:[%s12846_s6 + $0x4e0] sm:$0xff] }
0x2190   :  { %v5030_v27 = vpop.xlane.xlu0 %5029 }
0x2191   :  { %v5038_v28 = vmul.f32 1.442695, %v5035_v23  ;;  %v5034_v18 = vsub.f32 %v5025_v19, %v5030_v27  ;;  %v9339_v19 = vld [vmem:[%s12846_s6 + $0x4d0] sm:$0xff] }
0x2193   :  { %11004 = vpow2.f32 %v5038_v28  ;;  %v5036_v29 = vmul.f32 1.442695, %v5034_v18 }
0x2195   :  { %11006 = vpow2.f32 %v5036_v29 }
0x21a0   :  { %v11005_v20 = vpop.eup %11004 }
0x21a1   :  { %v5043_v31 = vsel %vm5027_vm7, %v11005_v20, 0.0 }
0x21a2   :  { %v11007_v32 = vpop.eup %11006  ;;  %5044 = vadd.xlane.f32.xlu1 %v5043_v31 }
0x21a3   :  { %v5040_v33 = vsel %vm5027_vm7, %v11007_v32, 0.0 }
0x21a4   :  { %5041 = vadd.xlane.f32.xlu0 %v5040_v33 }
0x222b   :  { %v5045_v34 = vpop.xlane.xlu1 %5044 }
0x222c   :  { %11008 = vrcp.f32 %v5045_v34 }
0x222d   :  { %v5042_v35 = vpop.xlane.xlu0 %5041 }
0x222e   :  { %11010 = vrcp.f32 %v5042_v35 }
0x2239   :  { %v11009_v36 = vpop.eup %11008 }
0x223a   :  { %v5049_v39 = vmul.f32 %v11009_v36, %v11005_v20 }
0x223b   :  { %v11011_v37 = vpop.eup %11010 }
0x223c   :  { %v5048_v38 = vmul.f32 %v11011_v37, %v11007_v32  ;;  %v9386_v32 = vld [vmem:[%s12848_s11 + $0xf] ss:$0 sm:$0xff] }
0x223e   :  { %10556 = vmatprep.mubr.msk.f32.mxu1 %vm5027_vm7, %v5048_v38 }
0x223f   :  { %10557 = vmatmul.mubr.msk.f32.vlgmr.msra.gmra.mxu1 %vm5027_vm7, %v5049_v39 }
0x2240   :  { %10571 = vmatpush3.msra.mxu1 %v9352_v40  ;;  %10578 = vmatprep.mubr.msk.f32.mxu1 %vm11073_vm11, %v11072_v9 }
0x2241   :  { %10572 = vmatprep.subr.mxu1 %v11072_v9 }
0x2242   :  { %10573 = vmatpush3.msra.mxu1 %v9351_v42 }
0x2243   :  { %10574 = vmatprep.subr.mxu1 %v11072_v9 }
0x2244   :  { %10575 = vmatpush3.msra.mxu1 %v9350_v43 }
0x2245   :  { %10576 = vmatprep.subr.mxu1 %v11072_v9 }
0x2246   :  { %10577 = vmatpush3.msra.mxu1 %v9349_v44 }
0x2247   :  { %10579 = vmatmul.mubr.msk.f32.vlgmr.msra.gmra.mxu1 %vm153_vm2, %v12016_v59 }
0x2248   :  { %10594 = vmatprep.mubr.msk.f32.mxu1 %vm411_vm3, %v5220_v45 }
0x22ff   :  { %v12166_v47 = vpop.f32.mrf.mxu1 }
0x2301   :  { %v5126_v48 = vpop.f32.mrf.mxu1 }
0x2307   :  { %v5307_v52 = vpop.f32.mrf.mxu1 }
0x2308   :  { %v5308_v53 = vadd.f32 %v9354_v49, %v5307_v52  ;;  %v9393_v52 = vld [vmem:[%s12849_s8 + $0x50] sm:$0xff] }
0x2309   :  { %v10580_v54 = vpop.f32.mrf.mxu1 }
0x230a   :  { %10592 = vmatprep.subr.msk.mxu1 %vm411_vm3, %v5308_v53  ;;  %v9391_v54 = vld [vmem:[%s12849_s8 + $0x40] sm:$0xff] }
0x230b   :  { %10593 = vmatpush3.xpose.msk.msra.mxu1 %vm411_vm3, %v5308_v53  ;;  %v9392_v53 = vld [vmem:[%s12849_s8 + $0x48] sm:$0xff] }
0x230c   :  { %10597 = vmatprep.subr.msk.mxu1 %vm5056_vm6, %v5391_v55 }
0x230e   :  { %10595 = vmatmul.mubr.msk.f32.vlgmr.msra.gmra.mxu1 %vm411_vm3, %v12138_v12  ;;  %v9370_v12 = vld [vmem:[%s12846_s6 + $0x4e8] sm:$0xff] }
0x230f   :  { %10598 = vmatpush3.msk.msra.mxu1 %vm5056_vm6, %v5391_v55  ;;  %10606 = vmatprep.subr.msk.mxu0 %vm411_vm3, %v9370_v12  ;;  %v9403_v55 = vld [vmem:[%s12850_s10 + $0xb8] sm:$0xff] }
0x2310   :  { %10613 = vmatprep.subr.msk.mxu1 %vm411_vm3, %v9340_v6  ;;  %10607 = vmatpush3.xpose.msk.msra.mxu0 %vm411_vm3, %v9370_v12  ;;  %v9399_v12 = vld [vmem:[%s12850_s10 + $0x98] sm:$0xff] }
0x2311   :  { %10608 = vmatprep.subr.msk.mxu0 %vm411_vm3, %v9369_v25 }
0x2314   :  { %10609 = vmatpush3.xpose.msk.msra.mxu0 %vm411_vm3, %v9369_v25 }
0x2315   :  { %10624 = vmatprep.subr.mxu0 %v9394_v50 }
0x23ce   :  { %v10596_v56 = vpop.f32.mrf.mxu1 }
0x23cf   :  { %v5479_v22 = vmul.f32 0.25, %v10596_v56  ;;  %v9402_v56 = vld [vmem:[%s12850_s10 + $0xb0] sm:$0xff] }
0x23d0   :  { %v5469_v57 = vpop.f32.mrf.mxu1 }
0x23d1   :  { %v5478_v58 = vmul.f32 0.25, %v5469_v57  ;;  %v5483_v15 = vsel %vm5027_vm7, %v5479_v22, -inf  ;;  %v9400_v57 = vld [vmem:[%s12850_s10 + $0xa0] sm:$0xff] }
0x23d2   :  { %5484 = vmax.xlane.f32.xlu1 %v5483_v15 }
0x23d3   :  { %v5480_v60 = vsel %vm5027_vm7, %v5478_v58, -inf }
0x23d4   :  { %5481 = vmax.xlane.f32.xlu0 %v5480_v60 }
0x245b   :  { %v5485_v61 = vpop.xlane.xlu1 %5484 }
0x245c   :  { %v5487_v46 = vsub.f32 %v5479_v22, %v5485_v61  ;;  %v9401_v22 = vld [vmem:[%s12850_s10 + $0xa8] sm:$0xff] }
0x245d   :  { %v5482_v62 = vpop.xlane.xlu0 %5481 }
0x245e   :  { %v5490_v63 = vmul.f32 1.442695, %v5487_v46  ;;  %v5486_v0 = vsub.f32 %v5478_v58, %v5482_v62 }
0x2460   :  { %11012 = vpow2.f32 %v5490_v63  ;;  %v5488_v1 = vmul.f32 1.442695, %v5486_v0  ;;  %v9389_v0 = vld [vmem:[%s12848_s11 + $0x10] ss:$0 sm:$0xff] }
0x2462   :  { %11014 = vpow2.f32 %v5488_v1 }
0x246d   :  { %v11013_v2 = vpop.eup %11012 }
0x246e   :  { %v5495_v3 = vsel %vm5027_vm7, %v11013_v2, 0.0 }
0x246f   :  { %v11015_v4 = vpop.eup %11014  ;;  %5496 = vadd.xlane.f32.xlu1 %v5495_v3 }
0x2470   :  { %v5492_v5 = vsel %vm5027_vm7, %v11015_v4, 0.0 }
0x2471   :  { %5493 = vadd.xlane.f32.xlu0 %v5492_v5  ;;  %v9390_v5 = vld [vmem:[%s12848_s11 + $0x11] ss:$0 sm:$0xff] }
0x24f8   :  { %v5497_v13 = vpop.xlane.xlu1 %5496 }
0x24f9   :  { %11016 = vrcp.f32 %v5497_v13  ;;  %v9398_v13 = vld [vmem:[%s12850_s10 + $0x90] sm:$0xff] }
0x24fa   :  { %v5494_v10 = vpop.xlane.xlu0 %5493 }
0x24fb   :  { %11018 = vrcp.f32 %v5494_v10  ;;  %v9397_v10 = vld [vmem:[%s12850_s10 + $0x88] sm:$0xff] }
0x2506   :  { %v11017_v11 = vpop.eup %11016 }
0x2507   :  { %v5501_v17 = vmul.f32 %v11017_v11, %v11013_v2  ;;  %v9396_v11 = vld [vmem:[%s12850_s10 + $0x80] sm:$0xff] }
0x2508   :  { %v11019_v14 = vpop.eup %11018 }
0x2509   :  { %v5500_v16 = vmul.f32 %v11019_v14, %v11015_v4  ;;  %v9405_v14 = vld [vmem:[%s12851_s9 + $0x2] ss:$0 sm:$0xff] }
0x250b   :  { %10599 = vmatprep.mubr.msk.f32.mxu1 %vm5027_vm7, %v5500_v16 }
0x250c   :  { %10600 = vmatmul.mubr.msk.f32.vlgmr.msra.gmra.mxu1 %vm5027_vm7, %v5501_v17 }
0x250d   :  { %10614 = vmatpush3.xpose.msk.msra.mxu1 %vm411_vm3, %v9340_v6  ;;  %10621 = vmatprep.mubr.msk.f32.mxu1 %vm411_vm3, %v5126_v48 }
0x250e   :  { %10615 = vmatprep.subr.msk.mxu1 %vm411_vm3, %v9339_v19 }
0x2511   :  { %10616 = vmatpush3.xpose.msk.msra.mxu1 %vm411_vm3, %v9339_v19 }
0x2512   :  { %10617 = vmatprep.subr.msk.mxu1 %vm411_vm3, %v9338_v21 }
0x2515   :  { %10618 = vmatpush3.xpose.msk.msra.mxu1 %vm411_vm3, %v9338_v21 }
0x2516   :  { %10619 = vmatprep.subr.msk.mxu1 %vm411_vm3, %v9337_v26 }
0x2519   :  { %10620 = vmatpush3.xpose.msk.msra.mxu1 %vm411_vm3, %v9337_v26 }
0x251a   :  { %10635 = vmatprep.subr.mxu1 %v9403_v55 }
0x251c   :  { %10622 = vmatmul.mubr.msk.f32.vlgmr.msra.gmra.mxu1 %vm411_vm3, %v12166_v47 }
0x251d   :  { %10636 = vmatpush3.msra.mxu1 %v9403_v55 }
0x251e   :  { %10637 = vmatprep.subr.mxu1 %v9402_v56 }
0x251f   :  { %10638 = vmatpush3.msra.mxu1 %v9402_v56 }
0x2520   :  { %10639 = vmatprep.subr.mxu1 %v9401_v22 }
0x2521   :  { %10640 = vmatpush3.msra.mxu1 %v9401_v22 }
0x2522   :  { %10641 = vmatprep.subr.mxu1 %v9400_v57 }
0x2523   :  { %10642 = vmatpush3.msra.mxu1 %v9400_v57 }
0x2524   :  { %10643 = vmatprep.subr.mxu1 %v9399_v12 }
0x2525   :  { %10644 = vmatpush3.msra.mxu1 %v9399_v12 }
0x2526   :  { %10645 = vmatprep.subr.mxu1 %v9398_v13 }
0x2527   :  { %10646 = vmatpush3.msra.mxu1 %v9398_v13 }
0x2528   :  { %10647 = vmatprep.subr.mxu1 %v9397_v10 }
0x2529   :  { %10648 = vmatpush3.msra.mxu1 %v9397_v10 }
0x252a   :  { %10649 = vmatprep.subr.mxu1 %v9396_v11 }
0x252b   :  { %10650 = vmatpush3.msra.mxu1 %v9396_v11 }
0x25cc   :  { %v10601_v23 = vpop.f32.mrf.mxu1 }
0x25ce   :  { %v5577_v27 = vpop.f32.mrf.mxu1 }
0x25cf   :  { %10610 = vmatprep.mubr.msk.f32.mxu0 %vm411_vm3, %v5577_v27 }
0x25d0   :  { %10611 = vmatmul.mubr.msk.f32.vlgmr.msra.gmra.mxu0 %vm411_vm3, %v10601_v23  ;;  %v9408_v23 = vld [vmem:[%s12848_s11 + $0x12] ss:$0 sm:$0xff] }
0x25d1   :  { %10625 = vmatpush3.msra.mxu0 %v9394_v50  ;;  %v9415_v50 = vld [vmem:[%s12846_s6 + $0x300] sm:$0xff] }
0x25d2   :  { %10626 = vmatprep.subr.mxu0 %v9393_v52 }
0x25d3   :  { %10627 = vmatpush3.msra.mxu0 %v9393_v52  ;;  %v9431_v52 = vld [vmem:[%s12846_s6 + $0x380] sm:$0xff] }
0x25d4   :  { %10628 = vmatprep.subr.mxu0 %v9392_v53 }
0x25d5   :  { %10629 = vmatpush3.msra.mxu0 %v9392_v53  ;;  %v9426_v53 = vld [vmem:[%s12846_s6 + $0x358] sm:$0xff] }
0x25d6   :  { %10630 = vmatprep.subr.mxu0 %v9391_v54 }
0x25d7   :  { %10631 = vmatpush3.msra.mxu0 %v9391_v54 }
0x25dc   :  { %v10623_v28 = vpop.f32.mrf.mxu1 }
0x25de   :  { %v5768_v20 = vpop.f32.mrf.mxu1 }
0x2690   :  { %v10612_v18 = vpop.f32.mrf.mxu0 }
0x2691   :  { %v5774_v29 = vadd.f32 %v10623_v28, %v10612_v18 }
0x2692   :  { %v5675_v31 = vpop.f32.mrf.mxu0 }
0x2693   :  { %v5778_v33 = vadd.f32 %v5774_v29, %v12063_v41  ;;  %v5769_v34 = vadd.f32 %v5768_v20, %v5675_v31 }
0x2695   :  { %v5777_v35 = vadd.f32 %v5769_v34, %v12061_v51  ;;  %v5788_v36 = vadd.f32 %v9386_v32, %v5778_v33 }
0x2697   :  { %v5796_v37 = vsel %vm153_vm2, %v5788_v36, 0.0  ;;  %v5787_v38 = vadd.f32 %v9386_v32, %v5777_v35 }
0x2698   :  { %5797 = vadd.xlane.f32.xlu1 %v5796_v37 }
0x2699   :  { %v5793_v39 = vsel %vm153_vm2, %v5787_v38, 0.0 }
0x269a   :  { %5794 = vadd.xlane.f32.xlu0 %v5793_v39 }
0x2721   :  { %v5798_v40 = vpop.xlane.xlu1 %5797 }
0x2722   :  { %v5800_v42 = vmul.f32 0.03125, %v5798_v40 }
0x2723   :  { %v5795_v43 = vpop.xlane.xlu0 %5794 }
0x2724   :  { %v5802_v44 = vsub.f32 %v5788_v36, %v5800_v42  ;;  %v5799_v45 = vmul.f32 0.03125, %v5795_v43 }
0x2726   :  { %v5801_v47 = vsub.f32 %v5787_v38, %v5799_v45  ;;  %v5804_v48 = vmul.f32 %v5802_v44, %v5802_v44  ;;  %v9418_v45 = vld [vmem:[%s12846_s6 + $0x318] sm:$0xff] }
0x2727   :  { %10654 = vmatprep.subr.mxu0 %v9418_v45 }
0x2728   :  { %v5808_v41 = vsel %vm153_vm2, %v5804_v48, 0.0  ;;  %v5803_v49 = vmul.f32 %v5801_v47, %v5801_v47  ;;  %v9417_v48 = vld [vmem:[%s12846_s6 + $0x310] sm:$0xff] }
0x2729   :  { %5809 = vadd.xlane.f32.xlu1 %v5808_v41  ;;  %v9433_v41 = vld [vmem:[%s12846_s6 + $0x390] sm:$0xff] }
0x272a   :  { %v5805_v51 = vsel %vm153_vm2, %v5803_v49, 0.0  ;;  %v9416_v49 = vld [vmem:[%s12846_s6 + $0x308] sm:$0xff] }
0x272b   :  { %5806 = vadd.xlane.f32.xlu0 %v5805_v51  ;;  %v9432_v51 = vld [vmem:[%s12846_s6 + $0x388] sm:$0xff] }
0x27b2   :  { %v5810_v58 = vpop.xlane.xlu1 %5809 }
0x27b3   :  { %v5812_v15 = vmul.f32 0.03125, %v5810_v58 }
0x27b4   :  { %v5807_v60 = vpop.xlane.xlu0 %5806 }
0x27b5   :  { %v5814_v61 = vadd.f32 1e-05, %v5812_v15  ;;  %v5811_v46 = vmul.f32 0.03125, %v5807_v60  ;;  %v9413_v60 = vld [vmem:[%s12848_s11 + $0x13] ss:$0 sm:$0xff] }
0x27b7   :  { %11020 = vrsqrt.f32 %v5814_v61  ;;  %v5813_v62 = vadd.f32 1e-05, %v5811_v46 }
0x27b9   :  { %11022 = vrsqrt.f32 %v5813_v62 }
0x27c4   :  { %v11021_v63 = vpop.eup %11020 }
0x27c5   :  { %v5818_v1 = vmul.f32 %v11021_v63, %v5802_v44 }
0x27c6   :  { %v11023_v2 = vpop.eup %11022 }
0x27c7   :  { %v5817_v3 = vmul.f32 %v11023_v2, %v5801_v47  ;;  %v5826_v4 = vmul.f32 %v9389_v0, %v5818_v1  ;;  %v9434_v47 = vld [vmem:[%s12846_s6 + $0x398] sm:$0xff] }
0x27c8   :  { %10676 = vmatprep.subr.mxu1 %v9434_v47 }
0x27c9   :  { %v5825_v6 = vmul.f32 %v9389_v0, %v5817_v3  ;;  %v5834_v8 = vadd.f32 %v9390_v5, %v5826_v4  ;;  %v9414_v0 = vld [vmem:[%s12848_s11 + $0x14] ss:$0 sm:$0xff] }
0x27ca   :  { %v9425_v4 = vld [vmem:[%s12846_s6 + $0x350] sm:$0xff] }
0x27cb   :  { %v5833_v7 = vadd.f32 %v9390_v5, %v5825_v6  ;;  %v9424_v5 = vld [vmem:[%s12846_s6 + $0x348] sm:$0xff]  ;;  %v9423_v6 = vld [vmem:[%s12846_s6 + $0x340] sm:$0xff] }
0x27cd   :  { %10632 = vmatprep.mubr.msk.f32.mxu0 %vm153_vm2, %v5833_v7 }
0x27ce   :  { %10633 = vmatmul.mubr.msk.f32.vlgmr.msra.gmra.mxu0 %vm153_vm2, %v5834_v8 }
0x27cf   :  { %10655 = vmatpush3.msra.mxu0 %v9418_v45 }
0x27d0   :  { %10656 = vmatprep.subr.mxu0 %v9417_v48 }
0x27d1   :  { %10657 = vmatpush3.msra.mxu0 %v9417_v48 }
0x27d2   :  { %10658 = vmatprep.subr.mxu0 %v9416_v49 }
0x27d3   :  { %10659 = vmatpush3.msra.mxu0 %v9416_v49 }
0x27d4   :  { %10660 = vmatprep.subr.mxu0 %v9415_v50 }
0x27d5   :  { %10661 = vmatpush3.msra.mxu0 %v9415_v50 }
0x27d6   :  { %10665 = vmatprep.subr.mxu0 %v9426_v53 }
0x288e   :  { %v10634_v16 = vpop.f32.mrf.mxu0 }
0x288f   :  { %v5937_v17 = vadd.f32 %v10634_v16, %v9405_v14 }
0x2890   :  { %v5931_v19 = vpop.f32.mrf.mxu0 }
0x2891   :  { %v5932_v21 = vadd.f32 %v9405_v14, %v5931_v19  ;;  %v5941_v25 = vmax.f32 %v5937_v17, 0.0  ;;  %v9428_v17 = vld [vmem:[%s12847_s7 + $0x14] ss:$0 sm:$0xff] }
0x2893   :  { %v5940_v26 = vmax.f32 %v5932_v21, 0.0 }
0x2895   :  { %10651 = vmatprep.mubr.msk.f32.mxu1 %vm1434_vm8, %v5940_v26  ;;  %v9420_v26 = vld [vmem:[%s12847_s7 + $0x12] ss:$0 sm:$0xff] }
0x2896   :  { %10652 = vmatmul.mubr.msk.f32.vlgmr.msra.gmra.mxu1 %vm1434_vm8, %v5941_v25 }
0x2897   :  { %10677 = vmatpush3.msra.mxu1 %v9434_v47 }
0x2898   :  { %10678 = vmatprep.subr.mxu1 %v9433_v41 }
0x2899   :  { %10679 = vmatpush3.msra.mxu1 %v9433_v41  ;;  %v9470_v41 = vld [vmem:[%s12847_s7 + $0x17] ss:$0 sm:$0xff] }
0x289a   :  { %10680 = vmatprep.subr.mxu1 %v9432_v51 }
0x289b   :  { %10681 = vmatpush3.msra.mxu1 %v9432_v51 }
0x289c   :  { %10682 = vmatprep.subr.mxu1 %v9431_v52 }
0x289d   :  { %10683 = vmatpush3.msra.mxu1 %v9431_v52 }
0x289e   :  { %10692 = vmatprep.subr.mxu1 %v11072_v9 }
0x2956   :  { %v10653_v27 = vpop.f32.mrf.mxu1 }
0x2957   :  { %v6026_v28 = vadd.f32 %v10653_v27, %v9408_v23  ;;  %v9452_v27 = vld [vmem:[%s12846_s6 + $0x338] sm:$0xff] }
0x2958   :  { %v6020_v18 = vpop.f32.mrf.mxu1 }
0x2959   :  { %v6021_v29 = vadd.f32 %v9408_v23, %v6020_v18  ;;  %v6030_v20 = vadd.f32 %v6026_v28, %v5834_v8  ;;  %v9451_v18 = vld [vmem:[%s12846_s6 + $0x330] sm:$0xff] }
0x295b   :  { %v6038_v31 = vsel %vm153_vm2, %v6030_v20, 0.0  ;;  %v6029_v32 = vadd.f32 %v6021_v29, %v5833_v7  ;;  %v9436_v7 = vld [vmem:[%s12847_s7 + $0x16] ss:$0 sm:$0xff]  ;;  %v9450_v29 = vld [vmem:[%s12846_s6 + $0x328] sm:$0xff] }
0x295c   :  { %6039 = vadd.xlane.f32.xlu1 %v6038_v31  ;;  %v9468_v31 = vld [vmem:[%s12846_s6 + $0x3b8] sm:$0xff] }
0x295d   :  { %v6035_v33 = vsel %vm153_vm2, %v6029_v32, 0.0 }
0x295e   :  { %6036 = vadd.xlane.f32.xlu0 %v6035_v33  ;;  %v9466_v33 = vld [vmem:[%s12846_s6 + $0x3a8] sm:$0xff] }
0x29e5   :  { %v6040_v34 = vpop.xlane.xlu1 %6039 }
0x29e6   :  { %v6042_v35 = vmul.f32 0.03125, %v6040_v34  ;;  %v9465_v34 = vld [vmem:[%s12846_s6 + $0x3a0] sm:$0xff] }
0x29e7   :  { %v6037_v36 = vpop.xlane.xlu0 %6036 }
0x29e8   :  { %v6044_v37 = vsub.f32 %v6030_v20, %v6042_v35  ;;  %v6041_v38 = vmul.f32 0.03125, %v6037_v36  ;;  %v9449_v20 = vld [vmem:[%s12846_s6 + $0x320] sm:$0xff] }
0x29ea   :  { %v6043_v39 = vsub.f32 %v6029_v32, %v6041_v38  ;;  %v6046_v40 = vmul.f32 %v6044_v37, %v6044_v37  ;;  %v9467_v32 = vld [vmem:[%s12846_s6 + $0x3b0] sm:$0xff] }
0x29ec   :  { %v6050_v42 = vsel %vm153_vm2, %v6046_v40, 0.0  ;;  %v6045_v43 = vmul.f32 %v6043_v39, %v6043_v39 }
0x29ed   :  { %6051 = vadd.xlane.f32.xlu1 %v6050_v42 }
0x29ee   :  { %v6047_v44 = vsel %vm153_vm2, %v6045_v43, 0.0 }
0x29ef   :  { %6048 = vadd.xlane.f32.xlu0 %v6047_v44 }
0x2a76   :  { %v6052_v54 = vpop.xlane.xlu1 %6051 }
0x2a77   :  { %v6054_v55 = vmul.f32 0.03125, %v6052_v54 }
0x2a78   :  { %v6049_v56 = vpop.xlane.xlu0 %6048 }
0x2a79   :  { %v6056_v22 = vadd.f32 1e-05, %v6054_v55  ;;  %v6053_v57 = vmul.f32 0.03125, %v6049_v56 }
0x2a7b   :  { %11024 = vrsqrt.f32 %v6056_v22  ;;  %v6055_v58 = vadd.f32 1e-05, %v6053_v57 }
0x2a7d   :  { %11026 = vrsqrt.f32 %v6055_v58 }
0x2a88   :  { %v11025_v15 = vpop.eup %11024 }
0x2a89   :  { %v6060_v61 = vmul.f32 %v11025_v15, %v6044_v37 }
0x2a8a   :  { %v11027_v46 = vpop.eup %11026 }
0x2a8b   :  { %v6059_v62 = vmul.f32 %v11027_v46, %v6043_v39  ;;  %v6068_v63 = vmul.f32 %v9413_v60, %v6060_v61 }
0x2a8d   :  { %v6067_v1 = vmul.f32 %v9413_v60, %v6059_v62  ;;  %v12332_v3 = vadd.f32 %v9414_v0, %v6068_v63  ;;  %v9460_v63 = vld [vmem:[%s12846_s6 + $0x378] sm:$0xff] }
0x2a8f   :  { %v12330_v2 = vadd.f32 %v9414_v0, %v6067_v1 }
0x2a91   :  { %10662 = vmatprep.mubr.msk.f32.mxu0 %vm153_vm2, %v12330_v2  ;;  %10684 = vmatprep.mubr.msk.f32.mxu1 %vm153_vm2, %v12330_v2 }
0x2a92   :  { %10663 = vmatmul.mubr.msk.f32.vlgmr.msra.gmra.mxu0 %vm153_vm2, %v12332_v3  ;;  %10685 = vmatmul.mubr.msk.f32.vlgmr.msra.gmra.mxu1 %vm153_vm2, %v12332_v3 }
0x2a93   :  { %10666 = vmatpush3.msra.mxu0 %v9426_v53  ;;  %10673 = vmatprep.mubr.msk.f32.mxu0 %vm153_vm2, %v12330_v2 }
0x2a94   :  { %10667 = vmatprep.subr.mxu0 %v9425_v4  ;;  %10694 = vmatprep.mubr.msk.f32.mxu1 %vm11073_vm11, %v11072_v9 }
0x2a95   :  { %10668 = vmatpush3.msra.mxu0 %v9425_v4  ;;  %v9459_v4 = vld [vmem:[%s12846_s6 + $0x370] sm:$0xff] }
0x2a96   :  { %10669 = vmatprep.subr.mxu0 %v9424_v5 }
0x2a97   :  { %10670 = vmatpush3.msra.mxu0 %v9424_v5  ;;  %v9458_v5 = vld [vmem:[%s12846_s6 + $0x368] sm:$0xff] }
0x2a98   :  { %10671 = vmatprep.subr.mxu0 %v9423_v6 }
0x2a99   :  { %10672 = vmatpush3.msra.mxu0 %v9423_v6  ;;  %v9457_v6 = vld [vmem:[%s12846_s6 + $0x360] sm:$0xff] }
0x2a9a   :  { %10674 = vmatmul.mubr.msk.f32.vlgmr.msra.gmra.mxu0 %vm153_vm2, %v12332_v3  ;;  %10687 = vmatprep.subr.mxu0 %v11072_v9 }
0x2a9b   :  { %10689 = vmatprep.mubr.msk.f32.mxu0 %vm11073_vm11, %v11072_v9 }
0x2b52   :  { %v10686_v8 = vpop.f32.mrf.mxu1  ;;  %v10664_v13 = vpop.f32.mrf.mxu0 }
0x2b53   :  { %v12363_v12 = vadd.f32 %v10686_v8, %v9436_v7  ;;  %v6168_v28 = vadd.f32 %v10664_v13, %v9420_v26 }
0x2b54   :  { %v6338_v10 = vpop.f32.mrf.mxu1  ;;  %v6162_v14 = vpop.f32.mrf.mxu0 }
0x2b55   :  { %v6339_v11 = vadd.f32 %v9436_v7, %v6338_v10  ;;  %v6163_v25 = vadd.f32 %v9420_v26, %v6162_v14  ;;  %v9462_v10 = vld [vmem:[%s12847_s7 + $0x15] ss:$0 sm:$0xff]  ;;  %v9454_v14 = vld [vmem:[%s12847_s7 + $0x13] ss:$0 sm:$0xff] }
0x2b57   :  { %10693 = vmatpush3.msra.mxu1 %v6339_v11 }
0x2b58   :  { %10702 = vmatprep.subr.mxu1 %v11072_v9 }
0x2b5a   :  { %v10675_v16 = vpop.f32.mrf.mxu0 }
0x2b5b   :  { %v6256_v23 = vadd.f32 %v10675_v16, %v9428_v17 }
0x2b5c   :  { %v6250_v19 = vpop.f32.mrf.mxu0 }
0x2b5d   :  { %v6251_v21 = vadd.f32 %v9428_v17, %v6250_v19 }
0x2b5f   :  { %10688 = vmatpush3.xpose.msk.msra.mxu0 %vm411_vm3, %v6251_v21 }
0x2b60   :  { %10697 = vmatprep.subr.mxu0 %v11072_v9 }
0x2b62   :  { %10690 = vmatmul.mubr.msk.f32.vlgmr.msra.gmra.mxu0 %vm411_vm3, %v6163_v25 }
0x2b63   :  { %10698 = vmatpush3.xpose.msk.msra.mxu0 %vm411_vm3, %v6256_v23  ;;  %10699 = vmatprep.mubr.msk.f32.mxu0 %vm11073_vm11, %v11072_v9 }
0x2b64   :  { %10707 = vmatprep.subr.mxu0 %v9452_v27 }
0x2b66   :  { %10700 = vmatmul.mubr.msk.f32.vlgmr.msra.gmra.mxu0 %vm411_vm3, %v6168_v28 }
0x2b67   :  { %10708 = vmatpush3.msra.mxu0 %v9452_v27  ;;  %10715 = vmatprep.mubr.msk.f32.mxu0 %vm153_vm2, %v12330_v2 }
0x2b68   :  { %10709 = vmatprep.subr.mxu0 %v9451_v18 }
0x2b69   :  { %10710 = vmatpush3.msra.mxu0 %v9451_v18 }
0x2b6a   :  { %10711 = vmatprep.subr.mxu0 %v9450_v29 }
0x2b6b   :  { %10712 = vmatpush3.msra.mxu0 %v9450_v29 }
0x2b6c   :  { %10713 = vmatprep.subr.mxu0 %v9449_v20 }
0x2b6d   :  { %10714 = vmatpush3.msra.mxu0 %v9449_v20 }
0x2b6e   :  { %10716 = vmatmul.mubr.msk.f32.vlgmr.msra.gmra.mxu0 %vm153_vm2, %v12332_v3  ;;  %10729 = vmatprep.subr.mxu0 %v9468_v31 }
0x2b6f   :  { %10730 = vmatpush3.msra.mxu0 %v9468_v31  ;;  %10737 = vmatprep.mubr.msk.f32.mxu0 %vm153_vm2, %v12330_v2 }
0x2b70   :  { %10731 = vmatprep.subr.mxu0 %v9467_v32 }
0x2b71   :  { %10732 = vmatpush3.msra.mxu0 %v9467_v32 }
0x2b72   :  { %10733 = vmatprep.subr.mxu0 %v9466_v33 }
0x2b73   :  { %10734 = vmatpush3.msra.mxu0 %v9466_v33 }
0x2b74   :  { %10735 = vmatprep.subr.mxu0 %v9465_v34 }
0x2b75   :  { %10736 = vmatpush3.msra.mxu0 %v9465_v34 }
0x2b76   :  { %10738 = vmatmul.mubr.msk.f32.vlgmr.msra.gmra.mxu0 %vm153_vm2, %v12332_v3  ;;  %10750 = vmatprep.subr.mxu0 %v11072_v9 }
0x2b77   :  { %10752 = vmatprep.mubr.msk.f32.mxu0 %vm11073_vm11, %v11072_v9 }
0x2c22   :  { %v6419_v35 = vpop.f32.mrf.mxu0 }
0x2c23   :  { %v6423_v36 = vmul.f32 0.25, %v6419_v35 }
0x2c24   :  { %v10691_v37 = vpop.f32.mrf.mxu0 }
0x2c25   :  { %v6424_v38 = vsel %vm11883_vm5, %v6423_v36, -1e+09 }
0x2c26   :  { %v6581_v39 = vpop.f32.mrf.mxu0  ;;  %v6425_v40 = vsel %vm3589_vm4, %v6424_v38, -inf }
0x2c27   :  { %v6585_v42 = vmul.f32 0.25, %v6581_v39  ;;  %6426 = vmax.xlane.f32.xlu0 %v6425_v40 }
0x2c28   :  { %v10701_v43 = vpop.f32.mrf.mxu0 }
0x2c29   :  { %v6586_v44 = vsel %vm11879_vm1, %v6585_v42, -1e+09 }
0x2c2a   :  { %v6587_v45 = vsel %vm3589_vm4, %v6586_v44, -inf }
0x2c2b   :  { %6588 = vmax.xlane.f32.xlu1 %v6587_v45 }
0x2c2e   :  { %v10717_v47 = vpop.f32.mrf.mxu0 }
0x2c2f   :  { %v6761_v21 = vadd.f32 %v10717_v47, %v9454_v14  ;;  %v9481_v47 = vld [vmem:[%s12846_s6 + $0x3f0] sm:$0xff] }
0x2c30   :  { %v6755_v48 = vpop.f32.mrf.mxu0 }
0x2c31   :  { %v6756_v25 = vadd.f32 %v9454_v14, %v6755_v48  ;;  %v9480_v48 = vld [vmem:[%s12846_s6 + $0x3e8] sm:$0xff] }
0x2c36   :  { %v10739_v49 = vpop.f32.mrf.mxu0 }
0x2c37   :  { %v12423_v51 = vadd.f32 %v10739_v49, %v9470_v41 }
0x2c38   :  { %v6931_v26 = vpop.f32.mrf.mxu0 }
0x2c39   :  { %v6932_v23 = vadd.f32 %v9470_v41, %v6931_v26 }
0x2cb0   :  { %v6427_v50 = vpop.xlane.xlu0 %6426 }
0x2cb1   :  { %v6428_v52 = vsub.f32 %v6424_v38, %v6427_v50 }
0x2cb3   :  { %v6429_v53 = vmul.f32 1.442695, %v6428_v52 }
0x2cb4   :  { %v6589_v54 = vpop.xlane.xlu1 %6588 }
0x2cb5   :  { %11028 = vpow2.f32 %v6429_v53  ;;  %v6590_v55 = vsub.f32 %v6586_v44, %v6589_v54  ;;  %v9448_v54 = vld [vmem:[%s12846_s6 + $0x3d8] sm:$0xff] }
0x2cb7   :  { %v6591_v56 = vmul.f32 1.442695, %v6590_v55 }
0x2cb9   :  { %11030 = vpow2.f32 %v6591_v56  ;;  %v9447_v56 = vld [vmem:[%s12846_s6 + $0x3d0] sm:$0xff] }
0x2cc2   :  { %v11029_v22 = vpop.eup %11028 }
0x2cc3   :  { %v6431_v57 = vsel %vm3589_vm4, %v11029_v22, 0.0 }
0x2cc4   :  { %6432 = vadd.xlane.f32.xlu0 %v6431_v57  ;;  %v9512_v57 = vld [vmem:[%s12846_s6 + $0x558] sm:$0xff] }
0x2cc6   :  { %v11031_v58 = vpop.eup %11030 }
0x2cc7   :  { %v6593_v15 = vsel %vm3589_vm4, %v11031_v58, 0.0 }
0x2cc8   :  { %6594 = vadd.xlane.f32.xlu1 %v6593_v15  ;;  %v9510_v15 = vld [vmem:[%s12846_s6 + $0x548] sm:$0xff] }
0x2d4d   :  { %v6433_v60 = vpop.xlane.xlu0 %6432 }
0x2d4e   :  { %11032 = vrcp.f32 %v6433_v60  ;;  %v9509_v60 = vld [vmem:[%s12846_s6 + $0x540] sm:$0xff] }
0x2d51   :  { %v6595_v61 = vpop.xlane.xlu1 %6594 }
0x2d52   :  { %11034 = vrcp.f32 %v6595_v61  ;;  %v9479_v61 = vld [vmem:[%s12846_s6 + $0x3e0] sm:$0xff] }
0x2d5b   :  { %v11033_v46 = vpop.eup %11032 }
0x2d5c   :  { %v6435_v62 = vmul.f32 %v11033_v46, %v11029_v22  ;;  %v9445_v22 = vld [vmem:[%s12846_s6 + $0x3c0] sm:$0xff] }
0x2d5e   :  { %10695 = vmatmul.mubr.msk.f32.vlgmr.msra.gmra.mxu1 %vm3589_vm4, %v6435_v62 }
0x2d5f   :  { %v11035_v0 = vpop.eup %11034  ;;  %10703 = vmatpush3.msra.mxu1 %v12363_v12  ;;  %10704 = vmatprep.mubr.msk.f32.mxu1 %vm11073_vm11, %v11072_v9 }
0x2d60   :  { %10718 = vmatprep.subr.mxu1 %v9460_v63  ;;  %v6597_v1 = vmul.f32 %v11035_v0, %v11031_v58  ;;  %v9511_v58 = vld [vmem:[%s12846_s6 + $0x550] sm:$0xff] }
0x2d62   :  { %10705 = vmatmul.mubr.msk.f32.vlgmr.msra.gmra.mxu1 %vm3589_vm4, %v6597_v1 }
0x2d63   :  { %10719 = vmatpush3.msra.mxu1 %v9460_v63  ;;  %10726 = vmatprep.mubr.msk.f32.mxu1 %vm153_vm2, %v12330_v2 }
0x2d64   :  { %10720 = vmatprep.subr.mxu1 %v9459_v4 }
0x2d65   :  { %10721 = vmatpush3.msra.mxu1 %v9459_v4 }
0x2d66   :  { %10722 = vmatprep.subr.mxu1 %v9458_v5 }
0x2d67   :  { %10723 = vmatpush3.msra.mxu1 %v9458_v5  ;;  %v9514_v5 = vld [vmem:[%s12847_s7 + $0x20] ss:$0 sm:$0xff] }
0x2d68   :  { %10724 = vmatprep.subr.mxu1 %v9457_v6 }
0x2d69   :  { %10725 = vmatpush3.msra.mxu1 %v9457_v6 }
0x2d6a   :  { %10727 = vmatmul.mubr.msk.f32.vlgmr.msra.gmra.mxu1 %vm153_vm2, %v12332_v3  ;;  %10740 = vmatprep.subr.mxu1 %v11072_v9 }
0x2d6b   :  { %10742 = vmatprep.mubr.msk.f32.mxu1 %vm11073_vm11, %v11072_v9 }
0x2e1e   :  { %v12451_v7 = vpop.f32.mrf.mxu1 }
0x2e20   :  { %v10696_v8 = vpop.f32.mrf.mxu1 }
0x2e22   :  { %v12453_v12 = vpop.f32.mrf.mxu1 }
0x2e24   :  { %v10706_v13 = vpop.f32.mrf.mxu1 }
0x2e2a   :  { %v10728_v11 = vpop.f32.mrf.mxu1 }
0x2e2b   :  { %v6849_v16 = vadd.f32 %v10728_v11, %v9462_v10  ;;  %v9496_v11 = vld [vmem:[%s12848_s11 + $0x15] ss:$0 sm:$0xff] }
0x2e2c   :  { %v6843_v17 = vpop.f32.mrf.mxu1 }
0x2e2d   :  { %v6844_v19 = vadd.f32 %v9462_v10, %v6843_v17  ;;  %10751 = vmatpush3.xpose.msk.msra.mxu0 %vm411_vm3, %v6849_v16 }
0x2e2e   :  { %10760 = vmatprep.subr.msk.mxu0 %vm411_vm3, %v9482_v30 }
0x2e2f   :  { %10741 = vmatpush3.xpose.msk.msra.mxu1 %vm411_vm3, %v6844_v19 }
0x2e30   :  { %10753 = vmatmul.mubr.msk.f32.vlgmr.msra.gmra.mxu0 %vm411_vm3, %v6761_v21  ;;  %10745 = vmatprep.subr.mxu1 %v11072_v9 }
0x2e31   :  { %10761 = vmatpush3.xpose.msk.msra.mxu0 %vm411_vm3, %v9482_v30 }
0x2e32   :  { %10743 = vmatmul.mubr.msk.f32.vlgmr.msra.gmra.mxu1 %vm411_vm3, %v6756_v25  ;;  %10762 = vmatprep.subr.msk.mxu0 %vm411_vm3, %v9481_v47 }
0x2e33   :  { %10746 = vmatpush3.msra.mxu1 %v6932_v23  ;;  %10747 = vmatprep.mubr.msk.f32.mxu1 %vm11073_vm11, %v11072_v9 }
0x2e34   :  { %10755 = vmatprep.subr.mxu1 %v11072_v9 }
0x2e35   :  { %10763 = vmatpush3.xpose.msk.msra.mxu0 %vm411_vm3, %v9481_v47 }
0x2e36   :  { %10764 = vmatprep.subr.msk.mxu0 %vm411_vm3, %v9480_v48 }
0x2e39   :  { %10765 = vmatpush3.xpose.msk.msra.mxu0 %vm411_vm3, %v9480_v48 }
0x2e3a   :  { %10766 = vmatprep.subr.msk.mxu0 %vm411_vm3, %v9479_v61 }
0x2e3d   :  { %10767 = vmatpush3.xpose.msk.msra.mxu0 %vm411_vm3, %v9479_v61  ;;  %v9549_v61 = vld [vmem:[%s12846_s6 + $0x5a8] sm:$0xff] }
0x2ef0   :  { %v7174_v27 = vpop.f32.mrf.mxu0 }
0x2ef1   :  { %v7178_v28 = vmul.f32 0.25, %v7174_v27 }
0x2ef2   :  { %v7012_v18 = vpop.f32.mrf.mxu1  ;;  %v10754_v29 = vpop.f32.mrf.mxu0 }
0x2ef3   :  { %v7016_v20 = vmul.f32 0.25, %v7012_v18  ;;  %v7179_v31 = vsel %vm11879_vm1, %v7178_v28, -1e+09 }
0x2ef4   :  { %v10744_v32 = vpop.f32.mrf.mxu1  ;;  %v7180_v33 = vsel %vm3589_vm4, %v7179_v31, -inf }
0x2ef5   :  { %7181 = vmax.xlane.f32.xlu1 %v7180_v33  ;;  %v7017_v34 = vsel %vm11883_vm5, %v7016_v20, -1e+09  ;;  %v9504_v33 = vld [vmem:[%s12846_s6 + $0x518] sm:$0xff] }
0x2ef6   :  { %v7018_v35 = vsel %vm3589_vm4, %v7017_v34, -inf  ;;  %10782 = vmatprep.subr.mxu0 %v9504_v33 }
0x2ef7   :  { %7019 = vmax.xlane.f32.xlu0 %v7018_v35  ;;  %v9502_v35 = vld [vmem:[%s12846_s6 + $0x508] sm:$0xff] }
0x2f7e   :  { %v7182_v36 = vpop.xlane.xlu1 %7181 }
0x2f7f   :  { %v7183_v37 = vsub.f32 %v7179_v31, %v7182_v36  ;;  %v9501_v36 = vld [vmem:[%s12846_s6 + $0x500] sm:$0xff] }
0x2f80   :  { %v7020_v38 = vpop.xlane.xlu0 %7019 }
0x2f81   :  { %v7184_v39 = vmul.f32 1.442695, %v7183_v37  ;;  %v7021_v40 = vsub.f32 %v7017_v34, %v7020_v38  ;;  %v9503_v34 = vld [vmem:[%s12846_s6 + $0x510] sm:$0xff] }
0x2f83   :  { %11036 = vpow2.f32 %v7184_v39  ;;  %v7022_v42 = vmul.f32 1.442695, %v7021_v40 }
0x2f85   :  { %11038 = vpow2.f32 %v7022_v42 }
0x2f90   :  { %v11037_v24 = vpop.eup %11036 }
0x2f91   :  { %v7186_v43 = vsel %vm3589_vm4, %v11037_v24, 0.0 }
0x2f92   :  { %v11039_v44 = vpop.eup %11038  ;;  %7187 = vadd.xlane.f32.xlu1 %v7186_v43 }
0x2f93   :  { %v7024_v45 = vsel %vm3589_vm4, %v11039_v44, 0.0 }
0x2f94   :  { %7025 = vadd.xlane.f32.xlu0 %v7024_v45 }
0x301b   :  { %v7188_v41 = vpop.xlane.xlu1 %7187 }
0x301d   :  { %v7026_v49 = vpop.xlane.xlu0 %7025 }
0x301e   :  { %11040 = vrcp.f32 %v7026_v49 }
0x301f   :  { %11042 = vrcp.f32 %v7188_v41  ;;  %v9500_v41 = vld [vmem:[%s12848_s11 + $0x17] ss:$0 sm:$0xff] }
0x302b   :  { %v11041_v50 = vpop.eup %11040 }
0x302c   :  { %v7028_v52 = vmul.f32 %v11041_v50, %v11039_v44  ;;  %v11043_v53 = vpop.eup %11042  ;;  %v9499_v44 = vld [vmem:[%s12848_s11 + $0x16] ss:$0 sm:$0xff] }
0x302d   :  { %v7190_v55 = vmul.f32 %v11043_v53, %v11037_v24  ;;  %v9519_v53 = vld [vmem:[%s12846_s6 + $0x598] sm:$0xff] }
0x302e   :  { %10748 = vmatmul.mubr.msk.f32.vlgmr.msra.gmra.mxu1 %vm3589_vm4, %v7028_v52 }
0x302f   :  { %10756 = vmatpush3.msra.mxu1 %v12423_v51  ;;  %10757 = vmatprep.mubr.msk.f32.mxu1 %vm11073_vm11, %v11072_v9  ;;  %v9446_v51 = vld [vmem:[%s12846_s6 + $0x3c8] sm:$0xff] }
0x3030   :  { %10771 = vmatprep.subr.msk.mxu1 %vm411_vm3, %v9448_v54 }
0x3032   :  { %10758 = vmatmul.mubr.msk.f32.vlgmr.msra.gmra.mxu1 %vm3589_vm4, %v7190_v55  ;;  %v9517_v55 = vld [vmem:[%s12846_s6 + $0x588] sm:$0xff] }
0x3033   :  { %10772 = vmatpush3.xpose.msk.msra.mxu1 %vm411_vm3, %v9448_v54  ;;  %10779 = vmatprep.mubr.msk.f32.mxu1 %vm411_vm3, %v12451_v7  ;;  %v9518_v54 = vld [vmem:[%s12846_s6 + $0x590] sm:$0xff] }
0x3034   :  { %10773 = vmatprep.subr.msk.mxu1 %vm411_vm3, %v9447_v56 }
0x3037   :  { %10774 = vmatpush3.xpose.msk.msra.mxu1 %vm411_vm3, %v9447_v56  ;;  %v9516_v56 = vld [vmem:[%s12846_s6 + $0x580] sm:$0xff] }
0x3038   :  { %10775 = vmatprep.subr.msk.mxu1 %vm411_vm3, %v9446_v51 }
0x303b   :  { %10776 = vmatpush3.xpose.msk.msra.mxu1 %vm411_vm3, %v9446_v51  ;;  %v9536_v51 = vld [vmem:[%s12846_s6 + $0x538] sm:$0xff] }
0x303c   :  { %10777 = vmatprep.subr.msk.mxu1 %vm411_vm3, %v9445_v22 }
0x303f   :  { %10778 = vmatpush3.xpose.msk.msra.mxu1 %vm411_vm3, %v9445_v22  ;;  %v9535_v22 = vld [vmem:[%s12846_s6 + $0x530] sm:$0xff] }
0x3040   :  { %10793 = vmatprep.subr.mxu1 %v11072_v9 }
0x3042   :  { %10780 = vmatmul.mubr.msk.f32.vlgmr.msra.gmra.mxu1 %vm411_vm3, %v12453_v12 }
0x3043   :  { %10794 = vmatpush3.msra.mxu1 %v9512_v57  ;;  %10801 = vmatprep.mubr.msk.f32.mxu1 %vm11073_vm11, %v11072_v9  ;;  %v9534_v57 = vld [vmem:[%s12846_s6 + $0x528] sm:$0xff] }
0x3044   :  { %10795 = vmatprep.subr.mxu1 %v11072_v9 }
0x3045   :  { %10796 = vmatpush3.msra.mxu1 %v9511_v58  ;;  %v9533_v58 = vld [vmem:[%s12846_s6 + $0x520] sm:$0xff] }
0x3046   :  { %10797 = vmatprep.subr.mxu1 %v11072_v9 }
0x3047   :  { %10798 = vmatpush3.msra.mxu1 %v9510_v15  ;;  %v9551_v15 = vld [vmem:[%s12846_s6 + $0x5b8] sm:$0xff] }
0x3048   :  { %10799 = vmatprep.subr.mxu1 %v11072_v9 }
0x3049   :  { %10800 = vmatpush3.msra.mxu1 %v9509_v60  ;;  %v9550_v60 = vld [vmem:[%s12846_s6 + $0x5b0] sm:$0xff] }
0x304a   :  { %10802 = vmatmul.mubr.msk.f32.vlgmr.msra.gmra.mxu1 %vm153_vm2, %v12016_v59 }
0x30ee   :  { %v7098_v46 = vpop.f32.mrf.mxu1 }
0x30ef   :  { %10768 = vmatprep.mubr.msk.f32.mxu0 %vm411_vm3, %v7098_v46  ;;  %v9548_v46 = vld [vmem:[%s12846_s6 + $0x5a0] sm:$0xff] }
0x30f0   :  { %v10749_v62 = vpop.f32.mrf.mxu1 }
0x30f2   :  { %v7260_v63 = vpop.f32.mrf.mxu1 }
0x30f3   :  { %10769 = vmatmul.mubr.msk.f32.vlgmr.msra.gmra.mxu0 %vm411_vm3, %v7260_v63  ;;  %v9506_v63 = vld [vmem:[%s12847_s7 + $0x1e] ss:$0 sm:$0xff] }
0x30f4   :  { %v10759_v0 = vpop.f32.mrf.mxu1  ;;  %10783 = vmatpush3.msra.mxu0 %v9504_v33 }
0x30f5   :  { %10784 = vmatprep.subr.mxu0 %v9503_v34 }
0x30f6   :  { %10785 = vmatpush3.msra.mxu0 %v9503_v34 }
0x30f7   :  { %10786 = vmatprep.subr.mxu0 %v9502_v35 }
0x30f8   :  { %10787 = vmatpush3.msra.mxu0 %v9502_v35 }
0x30f9   :  { %10788 = vmatprep.subr.mxu0 %v9501_v36 }
0x30fa   :  { %10789 = vmatpush3.msra.mxu0 %v9501_v36 }
0x30fb   :  { %10804 = vmatprep.subr.mxu0 %v11072_v9 }
0x3102   :  { %v10781_v1 = vpop.f32.mrf.mxu1 }
0x3104   :  { %v7446_v4 = vpop.f32.mrf.mxu1 }
0x310a   :  { %v7686_v6 = vpop.f32.mrf.mxu1 }
0x310b   :  { %v7687_v7 = vadd.f32 %v9514_v5, %v7686_v6  ;;  %v9521_v5 = vld [vmem:[%s12847_s7 + $0x22] ss:$0 sm:$0xff] }
0x310c   :  { %v10803_v8 = vpop.f32.mrf.mxu1 }
0x310d   :  { %10815 = vmatprep.subr.msk.mxu1 %vm411_vm3, %v7687_v7 }
0x310e   :  { %10816 = vmatpush3.xpose.msk.msra.mxu1 %vm411_vm3, %v7687_v7 }
0x31b3   :  { %v10770_v12 = vpop.f32.mrf.mxu0 }
0x31b4   :  { %v7452_v13 = vadd.f32 %v10781_v1, %v10770_v12  ;;  %v9538_v12 = vld [vmem:[%s12847_s7 + $0x1f] ss:$0 sm:$0xff] }
0x31b5   :  { %v7353_v10 = vpop.f32.mrf.mxu0 }
0x31b6   :  { %v7456_v14 = vadd.f32 %v7452_v13, %v12332_v3  ;;  %v7447_v16 = vadd.f32 %v7446_v4, %v7353_v10 }
0x31b8   :  { %v7455_v17 = vadd.f32 %v7447_v16, %v12330_v2  ;;  %v7466_v19 = vadd.f32 %v9496_v11, %v7456_v14 }
0x31ba   :  { %v7474_v21 = vsel %vm153_vm2, %v7466_v19, 0.0  ;;  %v7465_v26 = vadd.f32 %v9496_v11, %v7455_v17 }
0x31bb   :  { %7475 = vadd.xlane.f32.xlu1 %v7474_v21 }
0x31bc   :  { %v7471_v25 = vsel %vm153_vm2, %v7465_v26, 0.0 }
0x31bd   :  { %7472 = vadd.xlane.f32.xlu0 %v7471_v25 }
0x3244   :  { %v7476_v23 = vpop.xlane.xlu1 %7475 }
0x3245   :  { %v7478_v27 = vmul.f32 0.03125, %v7476_v23 }
0x3246   :  { %v7473_v28 = vpop.xlane.xlu0 %7472 }
0x3247   :  { %v7480_v18 = vsub.f32 %v7466_v19, %v7478_v27  ;;  %v7477_v29 = vmul.f32 0.03125, %v7473_v28 }
0x3249   :  { %v7479_v20 = vsub.f32 %v7465_v26, %v7477_v29  ;;  %v7482_v31 = vmul.f32 %v7480_v18, %v7480_v18 }
0x324b   :  { %v7486_v3 = vsel %vm153_vm2, %v7482_v31, 0.0  ;;  %v7481_v32 = vmul.f32 %v7479_v20, %v7479_v20 }
0x324c   :  { %7487 = vadd.xlane.f32.xlu1 %v7486_v3 }
0x324d   :  { %v7483_v2 = vsel %vm153_vm2, %v7481_v32, 0.0 }
0x324e   :  { %7484 = vadd.xlane.f32.xlu0 %v7483_v2 }
0x32d5   :  { %v7488_v37 = vpop.xlane.xlu1 %7487 }
0x32d6   :  { %v7490_v38 = vmul.f32 0.03125, %v7488_v37 }
0x32d7   :  { %v7485_v39 = vpop.xlane.xlu0 %7484 }
0x32d8   :  { %v7492_v40 = vadd.f32 1e-05, %v7490_v38  ;;  %v7489_v42 = vmul.f32 0.03125, %v7485_v39 }
0x32da   :  { %11044 = vrsqrt.f32 %v7492_v40  ;;  %v7491_v24 = vadd.f32 1e-05, %v7489_v42  ;;  %v9544_v40 = vld [vmem:[%s12846_s6 + $0x578] sm:$0xff]  ;;  %v9543_v42 = vld [vmem:[%s12846_s6 + $0x570] sm:$0xff] }
0x32dc   :  { %11046 = vrsqrt.f32 %v7491_v24  ;;  %v9542_v24 = vld [vmem:[%s12846_s6 + $0x568] sm:$0xff] }
0x32e7   :  { %v11045_v43 = vpop.eup %11044 }
0x32e8   :  { %v7496_v45 = vmul.f32 %v11045_v43, %v7480_v18  ;;  %v9541_v43 = vld [vmem:[%s12846_s6 + $0x560] sm:$0xff] }
0x32e9   :  { %v11047_v30 = vpop.eup %11046 }
0x32ea   :  { %v7495_v47 = vmul.f32 %v11047_v30, %v7479_v20  ;;  %v7504_v48 = vmul.f32 %v9499_v44, %v7496_v45 }
0x32ec   :  { %v7503_v49 = vmul.f32 %v9499_v44, %v7495_v47  ;;  %v12583_v52 = vadd.f32 %v9500_v41, %v7504_v48  ;;  %v9546_v47 = vld [vmem:[%s12847_s7 + $0x21] ss:$0 sm:$0xff]  ;;  %v9553_v48 = vld [vmem:[%s12847_s7 + $0x23] ss:$0 sm:$0xff] }
0x32ee   :  { %v12581_v50 = vadd.f32 %v9500_v41, %v7503_v49 }
0x32f0   :  { %10790 = vmatprep.mubr.msk.f32.mxu0 %vm153_vm2, %v12581_v50 }
0x32f1   :  { %10791 = vmatmul.mubr.msk.f32.vlgmr.msra.gmra.mxu0 %vm153_vm2, %v12583_v52 }
0x32f2   :  { %10805 = vmatpush3.msra.mxu0 %v9519_v53  ;;  %10812 = vmatprep.mubr.msk.f32.mxu0 %vm11073_vm11, %v11072_v9 }
0x32f3   :  { %10806 = vmatprep.subr.mxu0 %v11072_v9 }
0x32f4   :  { %10807 = vmatpush3.msra.mxu0 %v9518_v54 }
0x32f5   :  { %10808 = vmatprep.subr.mxu0 %v11072_v9 }
0x32f6   :  { %10809 = vmatpush3.msra.mxu0 %v9517_v55 }
0x32f7   :  { %10810 = vmatprep.subr.mxu0 %v11072_v9 }
0x32f8   :  { %10811 = vmatpush3.msra.mxu0 %v9516_v56 }
0x32f9   :  { %10813 = vmatmul.mubr.msk.f32.vlgmr.msra.gmra.mxu0 %vm153_vm2, %v12016_v59  ;;  %10825 = vmatprep.subr.mxu0 %v9536_v51 }
0x32fa   :  { %10826 = vmatpush3.msra.mxu0 %v9536_v51  ;;  %10833 = vmatprep.mubr.msk.f32.mxu0 %vm153_vm2, %v12581_v50 }
0x32fb   :  { %10827 = vmatprep.subr.mxu0 %v9535_v22 }
0x32fc   :  { %10828 = vmatpush3.msra.mxu0 %v9535_v22 }
0x32fd   :  { %10829 = vmatprep.subr.mxu0 %v9534_v57 }
0x32fe   :  { %10830 = vmatpush3.msra.mxu0 %v9534_v57 }
0x32ff   :  { %10831 = vmatprep.subr.mxu0 %v9533_v58 }
0x3300   :  { %10832 = vmatpush3.msra.mxu0 %v9533_v58 }
0x3301   :  { %10834 = vmatmul.mubr.msk.f32.vlgmr.msra.gmra.mxu0 %vm153_vm2, %v12583_v52  ;;  %10847 = vmatprep.subr.mxu0 %v11072_v9 }
0x3302   :  { %10848 = vmatpush3.msra.mxu0 %v9551_v15  ;;  %10855 = vmatprep.mubr.msk.f32.mxu0 %vm11073_vm11, %v11072_v9 }
0x3303   :  { %10849 = vmatprep.subr.mxu0 %v11072_v9 }
0x3304   :  { %10850 = vmatpush3.msra.mxu0 %v9550_v60 }
0x3305   :  { %10851 = vmatprep.subr.mxu0 %v11072_v9 }
0x3306   :  { %10852 = vmatpush3.msra.mxu0 %v9549_v61 }
0x3307   :  { %10853 = vmatprep.subr.mxu0 %v11072_v9 }
0x3308   :  { %10854 = vmatpush3.msra.mxu0 %v9548_v46 }
0x3309   :  { %10856 = vmatmul.mubr.msk.f32.vlgmr.msra.gmra.mxu0 %vm153_vm2, %v12016_v59 }
0x33b1   :  { %v10792_v62 = vpop.f32.mrf.mxu0 }
0x33b2   :  { %v7604_v4 = vadd.f32 %v10792_v62, %v9506_v63 }
0x33b3   :  { %v7598_v0 = vpop.f32.mrf.mxu0 }
0x33b4   :  { %v7599_v1 = vadd.f32 %v9506_v63, %v7598_v0 }
0x33b6   :  { %10817 = vmatprep.mubr.msk.f32.mxu1 %vm411_vm3, %v7599_v1 }
0x33b7   :  { %10818 = vmatmul.mubr.msk.f32.vlgmr.msra.gmra.mxu1 %vm411_vm3, %v7604_v4  ;;  %v9532_v4 = vld [vmem:[%s12846_s6 + $0x5d8] sm:$0xff] }
0x33b9   :  { %v7769_v6 = vpop.f32.mrf.mxu0 }
0x33ba   :  { %v7770_v7 = vadd.f32 %v9521_v5, %v7769_v6  ;;  %v9564_v5 = vld [vmem:[%s12846_s6 + $0x5f8] sm:$0xff]  ;;  %v9563_v6 = vld [vmem:[%s12846_s6 + $0x5f0] sm:$0xff] }
0x33bb   :  { %v10814_v8 = vpop.f32.mrf.mxu0  ;;  %10868 = vmatprep.subr.msk.mxu0 %vm411_vm3, %v9564_v5 }
0x33bc   :  { %10820 = vmatprep.subr.msk.mxu1 %vm5056_vm6, %v7770_v7  ;;  %10869 = vmatpush3.xpose.msk.msra.mxu0 %vm411_vm3, %v9564_v5  ;;  %v9589_v5 = vld [vmem:[%s12850_s10 + $0xc8] sm:$0xff] }
0x33bd   :  { %10821 = vmatpush3.msk.msra.mxu1 %vm5056_vm6, %v7770_v7  ;;  %10870 = vmatprep.subr.msk.mxu0 %vm411_vm3, %v9563_v6  ;;  %v9562_v7 = vld [vmem:[%s12846_s6 + $0x5e8] sm:$0xff] }
0x33be   :  { %10836 = vmatprep.subr.mxu1 %v11072_v9 }
0x33c0   :  { %10871 = vmatpush3.xpose.msk.msra.mxu0 %vm411_vm3, %v9563_v6  ;;  %v9588_v6 = vld [vmem:[%s12850_s10 + $0xc0] sm:$0xff] }
0x33c1   :  { %v10835_v13 = vpop.f32.mrf.mxu0  ;;  %10872 = vmatprep.subr.msk.mxu0 %vm411_vm3, %v9562_v7 }
0x33c2   :  { %v8055_v10 = vadd.f32 %v10835_v13, %v9538_v12 }
0x33c3   :  { %v8049_v11 = vpop.f32.mrf.mxu0 }
0x33c4   :  { %v8050_v44 = vadd.f32 %v9538_v12, %v8049_v11  ;;  %10873 = vmatpush3.xpose.msk.msra.mxu0 %vm411_vm3, %v9562_v7  ;;  %v9597_v7 = vld [vmem:[%s12851_s9 + $0x3] ss:$0 sm:$0xff] }
0x33c9   :  { %v8220_v14 = vpop.f32.mrf.mxu0 }
0x33ca   :  { %v8221_v53 = vadd.f32 %v9553_v48, %v8220_v14  ;;  %v9595_v48 = vld [vmem:[%s12850_s10 + $0xf8] sm:$0xff] }
0x33cb   :  { %v10857_v16 = vpop.f32.mrf.mxu0 }
0x33cc   :  { %v9531_v16 = vld [vmem:[%s12846_s6 + $0x5d0] sm:$0xff] }
0x3477   :  { %v10819_v17 = vpop.f32.mrf.mxu1 }
0x3478   :  { %v7858_v19 = vmul.f32 0.25, %v10819_v17  ;;  %v9530_v17 = vld [vmem:[%s12846_s6 + $0x5c8] sm:$0xff] }
0x3479   :  { %v7848_v21 = vpop.f32.mrf.mxu1 }
0x347a   :  { %v7857_v26 = vmul.f32 0.25, %v7848_v21  ;;  %v7862_v25 = vsel %vm5027_vm7, %v7858_v19, -inf  ;;  %v9561_v21 = vld [vmem:[%s12846_s6 + $0x5e0] sm:$0xff] }
0x347b   :  { %7863 = vmax.xlane.f32.xlu1 %v7862_v25  ;;  %10874 = vmatprep.subr.msk.mxu0 %vm411_vm3, %v9561_v21 }
0x347c   :  { %v7859_v23 = vsel %vm5027_vm7, %v7857_v26, -inf  ;;  %10875 = vmatpush3.xpose.msk.msra.mxu0 %vm411_vm3, %v9561_v21 }
0x347d   :  { %7860 = vmax.xlane.f32.xlu0 %v7859_v23 }
0x3504   :  { %v7864_v27 = vpop.xlane.xlu1 %7863 }
0x3505   :  { %v7866_v28 = vsub.f32 %v7858_v19, %v7864_v27  ;;  %v9529_v19 = vld [vmem:[%s12846_s6 + $0x5c0] sm:$0xff] }
0x3506   :  { %v7861_v18 = vpop.xlane.xlu0 %7860 }
0x3507   :  { %v7869_v29 = vmul.f32 1.442695, %v7866_v28  ;;  %v7865_v20 = vsub.f32 %v7857_v26, %v7861_v18 }
0x3509   :  { %11048 = vpow2.f32 %v7869_v29  ;;  %v7867_v31 = vmul.f32 1.442695, %v7865_v20  ;;  %v9578_v20 = vld [vmem:[%s12848_s11 + $0x18] ss:$0 sm:$0xff] }
0x350b   :  { %11050 = vpow2.f32 %v7867_v31 }
0x3516   :  { %v11049_v3 = vpop.eup %11048 }
0x3517   :  { %v7874_v32 = vsel %vm5027_vm7, %v11049_v3, 0.0 }
0x3518   :  { %v11051_v2 = vpop.eup %11050  ;;  %7875 = vadd.xlane.f32.xlu1 %v7874_v32 }
0x3519   :  { %v7871_v33 = vsel %vm5027_vm7, %v11051_v2, 0.0 }
0x351a   :  { %7872 = vadd.xlane.f32.xlu0 %v7871_v33 }
0x35a1   :  { %v7876_v34 = vpop.xlane.xlu1 %7875 }
0x35a2   :  { %11052 = vrcp.f32 %v7876_v34 }
0x35a3   :  { %v7873_v35 = vpop.xlane.xlu0 %7872 }
0x35a4   :  { %11054 = vrcp.f32 %v7873_v35 }
0x35af   :  { %v11053_v36 = vpop.eup %11052 }
0x35b0   :  { %v7880_v39 = vmul.f32 %v11053_v36, %v11049_v3 }
0x35b1   :  { %v11055_v37 = vpop.eup %11054 }
0x35b2   :  { %v7879_v38 = vmul.f32 %v11055_v37, %v11051_v2 }
0x35b4   :  { %10822 = vmatprep.mubr.msk.f32.mxu1 %vm5027_vm7, %v7879_v38 }
0x35b5   :  { %10823 = vmatmul.mubr.msk.f32.vlgmr.msra.gmra.mxu1 %vm5027_vm7, %v7880_v39 }
0x35b6   :  { %10837 = vmatpush3.msra.mxu1 %v9544_v40  ;;  %10844 = vmatprep.mubr.msk.f32.mxu1 %vm11073_vm11, %v11072_v9 }
0x35b7   :  { %10838 = vmatprep.subr.mxu1 %v11072_v9 }
0x35b8   :  { %10839 = vmatpush3.msra.mxu1 %v9543_v42 }
0x35b9   :  { %10840 = vmatprep.subr.mxu1 %v11072_v9 }
0x35ba   :  { %10841 = vmatpush3.msra.mxu1 %v9542_v24 }
0x35bb   :  { %10842 = vmatprep.subr.mxu1 %v11072_v9 }
0x35bc   :  { %10843 = vmatpush3.msra.mxu1 %v9541_v43 }
0x35bd   :  { %10845 = vmatmul.mubr.msk.f32.vlgmr.msra.gmra.mxu1 %vm153_vm2, %v12016_v59 }
0x35be   :  { %10860 = vmatprep.mubr.msk.f32.mxu1 %vm411_vm3, %v8050_v44  ;;  %v9586_v44 = vld [vmem:[%s12849_s8 + $0x78] sm:$0xff] }
0x35bf   :  { %10890 = vmatprep.subr.mxu0 %v9586_v44 }
0x3675   :  { %v12684_v45 = vpop.f32.mrf.mxu1 }
0x3677   :  { %v7956_v30 = vpop.f32.mrf.mxu1 }
0x367d   :  { %v8137_v41 = vpop.f32.mrf.mxu1 }
0x367e   :  { %v8138_v9 = vadd.f32 %v9546_v47, %v8137_v41  ;;  %v9583_v47 = vld [vmem:[%s12849_s8 + $0x60] sm:$0xff]  ;;  %v9594_v41 = vld [vmem:[%s12850_s10 + $0xf0] sm:$0xff] }
0x367f   :  { %v10846_v49 = vpop.f32.mrf.mxu1 }
0x3680   :  { %10858 = vmatprep.subr.msk.mxu1 %vm411_vm3, %v8138_v9  ;;  %v9592_v49 = vld [vmem:[%s12850_s10 + $0xe0] sm:$0xff] }
0x3681   :  { %10859 = vmatpush3.xpose.msk.msra.mxu1 %vm411_vm3, %v8138_v9  ;;  %v9593_v9 = vld [vmem:[%s12850_s10 + $0xe8] sm:$0xff] }
0x3682   :  { %10863 = vmatprep.subr.msk.mxu1 %vm5056_vm6, %v8221_v53 }
0x3684   :  { %10861 = vmatmul.mubr.msk.f32.vlgmr.msra.gmra.mxu1 %vm411_vm3, %v8055_v10 }
0x3685   :  { %10864 = vmatpush3.msk.msra.mxu1 %vm5056_vm6, %v8221_v53 }
0x3686   :  { %10879 = vmatprep.subr.msk.mxu1 %vm411_vm3, %v9532_v4 }
0x3744   :  { %v10862_v59 = vpop.f32.mrf.mxu1 }
0x3745   :  { %v8309_v54 = vmul.f32 0.25, %v10862_v59 }
0x3746   :  { %v8299_v55 = vpop.f32.mrf.mxu1 }
0x3747   :  { %v8308_v56 = vmul.f32 0.25, %v8299_v55  ;;  %v8313_v51 = vsel %vm5027_vm7, %v8309_v54, -inf }
0x3748   :  { %8314 = vmax.xlane.f32.xlu1 %v8313_v51 }
0x3749   :  { %v8310_v22 = vsel %vm5027_vm7, %v8308_v56, -inf }
0x374a   :  { %8311 = vmax.xlane.f32.xlu0 %v8310_v22 }
0x37d1   :  { %v8315_v57 = vpop.xlane.xlu1 %8314 }
0x37d2   :  { %v8317_v58 = vsub.f32 %v8309_v54, %v8315_v57  ;;  %v9581_v57 = vld [vmem:[%s12848_s11 + $0x19] ss:$0 sm:$0xff] }
0x37d3   :  { %v8312_v15 = vpop.xlane.xlu0 %8311 }
0x37d4   :  { %v8320_v60 = vmul.f32 1.442695, %v8317_v58  ;;  %v8316_v61 = vsub.f32 %v8308_v56, %v8312_v15 }
0x37d6   :  { %11056 = vpow2.f32 %v8320_v60  ;;  %v8318_v46 = vmul.f32 1.442695, %v8316_v61 }
0x37d8   :  { %11058 = vpow2.f32 %v8318_v46  ;;  %v9582_v46 = vld [vmem:[%s12848_s11 + $0x1a] ss:$0 sm:$0xff] }
0x37e3   :  { %v11057_v62 = vpop.eup %11056 }
0x37e4   :  { %v8325_v63 = vsel %vm5027_vm7, %v11057_v62, 0.0 }
0x37e5   :  { %v11059_v0 = vpop.eup %11058  ;;  %8326 = vadd.xlane.f32.xlu1 %v8325_v63 }
0x37e6   :  { %v8322_v1 = vsel %vm5027_vm7, %v11059_v0, 0.0 }
0x37e7   :  { %8323 = vadd.xlane.f32.xlu0 %v8322_v1  ;;  %v9591_v1 = vld [vmem:[%s12850_s10 + $0xd8] sm:$0xff] }
0x386e   :  { %v8327_v8 = vpop.xlane.xlu1 %8326 }
0x386f   :  { %11060 = vrcp.f32 %v8327_v8 }
0x3870   :  { %v8324_v12 = vpop.xlane.xlu0 %8323 }
0x3871   :  { %11062 = vrcp.f32 %v8324_v12 }
0x387c   :  { %v11061_v13 = vpop.eup %11060 }
0x387d   :  { %v8331_v14 = vmul.f32 %v11061_v13, %v11057_v62 }
0x387e   :  { %v11063_v10 = vpop.eup %11062 }
0x387f   :  { %v8330_v11 = vmul.f32 %v11063_v10, %v11059_v0 }
0x3881   :  { %10865 = vmatprep.mubr.msk.f32.mxu1 %vm5027_vm7, %v8330_v11 }
0x3882   :  { %10866 = vmatmul.mubr.msk.f32.vlgmr.msra.gmra.mxu1 %vm5027_vm7, %v8331_v14 }
0x3883   :  { %10880 = vmatpush3.xpose.msk.msra.mxu1 %vm411_vm3, %v9532_v4  ;;  %10887 = vmatprep.mubr.msk.f32.mxu1 %vm411_vm3, %v7956_v30  ;;  %v9584_v30 = vld [vmem:[%s12849_s8 + $0x68] sm:$0xff]  ;;  %v9590_v4 = vld [vmem:[%s12850_s10 + $0xd0] sm:$0xff] }
0x3884   :  { %10881 = vmatprep.subr.msk.mxu1 %vm411_vm3, %v9531_v16 }
0x3887   :  { %10882 = vmatpush3.xpose.msk.msra.mxu1 %vm411_vm3, %v9531_v16  ;;  %v9600_v16 = vld [vmem:[%s12848_s11 + $0x1b] ss:$0 sm:$0xff] }
0x3888   :  { %10883 = vmatprep.subr.msk.mxu1 %vm411_vm3, %v9530_v17 }
0x388b   :  { %10884 = vmatpush3.xpose.msk.msra.mxu1 %vm411_vm3, %v9530_v17 }
0x388c   :  { %10885 = vmatprep.subr.msk.mxu1 %vm411_vm3, %v9529_v19 }
0x388f   :  { %10886 = vmatpush3.xpose.msk.msra.mxu1 %vm411_vm3, %v9529_v19 }
0x3890   :  { %10901 = vmatprep.subr.mxu1 %v9595_v48 }
0x3892   :  { %10888 = vmatmul.mubr.msk.f32.vlgmr.msra.gmra.mxu1 %vm411_vm3, %v12684_v45  ;;  %v9585_v45 = vld [vmem:[%s12849_s8 + $0x70] sm:$0xff] }
0x3893   :  { %10902 = vmatpush3.msra.mxu1 %v9595_v48 }
0x3894   :  { %10903 = vmatprep.subr.mxu1 %v9594_v41 }
0x3895   :  { %10904 = vmatpush3.msra.mxu1 %v9594_v41 }
0x3896   :  { %10905 = vmatprep.subr.mxu1 %v9593_v9 }
0x3897   :  { %10906 = vmatpush3.msra.mxu1 %v9593_v9  ;;  %v9606_v9 = vld [vmem:[%s12848_s11 + $0x1d] ss:$0 sm:$0xff] }
0x3898   :  { %10907 = vmatprep.subr.mxu1 %v9592_v49 }
0x3899   :  { %10908 = vmatpush3.msra.mxu1 %v9592_v49 }
0x389a   :  { %10909 = vmatprep.subr.mxu1 %v9591_v1 }
0x389b   :  { %10910 = vmatpush3.msra.mxu1 %v9591_v1 }
0x389c   :  { %10911 = vmatprep.subr.mxu1 %v9590_v4 }
0x389d   :  { %10912 = vmatpush3.msra.mxu1 %v9590_v4 }
0x389e   :  { %10913 = vmatprep.subr.mxu1 %v9589_v5 }
0x389f   :  { %10914 = vmatpush3.msra.mxu1 %v9589_v5 }
0x38a0   :  { %10915 = vmatprep.subr.mxu1 %v9588_v6 }
0x38a1   :  { %10916 = vmatpush3.msra.mxu1 %v9588_v6 }
0x3942   :  { %v10867_v26 = vpop.f32.mrf.mxu1 }
0x3944   :  { %v8407_v25 = vpop.f32.mrf.mxu1 }
0x3945   :  { %10876 = vmatprep.mubr.msk.f32.mxu0 %vm411_vm3, %v8407_v25 }
0x3946   :  { %10877 = vmatmul.mubr.msk.f32.vlgmr.msra.gmra.mxu0 %vm411_vm3, %v10867_v26 }
0x3947   :  { %10891 = vmatpush3.msra.mxu0 %v9586_v44 }
0x3948   :  { %10892 = vmatprep.subr.mxu0 %v9585_v45 }
0x3949   :  { %10893 = vmatpush3.msra.mxu0 %v9585_v45  ;;  %v9605_v45 = vld [vmem:[%s12848_s11 + $0x1c] ss:$0 sm:$0xff] }
0x394a   :  { %10894 = vmatprep.subr.mxu0 %v9584_v30 }
0x394b   :  { %10895 = vmatpush3.msra.mxu0 %v9584_v30 }
0x394c   :  { %10896 = vmatprep.subr.mxu0 %v9583_v47 }
0x394d   :  { %10897 = vmatpush3.msra.mxu0 %v9583_v47 }
0x3952   :  { %v10889_v23 = vpop.f32.mrf.mxu1 }
0x3954   :  { %v8598_v18 = vpop.f32.mrf.mxu1 }
0x3a06   :  { %v10878_v27 = vpop.f32.mrf.mxu0 }
0x3a07   :  { %v8604_v28 = vadd.f32 %v10889_v23, %v10878_v27 }
0x3a08   :  { %v8505_v29 = vpop.f32.mrf.mxu0 }
0x3a09   :  { %v8608_v31 = vadd.f32 %v8604_v28, %v12583_v52  ;;  %v8599_v3 = vadd.f32 %v8598_v18, %v8505_v29 }
0x3a0b   :  { %v8607_v32 = vadd.f32 %v8599_v3, %v12581_v50  ;;  %v8618_v2 = vadd.f32 %v9578_v20, %v8608_v31 }
0x3a0d   :  { %v8626_v33 = vsel %vm153_vm2, %v8618_v2, 0.0  ;;  %v8617_v34 = vadd.f32 %v9578_v20, %v8607_v32 }
0x3a0e   :  { %8627 = vadd.xlane.f32.xlu1 %v8626_v33 }
0x3a0f   :  { %v8623_v35 = vsel %vm153_vm2, %v8617_v34, 0.0 }
0x3a10   :  { %8624 = vadd.xlane.f32.xlu0 %v8623_v35 }
0x3a97   :  { %v8628_v36 = vpop.xlane.xlu1 %8627 }
0x3a98   :  { %v8630_v37 = vmul.f32 0.03125, %v8628_v36  ;;  %v8910_v36 = vld [vmem:[%s12858_s14 + $0x18] sm:$0xff] }
0x3a99   :  { %v8625_v38 = vpop.xlane.xlu0 %8624  ;;  %10920 = vmatprep.subr.mxu0 %v8910_v36 }
0x3a9a   :  { %v8632_v39 = vsub.f32 %v8618_v2, %v8630_v37  ;;  %v8629_v40 = vmul.f32 0.03125, %v8625_v38  ;;  %v8909_v37 = vld [vmem:[%s12858_s14 + $0x10] sm:$0xff]  ;;  %v8908_v38 = vld [vmem:[%s12858_s14 + $0x8] sm:$0xff] }
0x3a9c   :  { %v8631_v42 = vsub.f32 %v8617_v34, %v8629_v40  ;;  %v8634_v24 = vmul.f32 %v8632_v39, %v8632_v39 }
0x3a9e   :  { %v8638_v52 = vsel %vm153_vm2, %v8634_v24, 0.0  ;;  %v8633_v43 = vmul.f32 %v8631_v42, %v8631_v42 }
0x3a9f   :  { %8639 = vadd.xlane.f32.xlu1 %v8638_v52 }
0x3aa0   :  { %v8635_v50 = vsel %vm153_vm2, %v8633_v43, 0.0 }
0x3aa1   :  { %8636 = vadd.xlane.f32.xlu0 %v8635_v50 }
0x3b28   :  { %v8640_v53 = vpop.xlane.xlu1 %8639 }
0x3b29   :  { %v8642_v59 = vmul.f32 0.03125, %v8640_v53 }
0x3b2a   :  { %v8637_v54 = vpop.xlane.xlu0 %8636 }
0x3b2b   :  { %v8644_v55 = vadd.f32 1e-05, %v8642_v59  ;;  %v8641_v56 = vmul.f32 0.03125, %v8637_v54  ;;  %v9607_v54 = vld [vmem:[%s12859_s15] ss:$0 sm:$0xff] }
0x3b2d   :  { %11064 = vrsqrt.f32 %v8644_v55  ;;  %v8643_v51 = vadd.f32 1e-05, %v8641_v56 }
0x3b2f   :  { %11066 = vrsqrt.f32 %v8643_v51 }
0x3b3a   :  { %v11065_v22 = vpop.eup %11064 }
0x3b3b   :  { %v8648_v58 = vmul.f32 %v11065_v22, %v8632_v39  ;;  %v8907_v39 = vld [vmem:[%s12858_s14] sm:$0xff] }
0x3b3c   :  { %v11067_v15 = vpop.eup %11066 }
0x3b3d   :  { %v8647_v60 = vmul.f32 %v11067_v15, %v8631_v42  ;;  %v8656_v61 = vmul.f32 %v9581_v57, %v8648_v58 }
0x3b3f   :  { %v8655_v62 = vmul.f32 %v9581_v57, %v8647_v60  ;;  %v8664_v0 = vadd.f32 %v9582_v46, %v8656_v61 }
0x3b41   :  { %v8663_v63 = vadd.f32 %v9582_v46, %v8655_v62 }
0x3b43   :  { %10898 = vmatprep.mubr.msk.f32.mxu0 %vm153_vm2, %v8663_v63 }
0x3b44   :  { %10899 = vmatmul.mubr.msk.f32.vlgmr.msra.gmra.mxu0 %vm153_vm2, %v8664_v0 }
0x3b45   :  { %10921 = vmatpush3.msra.mxu0 %v8910_v36 }
0x3b46   :  { %10922 = vmatprep.subr.mxu0 %v8909_v37 }
0x3b47   :  { %10923 = vmatpush3.msra.mxu0 %v8909_v37 }
0x3b48   :  { %10924 = vmatprep.subr.mxu0 %v8908_v38 }
0x3b49   :  { %10925 = vmatpush3.msra.mxu0 %v8908_v38 }
0x3b4a   :  { %10926 = vmatprep.subr.mxu0 %v8907_v39 }
0x3b4b   :  { %10927 = vmatpush3.msra.mxu0 %v8907_v39 }
0x3c04   :  { %v10900_v8 = vpop.f32.mrf.mxu0 }
0x3c05   :  { %v8767_v12 = vadd.f32 %v10900_v8, %v9597_v7 }
0x3c06   :  { %v8761_v13 = vpop.f32.mrf.mxu0 }
0x3c07   :  { %v8762_v10 = vadd.f32 %v9597_v7, %v8761_v13  ;;  %v8771_v14 = vmax.f32 %v8767_v12, 0.0 }
0x3c09   :  { %v8770_v11 = vmax.f32 %v8762_v10, 0.0 }
0x3c0b   :  { %10917 = vmatprep.mubr.msk.f32.mxu1 %vm1434_vm8, %v8770_v11 }
0x3c0c   :  { %10918 = vmatmul.mubr.msk.f32.vlgmr.msra.gmra.mxu1 %vm1434_vm8, %v8771_v14 }
0x3ccc   :  { %v10919_v17 = vpop.f32.mrf.mxu1 }
0x3ccd   :  { %v8856_v19 = vadd.f32 %v10919_v17, %v9600_v16 }
0x3cce   :  { %v8850_v21 = vpop.f32.mrf.mxu1 }
0x3ccf   :  { %v8851_v26 = vadd.f32 %v9600_v16, %v8850_v21  ;;  %v8860_v25 = vadd.f32 %v8856_v19, %v8664_v0 }
0x3cd1   :  { %v8868_v23 = vsel %vm153_vm2, %v8860_v25, 0.0  ;;  %v8859_v27 = vadd.f32 %v8851_v26, %v8663_v63 }
0x3cd2   :  { %8869 = vadd.xlane.f32.xlu1 %v8868_v23 }
0x3cd3   :  { %v8865_v28 = vsel %vm153_vm2, %v8859_v27, 0.0 }
0x3cd4   :  { %8866 = vadd.xlane.f32.xlu0 %v8865_v28 }
0x3d5b   :  { %v8870_v18 = vpop.xlane.xlu1 %8869 }
0x3d5c   :  { %v8872_v29 = vmul.f32 0.03125, %v8870_v18 }
0x3d5d   :  { %v8867_v20 = vpop.xlane.xlu0 %8866 }
0x3d5e   :  { %v8874_v31 = vsub.f32 %v8860_v25, %v8872_v29  ;;  %v8871_v3 = vmul.f32 0.03125, %v8867_v20 }
0x3d60   :  { %v8873_v32 = vsub.f32 %v8859_v27, %v8871_v3  ;;  %v8876_v2 = vmul.f32 %v8874_v31, %v8874_v31 }
0x3d62   :  { %v8880_v33 = vsel %vm153_vm2, %v8876_v2, 0.0  ;;  %v8875_v34 = vmul.f32 %v8873_v32, %v8873_v32 }
0x3d63   :  { %8881 = vadd.xlane.f32.xlu1 %v8880_v33 }
0x3d64   :  { %v8877_v35 = vsel %vm153_vm2, %v8875_v34, 0.0 }
0x3d65   :  { %8878 = vadd.xlane.f32.xlu0 %v8877_v35 }
0x3dec   :  { %v8882_v40 = vpop.xlane.xlu1 %8881 }
0x3ded   :  { %v8884_v42 = vmul.f32 0.03125, %v8882_v40 }
0x3dee   :  { %v8879_v24 = vpop.xlane.xlu0 %8878 }
0x3def   :  { %v8886_v52 = vadd.f32 1e-05, %v8884_v42  ;;  %v8883_v43 = vmul.f32 0.03125, %v8879_v24 }
0x3df1   :  { %11068 = vrsqrt.f32 %v8886_v52  ;;  %v8885_v50 = vadd.f32 1e-05, %v8883_v43 }
0x3df3   :  { %11070 = vrsqrt.f32 %v8885_v50 }
0x3dfe   :  { %v11069_v44 = vpop.eup %11068 }
0x3dff   :  { %v8890_v30 = vmul.f32 %v11069_v44, %v8874_v31 }
0x3e00   :  { %v11071_v47 = vpop.eup %11070 }
0x3e01   :  { %v8889_v48 = vmul.f32 %v11071_v47, %v8873_v32  ;;  %v8898_v41 = vmul.f32 %v9605_v45, %v8890_v30 }
0x3e03   :  { %v8897_v49 = vmul.f32 %v9605_v45, %v8889_v48  ;;  %v8906_v59 = vadd.f32 %v9606_v9, %v8898_v41 }
0x3e05   :  { %v8905_v53 = vadd.f32 %v9606_v9, %v8897_v49 }
0x3e07   :  { %10928 = vmatprep.mubr.msk.f32.mxu0 %vm153_vm2, %v8905_v53 }
0x3e08   :  { %10929 = vmatmul.mubr.msk.f32.vlgmr.msra.gmra.mxu0 %vm153_vm2, %v8906_v59 }
0x3ec8   :  { %v10930_v55 = vpop.f32.mrf.mxu0 }
0x3ec9   :  { %v8996_v56 = vadd.f32 %v10930_v55, %v9607_v54 }
0x3eca   :  { %v8990_v51 = vpop.f32.mrf.mxu0 }
0x3ecb   :  { %9000 = vst.msk [vmem:[%s12860_s16 + $0x8] sm:$0xff] %vm5027_vm7, %v8996_v56  ;;  %v8991_v22 = vadd.f32 %v9607_v54, %v8990_v51 }
0x3ecd   :  { %8999 = vst.msk [vmem:[%s12860_s16] sm:$0xff] %vm5027_vm7, %v8991_v22 }

</bundles_post_ra>
